<compile_context>
chip_gen: v6e
topology: v6e:2x2x1
jax: 0.10.0
libtpu: 0.0.40
codegen_flags: <defaults>
</compile_context>

<pallas_src>
import functools

import jax
import jax.numpy as jnp
from jax.experimental import pallas as pl
from jax.experimental.pallas import tpu as pltpu

EPS = 1e-5
IN_FEATURES = 1024
HIDDEN = 512
TILE_B = 1024  # default batch rows per grid step (clamped to the actual batch)


def residual_mlp_kernel(x_ref, w1_ref, s1_ref, b1_ref, w2_ref, s2_ref, b2_ref,
                        wf_ref, bf_ref, o_ref):
    # fc1 -> bn1 (per-column f32 scale/bias on the f32 accumulator) -> relu
    x = x_ref[...].astype(jnp.bfloat16)                                # (TB, 1024)
    h = jnp.dot(x, w1_ref[...], preferred_element_type=jnp.float32)    # MXU, f32 acc
    h = jnp.maximum(h * s1_ref[...] + b1_ref[...], 0.0)                # (TB, 512)
    residual = h

    # fc2 -> bn2 -> relu, then residual add
    h2 = jnp.dot(h.astype(jnp.bfloat16), w2_ref[...],
                 preferred_element_type=jnp.float32)
    h2 = jnp.maximum(h2 * s2_ref[...] + b2_ref[...], 0.0) + residual   # (TB, 512)

    # dropout(p=0.2): identity in eval mode.
    # TODO(synk): training-mode dropout (pltpu.prng_*) and batch-stat BN not implemented.

    # Final 512 -> 1 head computed directly in lane-dense form:
    #   head[0, b] = sum_d wf[0, d] * h2[b, d]   (contract last dims, "trans_b")
    # so the store is a full-width row, not a (TB, 1) column / broadcast slab.
    head = jax.lax.dot_general(
        wf_ref[...], h2,
        dimension_numbers=(((1,), (1,)), ((), ())),
        preferred_element_type=jnp.float32)                            # (1, TB)
    o_ref[0] = head + bf_ref[...]


def fold_params(params):
    """Prepare eval-mode parameters for the kernel.

    Raw fc weights are cast to bf16 for the MXU; the BatchNorm scale stays in
    f32 and is applied to the f32 accumulator inside the kernel (numerically
    safer than folding it into the bf16 weights). The BN shift is folded into
    the bias.
    """
    s1 = params["g1"] * jax.lax.rsqrt(params["v1"] + EPS)              # (1, 512)
    s2 = params["g2"] * jax.lax.rsqrt(params["v2"] + EPS)
    return dict(
        w1=params["w1"].astype(jnp.bfloat16),                          # (1024, 512)
        s1=s1.astype(jnp.float32),
        b1=((params["b1"] - params["m1"]) * s1 + params["be1"]).astype(jnp.float32),
        w2=params["w2"].astype(jnp.bfloat16),                          # (512, 512)
        s2=s2.astype(jnp.float32),
        b2=((params["b2"] - params["m2"]) * s2 + params["be2"]).astype(jnp.float32),
        wf=params["wf"].reshape(1, -1).astype(jnp.float32),            # (1, 512)
        bf=params["bf"].reshape(1, 1).astype(jnp.float32),             # (1, 1)
    )


@functools.partial(jax.jit, static_argnames=("tile_b",))
def residual_mlp_forward(x, p, *, tile_b=TILE_B):
    """x: (B, 1024), ideally bf16 (dominant DMA stream). Returns (B,) f32 logits."""
    B, F = x.shape

    # Choose the batch tile: full-array block when tile_b >= B (dims equal the
    # array -> always legal), otherwise a sublane-aligned tile with a cdiv grid
    # (ragged trailing block; its garbage rows are sliced off below). No jnp.pad.
    if tile_b >= B:
        tile = B
    else:
        tile = max(8, (tile_b // 8) * 8)
    num_tiles = pl.cdiv(B, tile)

    const2 = lambda i: (0, 0)  # resident params: same block every grid step

    cost = pl.CostEstimate(
        flops=int(2 * B * (F * HIDDEN + HIDDEN * HIDDEN + HIDDEN)),
        transcendentals=0,
        bytes_accessed=int(
            x.size * x.dtype.itemsize
            + sum(int(v.size) * v.dtype.itemsize for v in p.values())
            + num_tiles * tile * 4),
    )

    out = pl.pallas_call(
        residual_mlp_kernel,
        out_shape=jax.ShapeDtypeStruct((num_tiles, 1, tile), jnp.float32),
        grid=(num_tiles,),
        in_specs=[
            pl.BlockSpec((tile, F), lambda i: (i, 0)),      # x tile (pipelined)
            pl.BlockSpec(p["w1"].shape, const2),            # VMEM-resident params
            pl.BlockSpec(p["s1"].shape, const2),
            pl.BlockSpec(p["b1"].shape, const2),
            pl.BlockSpec(p["w2"].shape, const2),
            pl.BlockSpec(p["s2"].shape, const2),
            pl.BlockSpec(p["b2"].shape, const2),
            pl.BlockSpec(p["wf"].shape, const2),
            pl.BlockSpec(p["bf"].shape, const2),
        ],
        out_specs=pl.BlockSpec((1, 1, tile), lambda i: (i, 0, 0)),  # lane-dense logits
        compiler_params=pltpu.CompilerParams(
            dimension_semantics=("parallel",),
            vmem_limit_bytes=32 * 1024 * 1024),
        cost_estimate=cost,
    )(x, p["w1"], p["s1"], p["b1"], p["w2"], p["s2"], p["b2"], p["wf"], p["bf"])

    return out.reshape(-1)[:B]  # drop ragged-tile garbage rows; == .squeeze(1)


def init_params(key):
    """Deterministic parameter init mirroring nn.Linear / nn.BatchNorm1d shapes."""
    ks = jax.random.split(key, 6)

    def linear(kw, kb, fan_in, fan_out):
        bound = 1.0 / jnp.sqrt(fan_in)
        w = jax.random.uniform(kw, (fan_in, fan_out), jnp.float32, -bound, bound)
        b = jax.random.uniform(kb, (1, fan_out), jnp.float32, -bound, bound)
        return w, b

    w1, b1 = linear(ks[0], ks[1], IN_FEATURES, HIDDEN)
    w2, b2 = linear(ks[2], ks[3], HIDDEN, HIDDEN)
    wf, bf = linear(ks[4], ks[5], HIDDEN, 1)

    ones = jnp.ones((1, HIDDEN), jnp.float32)
    zeros = jnp.zeros((1, HIDDEN), jnp.float32)
    return dict(
        w1=w1, b1=b1, g1=ones, be1=zeros, m1=zeros, v1=ones,
        w2=w2, b2=b2, g2=ones, be2=zeros, m2=zeros, v2=ones,
        wf=wf, bf=bf,
    )


def reference_forward(x, p):
    """Pure-JAX f32 reference of the same (eval-mode) forward."""
    h = x @ p["w1"] + p["b1"]
    h = (h - p["m1"]) * (p["g1"] / jnp.sqrt(p["v1"] + EPS)) + p["be1"]
    h = jnp.maximum(h, 0.0)
    res = h
    h = h @ p["w2"] + p["b2"]
    h = (h - p["m2"]) * (p["g2"] / jnp.sqrt(p["v2"] + EPS)) + p["be2"]
    h = jnp.maximum(h, 0.0) + res
    return (h @ p["wf"] + p["bf"])[:, 0]


if __name__ == "__main__":
    key = jax.random.PRNGKey(0)
    k_params, k_x = jax.random.split(key)

    B = 300  # deliberately not tile-aligned: exercises the ragged trailing block
    params = init_params(k_params)
    x_f32 = jax.random.normal(k_x, (B, IN_FEATURES), jnp.float32)
    # Producer hands the kernel bf16 activations (halves the dominant x DMA).
    x = x_f32.astype(jnp.bfloat16)

    folded = fold_params(params)

    # Multi-tile ragged grid (pipelining + megacore split) and default big tile.
    out_tiled = jax.block_until_ready(residual_mlp_forward(x, folded, tile_b=128))
    out_default = jax.block_until_ready(residual_mlp_forward(x, folded))

    ref = reference_forward(x.astype(jnp.float32), params)

    assert out_tiled.shape == (B,)
    assert out_default.shape == (B,)
    err1 = float(jnp.max(jnp.abs(out_tiled - ref)))
    err2 = float(jnp.max(jnp.abs(out_default - ref)))
    # bf16 matmul inputs (f32 accumulate) vs. the pure-f32 reference.
    assert jnp.allclose(out_tiled, ref, atol=2e-2, rtol=2e-2), err1
    assert jnp.allclose(out_default, ref, atol=2e-2, rtol=2e-2), err2

    print("KERNEL_OK")
</pallas_src>

<mosaic_0001>
module attributes {stable_mosaic.version = 11 : i64} {
  func.func @residual_mlp_kernel(%arg0: i32, %arg1: memref<128x1024xbf16, #tpu.memory_space<vmem>>, %arg2: memref<1024x512xbf16, #tpu.memory_space<vmem>>, %arg3: memref<1x512xf32, #tpu.memory_space<vmem>>, %arg4: memref<1x512xf32, #tpu.memory_space<vmem>>, %arg5: memref<512x512xbf16, #tpu.memory_space<vmem>>, %arg6: memref<1x512xf32, #tpu.memory_space<vmem>>, %arg7: memref<1x512xf32, #tpu.memory_space<vmem>>, %arg8: memref<1x512xf32, #tpu.memory_space<vmem>>, %arg9: memref<1x1xf32, #tpu.memory_space<vmem>>, %arg10: memref<1x1x128xf32, #tpu.memory_space<vmem>>) attributes {dimension_semantics = [#tpu.dimension_semantics<parallel>], iteration_bounds = array<i64: 3>, scalar_prefetch = 0 : i64, scratch_operands = 0 : i64, tpu.core_type = #tpu.core_type<tc>, window_params = [{transform_indices = @transform_0, window_bounds = array<i64: 128, 1024>}, {pipeline_mode = #tpu.pipeline_mode<synchronous>, transform_indices = @transform_1, window_bounds = array<i64: 1024, 512>}, {pipeline_mode = #tpu.pipeline_mode<synchronous>, transform_indices = @transform_2, window_bounds = array<i64: 1, 512>}, {pipeline_mode = #tpu.pipeline_mode<synchronous>, transform_indices = @transform_3, window_bounds = array<i64: 1, 512>}, {pipeline_mode = #tpu.pipeline_mode<synchronous>, transform_indices = @transform_4, window_bounds = array<i64: 512, 512>}, {pipeline_mode = #tpu.pipeline_mode<synchronous>, transform_indices = @transform_5, window_bounds = array<i64: 1, 512>}, {pipeline_mode = #tpu.pipeline_mode<synchronous>, transform_indices = @transform_6, window_bounds = array<i64: 1, 512>}, {pipeline_mode = #tpu.pipeline_mode<synchronous>, transform_indices = @transform_7, window_bounds = array<i64: 1, 512>}, {pipeline_mode = #tpu.pipeline_mode<synchronous>, transform_indices = @transform_8, window_bounds = array<i64: 1, 1>}, {transform_indices = @transform_9, window_bounds = array<i64: 1, 1, 128>}]} {
    %c0 = arith.constant 0 : index
    %c0_0 = arith.constant 0 : index
    %0 = vector.load %arg1[%c0, %c0_0] : memref<128x1024xbf16, #tpu.memory_space<vmem>>, vector<128x1024xbf16>
    %c0_1 = arith.constant 0 : index
    %c0_2 = arith.constant 0 : index
    %1 = vector.load %arg2[%c0_1, %c0_2] : memref<1024x512xbf16, #tpu.memory_space<vmem>>, vector<1024x512xbf16>
    %cst = arith.constant dense<0.000000e+00> : vector<128x512xf32>
    %2 = tpu.matmul %0, %1, %cst {dimension_numbers = #tpu.dot_dimension_numbers<[1], [0], [0], [1], [0, 0, 1, 1], [], []>} : vector<128x1024xbf16>, vector<1024x512xbf16>, vector<128x512xf32> -> vector<128x512xf32>
    %c0_3 = arith.constant 0 : index
    %c0_4 = arith.constant 0 : index
    %3 = vector.load %arg3[%c0_3, %c0_4] : memref<1x512xf32, #tpu.memory_space<vmem>>, vector<1x512xf32>
    %4 = vector.broadcast %3 : vector<1x512xf32> to vector<128x512xf32>
    %5 = arith.mulf %2, %4 : vector<128x512xf32>
    %c0_5 = arith.constant 0 : index
    %c0_6 = arith.constant 0 : index
    %6 = vector.load %arg4[%c0_5, %c0_6] : memref<1x512xf32, #tpu.memory_space<vmem>>, vector<1x512xf32>
    %7 = vector.broadcast %6 : vector<1x512xf32> to vector<128x512xf32>
    %8 = arith.addf %5, %7 : vector<128x512xf32>
    %cst_7 = arith.constant 0.000000e+00 : f32
    %9 = vector.broadcast %cst_7 : f32 to vector<128x512xf32>
    %10 = arith.maximumf %8, %9 : vector<128x512xf32>
    %11 = arith.truncf %10 : vector<128x512xf32> to vector<128x512xbf16>
    %c0_8 = arith.constant 0 : index
    %c0_9 = arith.constant 0 : index
    %12 = vector.load %arg5[%c0_8, %c0_9] : memref<512x512xbf16, #tpu.memory_space<vmem>>, vector<512x512xbf16>
    %cst_10 = arith.constant dense<0.000000e+00> : vector<128x512xf32>
    %13 = tpu.matmul %11, %12, %cst_10 {dimension_numbers = #tpu.dot_dimension_numbers<[1], [0], [0], [1], [0, 0, 1, 1], [], []>} : vector<128x512xbf16>, vector<512x512xbf16>, vector<128x512xf32> -> vector<128x512xf32>
    %c0_11 = arith.constant 0 : index
    %c0_12 = arith.constant 0 : index
    %14 = vector.load %arg6[%c0_11, %c0_12] : memref<1x512xf32, #tpu.memory_space<vmem>>, vector<1x512xf32>
    %15 = vector.broadcast %14 : vector<1x512xf32> to vector<128x512xf32>
    %16 = arith.mulf %13, %15 : vector<128x512xf32>
    %c0_13 = arith.constant 0 : index
    %c0_14 = arith.constant 0 : index
    %17 = vector.load %arg7[%c0_13, %c0_14] : memref<1x512xf32, #tpu.memory_space<vmem>>, vector<1x512xf32>
    %18 = vector.broadcast %17 : vector<1x512xf32> to vector<128x512xf32>
    %19 = arith.addf %16, %18 : vector<128x512xf32>
    %cst_15 = arith.constant 0.000000e+00 : f32
    %20 = vector.broadcast %cst_15 : f32 to vector<128x512xf32>
    %21 = arith.maximumf %19, %20 : vector<128x512xf32>
    %22 = arith.addf %21, %10 : vector<128x512xf32>
    %c0_16 = arith.constant 0 : index
    %c0_17 = arith.constant 0 : index
    %23 = vector.load %arg8[%c0_16, %c0_17] : memref<1x512xf32, #tpu.memory_space<vmem>>, vector<1x512xf32>
    %cst_18 = arith.constant dense<0.000000e+00> : vector<1x128xf32>
    %24 = tpu.matmul %23, %22, %cst_18 {dimension_numbers = #tpu.dot_dimension_numbers<[1], [1], [0], [0], [0, 0, 1, 0], [], []>} : vector<1x512xf32>, vector<128x512xf32>, vector<1x128xf32> -> vector<1x128xf32>
    %c0_19 = arith.constant 0 : index
    %c0_20 = arith.constant 0 : index
    %25 = vector.load %arg9[%c0_19, %c0_20] : memref<1x1xf32, #tpu.memory_space<vmem>>, vector<1x1xf32>
    %26 = vector.broadcast %25 : vector<1x1xf32> to vector<1x128xf32>
    %27 = arith.addf %24, %26 : vector<1x128xf32>
    %c0_21 = arith.constant 0 : index
    %c0_22 = arith.constant 0 : index
    %c0_23 = arith.constant 0 : index
    %28 = vector.load %arg10[%c0_21, %c0_22, %c0_23] : memref<1x1x128xf32, #tpu.memory_space<vmem>>, vector<1x1x128xf32>
    %29 = vector.shape_cast %28 : vector<1x1x128xf32> to vector<1x128xf32>
    %30 = vector.shape_cast %27 : vector<1x128xf32> to vector<1x1x128xf32>
    tpu.vector_store %arg10[%c0_21, %c0_22, %c0_23], %30 {strides = array<i32>} : memref<1x1x128xf32, #tpu.memory_space<vmem>>, vector<1x1x128xf32>,
    return
  }
  func.func @transform_0(%arg0: i32) -> (i32, i32) {
    %c0_i32 = arith.constant 0 : i32
    %c0_i32_0 = arith.constant 0 : i32
    return %arg0, %c0_i32 : i32, i32
  }
  func.func @transform_1(%arg0: i32) -> (i32, i32) {
    %c0_i32 = arith.constant 0 : i32
    %c0_i32_0 = arith.constant 0 : i32
    %c0_i32_1 = arith.constant 0 : i32
    return %c0_i32, %c0_i32_0 : i32, i32
  }
  func.func @transform_2(%arg0: i32) -> (i32, i32) {
    %c0_i32 = arith.constant 0 : i32
    %c0_i32_0 = arith.constant 0 : i32
    %c0_i32_1 = arith.constant 0 : i32
    return %c0_i32, %c0_i32_0 : i32, i32
  }
  func.func @transform_3(%arg0: i32) -> (i32, i32) {
    %c0_i32 = arith.constant 0 : i32
    %c0_i32_0 = arith.constant 0 : i32
    %c0_i32_1 = arith.constant 0 : i32
    return %c0_i32, %c0_i32_0 : i32, i32
  }
  func.func @transform_4(%arg0: i32) -> (i32, i32) {
    %c0_i32 = arith.constant 0 : i32
    %c0_i32_0 = arith.constant 0 : i32
    %c0_i32_1 = arith.constant 0 : i32
    return %c0_i32, %c0_i32_0 : i32, i32
  }
  func.func @transform_5(%arg0: i32) -> (i32, i32) {
    %c0_i32 = arith.constant 0 : i32
    %c0_i32_0 = arith.constant 0 : i32
    %c0_i32_1 = arith.constant 0 : i32
    return %c0_i32, %c0_i32_0 : i32, i32
  }
  func.func @transform_6(%arg0: i32) -> (i32, i32) {
    %c0_i32 = arith.constant 0 : i32
    %c0_i32_0 = arith.constant 0 : i32
    %c0_i32_1 = arith.constant 0 : i32
    return %c0_i32, %c0_i32_0 : i32, i32
  }
  func.func @transform_7(%arg0: i32) -> (i32, i32) {
    %c0_i32 = arith.constant 0 : i32
    %c0_i32_0 = arith.constant 0 : i32
    %c0_i32_1 = arith.constant 0 : i32
    return %c0_i32, %c0_i32_0 : i32, i32
  }
  func.func @transform_8(%arg0: i32) -> (i32, i32) {
    %c0_i32 = arith.constant 0 : i32
    %c0_i32_0 = arith.constant 0 : i32
    %c0_i32_1 = arith.constant 0 : i32
    return %c0_i32, %c0_i32_0 : i32, i32
  }
  func.func @transform_9(%arg0: i32) -> (i32, i32, i32) {
    %c0_i32 = arith.constant 0 : i32
    %c0_i32_0 = arith.constant 0 : i32
    %c0_i32_1 = arith.constant 0 : i32
    return %arg0, %c0_i32, %c0_i32_0 : i32, i32, i32
  }
}

</mosaic_0001>

<bundles_post_ra>
// kernel: residual_mlp_forward.1
= control target key start
LH: loop header
LB: loop body
LE: loop exit
PB: predicated region body
PF: predicated region fallthrough
CT: control target
= control target key end

     0   :  { %s8629_s0 = inlined_call_operand.hbm [shape: bf16[300,1024], index: 0, kind: input, shape index: {}]   ;;  %s8630_s1 = inlined_call_operand.hbm [shape: bf16[1024,512], index: 1, kind: input, shape index: {}]   ;;  %s8631_s2 = inlined_call_operand.vmem [shape: f32[1,512], index: 2, kind: input, shape index: {}]   ;;  %s8632_s3 = inlined_call_operand.hbm [shape: f32[1,512], index: 3, kind: input, shape index: {}]   ;;  %s8633_s4 = inlined_call_operand.hbm [shape: bf16[512,512], index: 4, kind: input, shape index: {}]   ;;  %s8634_s5 = inlined_call_operand.vmem [shape: f32[1,512], index: 5, kind: input, shape index: {}]   ;;  %s8635_s6 = inlined_call_operand.hbm [shape: f32[1,512], index: 6, kind: input, shape index: {}]   ;;  %s8636_s7 = inlined_call_operand.vmem [shape: f32[1,512], index: 7, kind: input, shape index: {}]   ;;  %s8637_s8 = inlined_call_operand.<no memory space> [shape: f32[1,1], index: 8, kind: input, shape index: {}]   ;;  %s8638_s9 = inlined_call_operand.vmem [shape: f32[3,1,128], index: 9, kind: output, shape index: {}]  }
   0x1   :  { %v14_v0 = vstv %s8637_s8 }
   0x2   :  { %15 = vst [vmem:[#allocation2] sm:$0x1] %v14_v0 }
   0x3   :  { %16 = vsyncpa [#allocation4], 0 }
   0x4   :  { %18 = vsyncpa [#allocation4 + $0x1], 0 }
   0x5   :  { %19 = vsyncpa [#allocation6], 0 }
   0x6   :  { %20 = vsyncpa [#allocation9], 0  ;;  %s6669_s11 = smov 0   ;;  %s6671_s12 = smov 0  }
   0x7   :  { %s6673_s13 = smov 0   ;;  %s6675_s14 = smov 0  }
   0x8 LB: > { %s6688_s8 = sadd.s32 4294967295, %s6604_s14   ;;  %s6691_s15 = sadd.s32 1, %s6604_s14   ;;  %s6604_s14 = sphi %s6675_s14, %s9109_s14   ;;  %s6600_s13 = sphi %s6673_s13, %s9108_s13   ;;  %s6596_s12 = sphi %s6671_s12, %s9107_s12   ;;  %s6592_s11 = sphi %s6669_s11, %s9106_s11  }
   0x9   : > { %s30_s16 = ssub.s32 %s6604_s14, %s6691_s15  ;;  %s33_s17 = sadd.s32 1, %s6600_s13 }
   0xa   : > { %p31_p0 = scmp.eq.s32.totalorder %s30_s16, 0  ;;  %p40_p1 = scmp.ne.s32.totalorder %s6600_s13, %s6596_s12 }
   0xb   : > { %p41_p2 = scmp.eq.s32.totalorder %s6604_s14, 0  ;;  %p46_p3 = scmp.ne.s32.totalorder %s6596_s12, %s6592_s11 }
   0xc   : > { %s6701_s18 = scalar_select %p31_p0, %s6600_s13, %s33_s17  }
   0xd   : > { %p6703_p4 = por %p41_p2, %p40_p1  ;;  %p8639_p5 = scmp.eq.s32.totalorder %s6688_s8, 0 }
   0xe   : > { %p5302_p6 = scmp.ge.s32.totalorder %s6604_s14, 1  ;;  %p251_p7 = scmp.lt.s32.totalorder %s6604_s14, 4 }
   0xf   : > { %p6712_p8 = por %p8639_p5, %p46_p3  ;;  %s6606_s22 = smov [#allocation5]  }
  0x10   : > { %p6716_p9 = pnand %p5302_p6, %p251_p7  ;;  %s263_s23 = sshll.u32 %s6606_s22, 4  ;;  %s264_s23 = int_to_ptr.vmem [resolvable:$true] %s263_s23 }
  0x11   : > { %s8787_s20 = scalar_select %p6712_p8, 1, 0 }
  0x12   : > { %s8788_s21 = scalar_select %p6716_p9, 1, 0 }
  0x13   : > { %p5793_p10 = pneg %p6716_p9  ;;  %s6607_s25 = smov [#allocation8]  }
  0x14   : > { %s290_s26 = sshll.u32 %s6607_s25, 4  ;;  %s6608_s27 = smov [#allocation7]   ;;  %s291_s26 = int_to_ptr.vmem [resolvable:$true] %s290_s26 }
  0x15   : > { %p6724_p11 = pnand %p5793_p10, %p8639_p5  ;;  %s280_s28 = sshll.u32 %s6608_s27, 4  ;;  %s281_s28 = int_to_ptr.vmem [resolvable:$true] %s280_s28 }
  0x16   : > { %s6443_s29 = scalar_lea.vmem %s264_s23, 32768  ;;  %p6451_p2 = scmp.lt.s32.totalorder %s264_s23, %s264_s23 }
  0x17   : > { %p6434_p12 = pneg %p6724_p11  ;;  %p6444_p13 = scmp.ne.s32.totalorder %s264_s23, %s6443_s29 }
  0x18   : > { %p6452_p3 = scmp.lt.s32.totalorder %s6443_s29, %s6443_s29 }
  0x19   : > { %p6446_p0 = pnand %p6444_p13, %p6434_p12 }
  0x1a   : > { %p6453_p6 = por %p6452_p3, %p6451_p2 }
  0x1b   : > { %p6447_p1 = pneg %p6446_p0 }
  0x1d   : > { %p6454_p7 = pnand %p6453_p6, %p6447_p1 }
  0x1f   : > { %6457 = shalt.err (!%p6454_p7)
}
  0x20   : > { %s6609_s30 = smov 256   ;;  %s6610_s10 = smov 16  }
  0x21   : > { %5796 = dma.hbm_to_vmem [thread:$0]  (!%p6724_p11), %s8630_s1, 32768, %s264_s23, [#allocation6], %s6609_s30, %s6609_s30, %s6610_s10  }
  0x22   : > { %s6469_s17 = scalar_lea.vmem %s291_s26, 16384  ;;  %p6477_p5 = scmp.lt.s32.totalorder %s291_s26, %s291_s26 }
  0x23   : > { %p6470_p10 = scmp.ne.s32.totalorder %s291_s26, %s6469_s17  ;;  %p6478_p8 = scmp.lt.s32.totalorder %s6469_s17, %s6469_s17 }
  0x25   : > { %p6472_p13 = pnand %p6470_p10, %p6434_p12  ;;  %p6479_p2 = por %p6478_p8, %p6477_p5 }
  0x27   : > { %p6473_p0 = pneg %p6472_p13 }
  0x29   : > { %p6480_p1 = pnand %p6479_p2, %p6473_p0 }
  0x2b   : > { %6483 = shalt.err (!%p6480_p1)
}
  0x2c   : > { %5802 = dma.hbm_to_vmem [thread:$0]  (!%p6724_p11), %s8633_s4, 16384, %s291_s26, [#allocation9], %s6609_s30, %s6609_s30, %s6610_s10  }
  0x2d   : > { %s6495_s23 = scalar_lea.vmem %s281_s28, 64  ;;  %p6503_p10 = scmp.lt.s32.totalorder %s281_s28, %s281_s28 }
  0x2e   : > { %p6496_p3 = scmp.ne.s32.totalorder %s281_s28, %s6495_s23  ;;  %p6504_p13 = scmp.lt.s32.totalorder %s6495_s23, %s6495_s23 }
  0x30   : > { %p6498_p6 = pnand %p6496_p3, %p6434_p12  ;;  %p6505_p9 = por %p6504_p13, %p6503_p10 }
  0x32   : > { %p6499_p7 = pneg %p6498_p6 }
  0x34   : > { %p6506_p5 = pnand %p6505_p9, %p6499_p7 }
  0x36   : > { %6509 = shalt.err (!%p6506_p5)
}
  0x37   : > { %5799 = dma.hbm_to_vmem [thread:$0]  (!%p6724_p11), %s8632_s3, 64, %s281_s28, [#allocation6]  }
  0x38   : > { %s6611_s26 = smov [#allocation10]  }
  0x39   : > { %s307_s30 = sshll.u32 %s6611_s26, 4  ;;  %s308_s30 = int_to_ptr.vmem [resolvable:$true] %s307_s30 }
  0x3a   : > { %s6521_s10 = scalar_lea.vmem %s308_s30, 64  ;;  %p6529_p1 = scmp.lt.s32.totalorder %s308_s30, %s308_s30 }
  0x3b   : > { %p6522_p8 = scmp.ne.s32.totalorder %s308_s30, %s6521_s10  ;;  %p6530_p3 = scmp.lt.s32.totalorder %s6521_s10, %s6521_s10 }
  0x3d   : > { %p6524_p0 = pnand %p6522_p8, %p6434_p12  ;;  %p6531_p9 = por %p6530_p3, %p6529_p1 }
  0x3f   : > { %p6525_p2 = pneg %p6524_p0 }
  0x41   : > { %p6532_p6 = pnand %p6531_p9, %p6525_p2 }
  0x43   : > { %6535 = shalt.err (!%p6532_p6)
}
  0x44   : > { %5805 = dma.hbm_to_vmem [thread:$0]  (!%p6724_p11), %s8635_s6, 64, %s308_s30, [#allocation9]  }
  0x45   : > { %p5307_p7 = scmp.ge.s32.totalorder %s6604_s14, 3 }
  0x47   : > { %320 = sbr.rel (%p5307_p7) target bundleno = 108 (0x6c), region = 48 }
  0x4c   : > { %323 = sbr.rel (!%p6703_p4) target bundleno = 108 (0x6c), region = 52  ;;  %s324_s28 = sand.u32 (%p6703_p4), 1, %s6600_s13  }
  0x4d   : > { %s5309_s17 = sshll.u32 (%p6703_p4), %s6604_s14, 4  ;;  %s5308_s22 = sshll.u32 (%p6703_p4), %s324_s28, 9 }
  0x4e   : > { %s330_s25 = ssub.s32 (%p6703_p4), 38, %s5309_s17  ;;  %s6770_s27 = scalar_lea.sflag (%p6703_p4), [#allocation4], %s324_s28 }
  0x4f   : > { %p331_p12 = scmp.lt.s32.totalorder (%p6703_p4), %s330_s25, 16  ;;  %s328_s29 = scalar_lea.vmem (%p6703_p4), [#allocation3], %s5308_s22 }
  0x51   : > { %s9111_s25 = smov (!%p331_p12, %s330_s25), 16 }
  0x52   : > { %s6767_s23 = sshll.u32 %s9111_s25, 9 }
  0x53   : > { %s336_s24 = ssub.s32 8192, %s6767_s23 }
  0x54   : > { %337 = vsyncadd %s6770_s27, %s336_s24  ;;  %p5312_p4 = scmp.ne.s32.totalorder %s6767_s23, 0  ;;  %s5775_s19 = sshll.u32 %s6604_s14, 13 }
  0x55   : > { %s6778_s10 = scalar_lea.hbm %s8629_s0, %s5775_s19  ;;  %s343_s11 = sshll.u32 %s328_s29, 4  ;;  %s6780_s11 = int_to_ptr.vmem [resolvable:$true] %s343_s11 }
  0x56   : > { %s6536_s16 = scalar_lea.hbm %s6778_s10, %s6767_s23  ;;  %s6540_s14 = scalar_lea.hbm %s8629_s0, 19456 }
  0x57   : > { %p6537_p11 = scmp.ne.s32.totalorder %s6778_s10, %s6536_s16  ;;  %p6541_p5 = scmp.lt.s32.totalorder %s6778_s10, %s8629_s0 }
  0x58   : > { %p6542_p8 = scmp.lt.s32.totalorder %s6540_s14, %s6536_s16 }
  0x59   : > { %p6538_p10 = pnand %p6537_p11, %p5312_p4 }
  0x5a   : > { %p6543_p0 = por %p6542_p8, %p6541_p5 }
  0x5b   : > { %p6539_p13 = pneg %p6538_p10 }
  0x5d   : > { %p6544_p2 = pnand %p6543_p0, %p6539_p13 }
  0x5f   : > { %6547 = shalt.err (!%p6544_p2)
}
  0x60   : > { %s6548_s24 = scalar_lea.vmem %s6780_s11, %s6767_s23  ;;  %s6612_s29 = smov [#allocation3]  }
  0x61   : > { %p6549_p1 = scmp.ne.s32.totalorder %s6780_s11, %s6548_s24  ;;  %s6552_s19 = sshll.u32 %s6612_s29, 4  ;;  %s6553_s19 = int_to_ptr.vmem [resolvable:$false] %s6552_s19 }
  0x62   : > { %s6554_s26 = scalar_lea.vmem %s6553_s19, 16384  ;;  %p6555_p6 = scmp.lt.s32.totalorder %s6780_s11, %s6553_s19 }
  0x63   : > { %p6550_p3 = pnand %p6549_p1, %p5312_p4  ;;  %p6556_p7 = scmp.lt.s32.totalorder %s6554_s26, %s6548_s24 }
  0x65   : > { %p6551_p9 = pneg %p6550_p3  ;;  %p6557_p12 = por %p6556_p7, %p6555_p6 }
  0x67   : > { %p6558_p11 = pnand %p6557_p12, %p6551_p9 }
  0x69   : > { %6561 = shalt.err (!%p6558_p11)
}
  0x6a   : > { %s6613_s30 = smov 512   ;;  %s6614_s16 = smov 32  }
  0x6b   : > { %349 = dma.hbm_to_vmem [thread:$0]  (%p5312_p4), %s6778_s10, %s6767_s23, %s6780_s11, %s6770_s27, %s6613_s30, %s6613_s30, %s6614_s16  }
  0x6c PF: > { %p8790_p10 = scmp.ne.s32.totalorder %s8788_s21, 0 }
  0x6e   : > { %355 = sbr.rel (%p8790_p10) target bundleno = 1184 (0x4a0), region = 56 }
  0x73   : > { %s357_s28 = sand.u32 1, %s6596_s12   ;;  %p8791_p13 = scmp.ne.s32.totalorder %s8787_s20, 0 }
  0x74   : > { %s5318_s17 = sshll.u32 %s357_s28, 9  ;;  %s358_s14 = scalar_lea.sflag [#allocation4], %s357_s28 }
  0x75   : > { %s6809_s22 = scalar_lea.vmem [#allocation3], %s5318_s17 }
  0x76   : > { %6579 = dma.done.wait (%p8791_p13), %s358_s14, 8192  }
  0x77   : > { %6581 = vsyncadd (%p8791_p13), %s358_s14, 4294959104  ;;  %p8792_p5 = scmp.eq.s32.totalorder %s6688_s8, 0 }
  0x79   : > { %6583 = dma.done.wait (%p8792_p5), [#allocation6], 32832   ;;  %p8793_p4 = pmov %p8792_p5 }
  0x7b   : > { %6585 = vsyncadd (%p8793_p4), [#allocation6], 4294934464  ;;  %p8794_p8 = pmov %p8793_p4 }
  0x7c   : > { %p8795_p0 = pmov %p8793_p4 }
  0x7d   : > { %6587 = dma.done.wait (%p8794_p8), [#allocation9], 16448  }
  0x7e   : > { %6589 = vsyncadd (%p8795_p0), [#allocation9], 4294950848  ;;  %v5856_v1 = vld [vmem:[#allocation5 + $0xe4] ss:$16 sps:$4 sm:$0xff]   ;;  %v5860_v3 = vld [vmem:[#allocation5 + $0xe0] ss:$16 sps:$4 sm:$0xff]  }
  0x7f   : > { %v5858_v2 = vld [vmem:[#allocation5 + $0x2e4] ss:$16 sps:$4 sm:$0xff]   ;;  %2339 = vmatprep.subr.bf16.mxu0 %v5856_v1  ;;  %v5861_v4 = vld [vmem:[#allocation5 + $0x2e0] ss:$16 sps:$4 sm:$0xff]   ;;  %v420_v51 = vld [vmem:[%s6809_s22 + $0x8] sm:$0xff]  ;;  %p416_p2 = scmp.lt.s32.totalorder %s6688_s8, 2 }
  0x80   : > { %2452 = vmatprep.subr.bf16.mxu1 %v5858_v2  ;;  %v5862_v5 = vld [vmem:[#allocation5 + $0xc4] ss:$16 sps:$4 sm:$0xff]   ;;  %2340 = vmatpush1.bf16.msra.mxu0 %v5860_v3  ;;  %v5866_v7 = vld [vmem:[#allocation5 + $0xc0] ss:$16 sps:$4 sm:$0xff]   ;;  %v424_v52 = vld [vmem:[%s6809_s22 + $0x28] sm:$0xff] }
  0x81   : > { %2453 = vmatpush1.bf16.msra.mxu1 %v5861_v4  ;;  %v5864_v6 = vld [vmem:[#allocation5 + $0x2c4] ss:$16 sps:$4 sm:$0xff]   ;;  %2341 = vmatprep.subr.bf16.mxu0 %v5862_v5  ;;  %v5867_v8 = vld [vmem:[#allocation5 + $0x2c0] ss:$16 sps:$4 sm:$0xff]   ;;  %v6829_v56 = vcombine.high %v420_v51, %v424_v52  ;;  %s9113_s8 = smov (!%p416_p2, %s6688_s8), 2 }
  0x82   : > { %2454 = vmatprep.subr.bf16.mxu1 %v5864_v6  ;;  %v5868_v9 = vld [vmem:[#allocation5 + $0xa4] ss:$16 sps:$4 sm:$0xff]   ;;  %v5872_v11 = vld [vmem:[#allocation5 + $0xa0] ss:$16 sps:$4 sm:$0xff]   ;;  %s418_s29 = scalar_lea.vmem %s8638_s9, %s9113_s8 }
  0x83   : > { %v5870_v10 = vld [vmem:[#allocation5 + $0x2a4] ss:$16 sps:$4 sm:$0xff]   ;;  %v5873_v12 = vld [vmem:[#allocation5 + $0x2a0] ss:$16 sps:$4 sm:$0xff]   ;;  %2484 = vmatprep.mubr.bf16.mxu1 %v6829_v56 }
  0x84   : > { %2342 = vmatpush1.bf16.msra.mxu0 %v5866_v7  ;;  %v5874_v13 = vld [vmem:[#allocation5 + $0x84] ss:$16 sps:$4 sm:$0xff]   ;;  %v5878_v15 = vld [vmem:[#allocation5 + $0x80] ss:$16 sps:$4 sm:$0xff]  }
  0x85   : > { %2455 = vmatpush1.bf16.msra.mxu1 %v5867_v8  ;;  %2343 = vmatprep.subr.bf16.mxu0 %v5868_v9  ;;  %v5876_v14 = vld [vmem:[#allocation5 + $0x284] ss:$16 sps:$4 sm:$0xff]   ;;  %v5879_v16 = vld [vmem:[#allocation5 + $0x280] ss:$16 sps:$4 sm:$0xff]  }
  0x86   : > { %2456 = vmatprep.subr.bf16.mxu1 %v5870_v10  ;;  %v5880_v17 = vld [vmem:[#allocation5 + $0x64] ss:$16 sps:$4 sm:$0xff]   ;;  %v5884_v19 = vld [vmem:[#allocation5 + $0x60] ss:$16 sps:$4 sm:$0xff]  }
  0x87   : > { %v5882_v18 = vld [vmem:[#allocation5 + $0x264] ss:$16 sps:$4 sm:$0xff]   ;;  %v5885_v20 = vld [vmem:[#allocation5 + $0x260] ss:$16 sps:$4 sm:$0xff]  }
  0x88   : > { %2344 = vmatpush1.bf16.msra.mxu0 %v5872_v11  ;;  %v5886_v21 = vld [vmem:[#allocation5 + $0x44] ss:$16 sps:$4 sm:$0xff]   ;;  %v5890_v23 = vld [vmem:[#allocation5 + $0x40] ss:$16 sps:$4 sm:$0xff]  }
  0x89   : > { %2457 = vmatpush1.bf16.msra.mxu1 %v5873_v12  ;;  %2345 = vmatprep.subr.bf16.mxu0 %v5874_v13  ;;  %v5888_v22 = vld [vmem:[#allocation5 + $0x244] ss:$16 sps:$4 sm:$0xff]   ;;  %v5891_v24 = vld [vmem:[#allocation5 + $0x240] ss:$16 sps:$4 sm:$0xff]   ;;  %v6836_v13 = vcombine.low %v420_v51, %v424_v52 }
  0x8a   : > { %2458 = vmatprep.subr.bf16.mxu1 %v5876_v14  ;;  %v5892_v25 = vld [vmem:[#allocation5 + $0x24] ss:$16 sps:$4 sm:$0xff]   ;;  %v5896_v27 = vld [vmem:[#allocation5 + $0x20] ss:$16 sps:$4 sm:$0xff]  }
  0x8b   : > { %v5894_v26 = vld [vmem:[#allocation5 + $0x224] ss:$16 sps:$4 sm:$0xff]   ;;  %v5897_v28 = vld [vmem:[#allocation5 + $0x220] ss:$16 sps:$4 sm:$0xff]  }
  0x8c   : > { %2346 = vmatpush1.bf16.msra.mxu0 %v5878_v15  ;;  %v5898_v29 = vld [vmem:[#allocation5 + $0x4] ss:$16 sps:$4 sm:$0xff]   ;;  %v5902_v31 = vld [vmem:[#allocation5] ss:$16 sps:$4 sm:$0xff]   ;;  %v428_v15 = vld [vmem:[%s6809_s22 + $0x48] sm:$0xff] }
  0x8d   : > { %2459 = vmatpush1.bf16.msra.mxu1 %v5879_v16  ;;  %2347 = vmatprep.subr.bf16.mxu0 %v5880_v17  ;;  %v5900_v30 = vld [vmem:[#allocation5 + $0x204] ss:$16 sps:$4 sm:$0xff]   ;;  %v5903_v32 = vld [vmem:[#allocation5 + $0x200] ss:$16 sps:$4 sm:$0xff]   ;;  %v432_v16 = vld [vmem:[%s6809_s22 + $0x68] sm:$0xff] }
  0x8e   : > { %2460 = vmatprep.subr.bf16.mxu1 %v5882_v18  ;;  %v5904_v33 = vld [vmem:[#allocation5 + $0x1e4] ss:$16 sps:$4 sm:$0xff]   ;;  %v5908_v35 = vld [vmem:[#allocation5 + $0x1e0] ss:$16 sps:$4 sm:$0xff]  }
  0x8f   : > { %v5906_v34 = vld [vmem:[#allocation5 + $0x3e4] ss:$16 sps:$4 sm:$0xff]   ;;  %v5909_v36 = vld [vmem:[#allocation5 + $0x3e0] ss:$16 sps:$4 sm:$0xff]  }
  0x90   : > { %2348 = vmatpush1.bf16.msra.mxu0 %v5884_v19  ;;  %v5910_v37 = vld [vmem:[#allocation5 + $0x1c4] ss:$16 sps:$4 sm:$0xff]   ;;  %v5914_v39 = vld [vmem:[#allocation5 + $0x1c0] ss:$16 sps:$4 sm:$0xff]  }
  0x91   : > { %2461 = vmatpush1.bf16.msra.mxu1 %v5885_v20  ;;  %2349 = vmatprep.subr.bf16.mxu0 %v5886_v21  ;;  %v5912_v38 = vld [vmem:[#allocation5 + $0x3c4] ss:$16 sps:$4 sm:$0xff]   ;;  %v5915_v40 = vld [vmem:[#allocation5 + $0x3c0] ss:$16 sps:$4 sm:$0xff]   ;;  %v6843_v20 = vcombine.high %v428_v15, %v432_v16 }
  0x92   : > { %2462 = vmatprep.subr.bf16.mxu1 %v5888_v22  ;;  %v5916_v41 = vld [vmem:[#allocation5 + $0x1a4] ss:$16 sps:$4 sm:$0xff]   ;;  %v5920_v43 = vld [vmem:[#allocation5 + $0x1a0] ss:$16 sps:$4 sm:$0xff]  }
  0x93   : > { %v5918_v42 = vld [vmem:[#allocation5 + $0x3a4] ss:$16 sps:$4 sm:$0xff]   ;;  %v5921_v44 = vld [vmem:[#allocation5 + $0x3a0] ss:$16 sps:$4 sm:$0xff]  }
  0x94   : > { %2350 = vmatpush1.bf16.msra.mxu0 %v5890_v23  ;;  %v5922_v45 = vld [vmem:[#allocation5 + $0x184] ss:$16 sps:$4 sm:$0xff]   ;;  %v5926_v47 = vld [vmem:[#allocation5 + $0x180] ss:$16 sps:$4 sm:$0xff]  }
  0x95   : > { %2463 = vmatpush1.bf16.msra.mxu1 %v5891_v24  ;;  %2351 = vmatprep.subr.bf16.mxu0 %v5892_v25  ;;  %v5924_v46 = vld [vmem:[#allocation5 + $0x384] ss:$16 sps:$4 sm:$0xff]   ;;  %v5927_v48 = vld [vmem:[#allocation5 + $0x380] ss:$16 sps:$4 sm:$0xff]  }
  0x96   : > { %2464 = vmatprep.subr.bf16.mxu1 %v5894_v26  ;;  %v419_v49 = vld [vmem:[%s6809_s22] sm:$0xff] }
  0x97   : > { %v423_v50 = vld [vmem:[%s6809_s22 + $0x20] sm:$0xff] }
  0x98   : > { %2352 = vmatpush1.bf16.msra.mxu0 %v5896_v27  ;;  %v5928_v53 = vld [vmem:[#allocation5 + $0x164] ss:$16 sps:$4 sm:$0xff]   ;;  %v6827_v54 = vcombine.high %v419_v49, %v423_v50  ;;  %v5932_v57 = vld [vmem:[#allocation5 + $0x160] ss:$16 sps:$4 sm:$0xff]   ;;  %v6834_v12 = vcombine.low %v419_v49, %v423_v50 }
  0x99   : > { %2465 = vmatpush1.bf16.msra.mxu1 %v5897_v28  ;;  %2353 = vmatprep.subr.bf16.mxu0 %v5898_v29  ;;  %v5930_v55 = vld [vmem:[#allocation5 + $0x364] ss:$16 sps:$4 sm:$0xff]   ;;  %v5933_v58 = vld [vmem:[#allocation5 + $0x360] ss:$16 sps:$4 sm:$0xff]  }
  0x9a   : > { %2466 = vmatprep.subr.bf16.mxu1 %v5900_v30  ;;  %2371 = vmatprep.mubr.bf16.mxu0 %v6827_v54  ;;  %v5934_v59 = vld [vmem:[#allocation5 + $0x144] ss:$16 sps:$4 sm:$0xff]   ;;  %v5938_v61 = vld [vmem:[#allocation5 + $0x140] ss:$16 sps:$4 sm:$0xff]   ;;  %v6853_v30 = vcombine.low %v428_v15, %v432_v16 }
  0x9b   : > { %v5936_v60 = vld [vmem:[#allocation5 + $0x344] ss:$16 sps:$4 sm:$0xff]   ;;  %v5939_v62 = vld [vmem:[#allocation5 + $0x340] ss:$16 sps:$4 sm:$0xff]  }
  0x9c   : > { %2354 = vmatpush1.bf16.msra.mxu0 %v5902_v31  ;;  %v5940_v63 = vld [vmem:[#allocation5 + $0x124] ss:$16 sps:$4 sm:$0xff]   ;;  %v5944_v1 = vld [vmem:[#allocation5 + $0x120] ss:$16 sps:$4 sm:$0xff]   ;;  %v436_v31 = vld [vmem:[%s6809_s22 + $0x88] sm:$0xff] }
  0x9d   : > { %2467 = vmatpush1.bf16.msra.mxu1 %v5903_v32  ;;  %2355 = vmatprep.subr.bf16.mxu0 %v5904_v33  ;;  %v5942_v0 = vld [vmem:[#allocation5 + $0x324] ss:$16 sps:$4 sm:$0xff]   ;;  %v5945_v2 = vld [vmem:[#allocation5 + $0x320] ss:$16 sps:$4 sm:$0xff]   ;;  %v440_v32 = vld [vmem:[%s6809_s22 + $0xa8] sm:$0xff] }
  0x9e   : > { %2468 = vmatprep.subr.bf16.mxu1 %v5906_v34  ;;  %v5946_v3 = vld [vmem:[#allocation5 + $0x104] ss:$16 sps:$4 sm:$0xff]   ;;  %v5950_v5 = vld [vmem:[#allocation5 + $0x100] ss:$16 sps:$4 sm:$0xff]  }
  0x9f   : > { %v5948_v4 = vld [vmem:[#allocation5 + $0x304] ss:$16 sps:$4 sm:$0xff]   ;;  %v5951_v6 = vld [vmem:[#allocation5 + $0x300] ss:$16 sps:$4 sm:$0xff]  }
  0xa0   : > { %2356 = vmatpush2.bf16.msra.mxu0 %v5908_v35  ;;  %v5954_v7 = vld [vmem:[#allocation5 + $0x4e4] ss:$16 sps:$4 sm:$0xff]   ;;  %v5952_v9 = vld [vmem:[#allocation5 + $0x4e0] ss:$16 sps:$4 sm:$0xff]  }
  0xa1   : > { %2469 = vmatpush2.bf16.msra.mxu1 %v5909_v36  ;;  %2357 = vmatprep.subr.bf16.mxu0 %v5910_v37  ;;  %v5957_v8 = vld [vmem:[#allocation5 + $0x6e4] ss:$16 sps:$4 sm:$0xff]   ;;  %v5955_v10 = vld [vmem:[#allocation5 + $0x6e0] ss:$16 sps:$4 sm:$0xff]   ;;  %v6859_v36 = vcombine.high %v436_v31, %v440_v32 }
  0xa2   : > { %2470 = vmatprep.subr.bf16.mxu1 %v5912_v38  ;;  %v427_v11 = vld [vmem:[%s6809_s22 + $0x40] sm:$0xff] }
  0xa3   : > { %v431_v14 = vld [vmem:[%s6809_s22 + $0x60] sm:$0xff] }
  0xa4   : > { %2358 = vmatpush2.bf16.msra.mxu0 %v5914_v39  ;;  %v5960_v17 = vld [vmem:[#allocation5 + $0x4c4] ss:$16 sps:$4 sm:$0xff]   ;;  %v6841_v19 = vcombine.high %v427_v11, %v431_v14  ;;  %v5958_v21 = vld [vmem:[#allocation5 + $0x4c0] ss:$16 sps:$4 sm:$0xff]   ;;  %v6851_v29 = vcombine.low %v427_v11, %v431_v14 }
  0xa5   : > { %2471 = vmatpush2.bf16.msra.mxu1 %v5915_v40  ;;  %2359 = vmatprep.subr.bf16.mxu0 %v5916_v41  ;;  %v5963_v18 = vld [vmem:[#allocation5 + $0x6c4] ss:$16 sps:$4 sm:$0xff]   ;;  %v5961_v22 = vld [vmem:[#allocation5 + $0x6c0] ss:$16 sps:$4 sm:$0xff]  }
  0xa6   : > { %2472 = vmatprep.subr.bf16.mxu1 %v5918_v42  ;;  %v5966_v23 = vld [vmem:[#allocation5 + $0x4a4] ss:$16 sps:$4 sm:$0xff]   ;;  %v5964_v25 = vld [vmem:[#allocation5 + $0x4a0] ss:$16 sps:$4 sm:$0xff]  }
  0xa7   : > { %v5969_v24 = vld [vmem:[#allocation5 + $0x6a4] ss:$16 sps:$4 sm:$0xff]   ;;  %v5967_v26 = vld [vmem:[#allocation5 + $0x6a0] ss:$16 sps:$4 sm:$0xff]  }
  0xa8   : > { %2360 = vmatpush2.bf16.msra.mxu0 %v5920_v43  ;;  %v435_v27 = vld [vmem:[%s6809_s22 + $0x80] sm:$0xff] }
  0xa9   : > { %2473 = vmatpush2.bf16.msra.mxu1 %v5921_v44  ;;  %2361 = vmatprep.subr.bf16.mxu0 %v5922_v45  ;;  %v439_v28 = vld [vmem:[%s6809_s22 + $0xa0] sm:$0xff] }
  0xaa   : > { %2474 = vmatprep.subr.bf16.mxu1 %v5924_v46  ;;  %v5972_v33 = vld [vmem:[#allocation5 + $0x484] ss:$16 sps:$4 sm:$0xff]   ;;  %v6857_v35 = vcombine.high %v435_v27, %v439_v28  ;;  %v5970_v37 = vld [vmem:[#allocation5 + $0x480] ss:$16 sps:$4 sm:$0xff]   ;;  %v6867_v45 = vcombine.low %v435_v27, %v439_v28  ;;  %v6869_v46 = vcombine.low %v436_v31, %v440_v32 }
  0xab   : > { %v5975_v34 = vld [vmem:[#allocation5 + $0x684] ss:$16 sps:$4 sm:$0xff]   ;;  %v5973_v38 = vld [vmem:[#allocation5 + $0x680] ss:$16 sps:$4 sm:$0xff]  }
  0xac   : > { %2362 = vmatpush2.bf16.msra.mxu0 %v5926_v47  ;;  %v5978_v39 = vld [vmem:[#allocation5 + $0x464] ss:$16 sps:$4 sm:$0xff]   ;;  %v5976_v41 = vld [vmem:[#allocation5 + $0x460] ss:$16 sps:$4 sm:$0xff]   ;;  %v444_v47 = vld [vmem:[%s6809_s22 + $0xc8] sm:$0xff] }
  0xad   : > { %2475 = vmatpush2.bf16.msra.mxu1 %v5927_v48  ;;  %2363 = vmatprep.subr.bf16.mxu0 %v5928_v53  ;;  %v5981_v40 = vld [vmem:[#allocation5 + $0x664] ss:$16 sps:$4 sm:$0xff]   ;;  %v5979_v42 = vld [vmem:[#allocation5 + $0x660] ss:$16 sps:$4 sm:$0xff]   ;;  %v448_v48 = vld [vmem:[%s6809_s22 + $0xe8] sm:$0xff] }
  0xae   : > { %2476 = vmatprep.subr.bf16.mxu1 %v5930_v55  ;;  %v443_v43 = vld [vmem:[%s6809_s22 + $0xc0] sm:$0xff]  ;;  %v6875_v52 = vcombine.high %v444_v47, %v448_v48 }
  0xaf   : > { %v447_v44 = vld [vmem:[%s6809_s22 + $0xe0] sm:$0xff] }
  0xb0   : > { %2364 = vmatpush2.bf16.msra.mxu0 %v5932_v57  ;;  %v5984_v49 = vld [vmem:[#allocation5 + $0x444] ss:$16 sps:$4 sm:$0xff]   ;;  %v6873_v51 = vcombine.high %v443_v43, %v447_v44  ;;  %v5982_v53 = vld [vmem:[#allocation5 + $0x440] ss:$16 sps:$4 sm:$0xff]  }
  0xb1   : > { %2477 = vmatpush2.bf16.msra.mxu1 %v5933_v58  ;;  %2365 = vmatprep.subr.bf16.mxu0 %v5934_v59  ;;  %v5987_v50 = vld [vmem:[#allocation5 + $0x644] ss:$16 sps:$4 sm:$0xff]   ;;  %v5985_v55 = vld [vmem:[#allocation5 + $0x640] ss:$16 sps:$4 sm:$0xff]  }
  0xb2   : > { %2478 = vmatprep.subr.bf16.mxu1 %v5936_v60  ;;  %v5990_v57 = vld [vmem:[#allocation5 + $0x424] ss:$16 sps:$4 sm:$0xff]   ;;  %v5988_v59 = vld [vmem:[#allocation5 + $0x420] ss:$16 sps:$4 sm:$0xff]  }
  0xb3   : > { %v5993_v58 = vld [vmem:[#allocation5 + $0x624] ss:$16 sps:$4 sm:$0xff]   ;;  %v6006_v27 = vld [vmem:[#allocation5 + $0x5c0] ss:$16 sps:$4 sm:$0xff]  }
  0xb4   : > { %2366 = vmatpush2.bf16.msra.mxu0 %v5938_v61  ;;  %v451_v60 = vld [vmem:[%s6809_s22 + $0x100] sm:$0xff] }
  0xb5   : > { %2479 = vmatpush2.bf16.msra.mxu1 %v5939_v62  ;;  %2367 = vmatprep.subr.bf16.mxu0 %v5940_v63  ;;  %v455_v61 = vld [vmem:[%s6809_s22 + $0x120] sm:$0xff]  ;;  %v6883_v62 = vcombine.low %v443_v43, %v447_v44  ;;  %v6885_v63 = vcombine.low %v444_v47, %v448_v48 }
  0xb6   : > { %2480 = vmatprep.subr.bf16.mxu1 %v5942_v0  ;;  %v452_v0 = vld [vmem:[%s6809_s22 + $0x108] sm:$0xff]  ;;  %v459_v11 = vld [vmem:[%s6809_s22 + $0x140] sm:$0xff]  ;;  %v6899_v15 = vcombine.low %v451_v60, %v455_v61 }
  0xb7   : > { %v463_v14 = vld [vmem:[%s6809_s22 + $0x160] sm:$0xff] }
  0xb8   : > { %2368 = vmatpush2.bf16.msra.mxu0 %v5944_v1  ;;  %v456_v1 = vld [vmem:[%s6809_s22 + $0x128] sm:$0xff]  ;;  %v6009_v28 = vld [vmem:[#allocation5 + $0x7c0] ss:$16 sps:$4 sm:$0xff]   ;;  %v6014_v31 = vld [vmem:[#allocation5 + $0x5a4] ss:$16 sps:$4 sm:$0xff]  }
  0xb9   : > { %2481 = vmatpush2.bf16.msra.mxu1 %v5945_v2  ;;  %2369 = vmatprep.subr.bf16.mxu0 %v5946_v3  ;;  %v5991_v2 = vld [vmem:[#allocation5 + $0x620] ss:$16 sps:$4 sm:$0xff]   ;;  %v5996_v3 = vld [vmem:[#allocation5 + $0x404] ss:$16 sps:$4 sm:$0xff]   ;;  %v6901_v16 = vcombine.low %v452_v0, %v456_v1 }
  0xba   : > { %2482 = vmatprep.subr.bf16.mxu1 %v5948_v4  ;;  %v5999_v4 = vld [vmem:[#allocation5 + $0x604] ss:$16 sps:$4 sm:$0xff]  }
  0xbb   : > { %v6017_v32 = vld [vmem:[#allocation5 + $0x7a4] ss:$16 sps:$4 sm:$0xff]  }
  0xbc   : > { %2370 = vmatpush2.bf16.msra.mxu0 %v5950_v5  ;;  %v6889_v5 = vcombine.high %v451_v60, %v455_v61  ;;  %v6020_v43 = vld [vmem:[#allocation5 + $0x584] ss:$16 sps:$4 sm:$0xff]  }
  0xbd   : > { %2483 = vmatpush2.bf16.msra.mxu1 %v5951_v6  ;;  %2565 = vmatprep.subr.bf16.mxu0 %v5954_v7  ;;  %v6891_v6 = vcombine.high %v452_v0, %v456_v1  ;;  %v5994_v7 = vld [vmem:[#allocation5 + $0x400] ss:$16 sps:$4 sm:$0xff]   ;;  %v6023_v44 = vld [vmem:[#allocation5 + $0x784] ss:$16 sps:$4 sm:$0xff]   ;;  %v476_v1 = vld [vmem:[%s6809_s22 + $0x1c8] sm:$0xff] }
  0xbe   : > { %2678 = vmatprep.subr.bf16.mxu1 %v5957_v8  ;;  %v5997_v8 = vld [vmem:[#allocation5 + $0x600] ss:$16 sps:$4 sm:$0xff]  }
  0xbf   : > { %2372 = vmatmul.mubr.bf16.vlgmr.msra.gmra.mxu0 %v6834_v12  ;;  %v479_v60 = vld [vmem:[%s6809_s22 + $0x1e0] sm:$0xff] }
  0xc0   : > { %2485 = vmatmul.mubr.bf16.vlgmr.msra.gmra.mxu1 %v6836_v13  ;;  %2566 = vmatpush1.bf16.msra.mxu0 %v5952_v9  ;;  %v6002_v9 = vld [vmem:[#allocation5 + $0x5e4] ss:$16 sps:$4 sm:$0xff]  }
  0xc1   : > { %2679 = vmatpush1.bf16.msra.mxu1 %v5955_v10  ;;  %2567 = vmatprep.subr.bf16.mxu0 %v5960_v17  ;;  %v6005_v10 = vld [vmem:[#allocation5 + $0x7e4] ss:$16 sps:$4 sm:$0xff]   ;;  %v460_v17 = vld [vmem:[%s6809_s22 + $0x148] sm:$0xff] }
  0xc2   : > { %2680 = vmatprep.subr.bf16.mxu1 %v5963_v18  ;;  %2381 = vmatprep.mubr.bf16.mxu0 %v6841_v19  ;;  %v464_v18 = vld [vmem:[%s6809_s22 + $0x168] sm:$0xff] }
  0xc3   : > { %2494 = vmatprep.mubr.bf16.mxu1 %v6843_v20 }
  0xc4   : > { %2568 = vmatpush1.bf16.msra.mxu0 %v5958_v21  ;;  %v6000_v21 = vld [vmem:[#allocation5 + $0x5e0] ss:$16 sps:$4 sm:$0xff]  }
  0xc5   : > { %2681 = vmatpush1.bf16.msra.mxu1 %v5961_v22  ;;  %2569 = vmatprep.subr.bf16.mxu0 %v5966_v23  ;;  %v6003_v22 = vld [vmem:[#allocation5 + $0x7e0] ss:$16 sps:$4 sm:$0xff]   ;;  %v6008_v23 = vld [vmem:[#allocation5 + $0x5c4] ss:$16 sps:$4 sm:$0xff]  }
  0xc6   : > { %2682 = vmatprep.subr.bf16.mxu1 %v5969_v24  ;;  %v6011_v24 = vld [vmem:[#allocation5 + $0x7c4] ss:$16 sps:$4 sm:$0xff]  }
  0xc7   : > { %2382 = vmatmul.mubr.bf16.gmra.mxu0 %v6851_v29 }
  0xc8   : > { %2495 = vmatmul.mubr.bf16.gmra.mxu1 %v6853_v30  ;;  %2570 = vmatpush1.bf16.msra.mxu0 %v5964_v25  ;;  %v6905_v25 = vcombine.high %v459_v11, %v463_v14 }
  0xc9   : > { %2683 = vmatpush1.bf16.msra.mxu1 %v5967_v26  ;;  %2571 = vmatprep.subr.bf16.mxu0 %v5972_v33  ;;  %v6907_v26 = vcombine.high %v460_v17, %v464_v18  ;;  %v6012_v33 = vld [vmem:[#allocation5 + $0x5a0] ss:$16 sps:$4 sm:$0xff]  }
  0xca   : > { %2684 = vmatprep.subr.bf16.mxu1 %v5975_v34  ;;  %2391 = vmatprep.mubr.bf16.mxu0 %v6857_v35  ;;  %v6015_v34 = vld [vmem:[#allocation5 + $0x7a0] ss:$16 sps:$4 sm:$0xff]  }
  0xcb   : > { %2504 = vmatprep.mubr.bf16.mxu1 %v6859_v36 }
  0xcc   : > { %2572 = vmatpush1.bf16.msra.mxu0 %v5970_v37  ;;  %v467_v37 = vld [vmem:[%s6809_s22 + $0x180] sm:$0xff] }
  0xcd   : > { %2685 = vmatpush1.bf16.msra.mxu1 %v5973_v38  ;;  %2573 = vmatprep.subr.bf16.mxu0 %v5978_v39  ;;  %v6914_v38 = vcombine.low %v459_v11, %v463_v14  ;;  %v6916_v39 = vcombine.low %v460_v17, %v464_v18  ;;  %v6038_v11 = vld [vmem:[#allocation5 + $0x524] ss:$16 sps:$4 sm:$0xff]   ;;  %v6036_v17 = vld [vmem:[#allocation5 + $0x520] ss:$16 sps:$4 sm:$0xff]  }
  0xce   : > { %2686 = vmatprep.subr.bf16.mxu1 %v5981_v40  ;;  %v471_v40 = vld [vmem:[%s6809_s22 + $0x1a0] sm:$0xff] }
  0xcf   : > { %2392 = vmatmul.mubr.bf16.gmra.mxu0 %v6867_v45  ;;  %v6921_v47 = vcombine.high %v467_v37, %v471_v40  ;;  %v6931_v61 = vcombine.low %v467_v37, %v471_v40  ;;  %v6041_v14 = vld [vmem:[#allocation5 + $0x724] ss:$16 sps:$4 sm:$0xff]   ;;  %v6039_v18 = vld [vmem:[#allocation5 + $0x720] ss:$16 sps:$4 sm:$0xff]  }
  0xd0   : > { %2505 = vmatmul.mubr.bf16.gmra.mxu1 %v6869_v46  ;;  %2574 = vmatpush1.bf16.msra.mxu0 %v5976_v41  ;;  %v468_v41 = vld [vmem:[%s6809_s22 + $0x188] sm:$0xff]  ;;  %v6042_v37 = vld [vmem:[#allocation5 + $0x500] ss:$16 sps:$4 sm:$0xff]  }
  0xd1   : > { %2687 = vmatpush1.bf16.msra.mxu1 %v5979_v42  ;;  %2575 = vmatprep.subr.bf16.mxu0 %v5984_v49  ;;  %v472_v42 = vld [vmem:[%s6809_s22 + $0x1a8] sm:$0xff]  ;;  %v6018_v49 = vld [vmem:[#allocation5 + $0x580] ss:$16 sps:$4 sm:$0xff]  }
  0xd2   : > { %2688 = vmatprep.subr.bf16.mxu1 %v5987_v50  ;;  %2401 = vmatprep.mubr.bf16.mxu0 %v6873_v51  ;;  %v6923_v48 = vcombine.high %v468_v41, %v472_v42  ;;  %v6021_v50 = vld [vmem:[#allocation5 + $0x780] ss:$16 sps:$4 sm:$0xff]   ;;  %v6933_v0 = vcombine.low %v468_v41, %v472_v42  ;;  %v6050_v41 = vld [vmem:[#allocation5 + $0xec] ss:$16 sps:$4 sm:$0xff]  }
  0xd3   : > { %2514 = vmatprep.mubr.bf16.mxu1 %v6875_v52  ;;  %v6045_v40 = vld [vmem:[#allocation5 + $0x700] ss:$16 sps:$4 sm:$0xff]   ;;  %v6053_v42 = vld [vmem:[#allocation5 + $0x2ec] ss:$16 sps:$4 sm:$0xff]  }
  0xd4   : > { %2576 = vmatpush1.bf16.msra.mxu0 %v5982_v53  ;;  %v6026_v53 = vld [vmem:[#allocation5 + $0x564] ss:$16 sps:$4 sm:$0xff]  }
  0xd5   : > { %2689 = vmatpush1.bf16.msra.mxu1 %v5985_v55  ;;  %2577 = vmatprep.subr.bf16.mxu0 %v5990_v57  ;;  %v6029_v55 = vld [vmem:[#allocation5 + $0x764] ss:$16 sps:$4 sm:$0xff]   ;;  %v6024_v57 = vld [vmem:[#allocation5 + $0x560] ss:$16 sps:$4 sm:$0xff]  }
  0xd6   : > { %2690 = vmatprep.subr.bf16.mxu1 %v5993_v58  ;;  %v6027_v58 = vld [vmem:[#allocation5 + $0x760] ss:$16 sps:$4 sm:$0xff]  }
  0xd7   : > { %2402 = vmatmul.mubr.bf16.gmra.mxu0 %v6883_v62 }
  0xd8   : > { %2515 = vmatmul.mubr.bf16.gmra.mxu1 %v6885_v63  ;;  %2578 = vmatpush1.bf16.msra.mxu0 %v5988_v59  ;;  %v475_v59 = vld [vmem:[%s6809_s22 + $0x1c0] sm:$0xff] }
  0xd9   : > { %2691 = vmatpush1.bf16.msra.mxu1 %v5991_v2  ;;  %2579 = vmatprep.subr.bf16.mxu0 %v5996_v3  ;;  %v480_v2 = vld [vmem:[%s6809_s22 + $0x1e8] sm:$0xff]  ;;  %v6032_v3 = vld [vmem:[#allocation5 + $0x544] ss:$16 sps:$4 sm:$0xff]  }
  0xda   : > { %2692 = vmatprep.subr.bf16.mxu1 %v5999_v4  ;;  %2411 = vmatprep.mubr.bf16.mxu0 %v6889_v5  ;;  %v6035_v4 = vld [vmem:[#allocation5 + $0x744] ss:$16 sps:$4 sm:$0xff]  }
  0xdb   : > { %2524 = vmatprep.mubr.bf16.mxu1 %v6891_v6 }
  0xdc   : > { %2580 = vmatpush1.bf16.msra.mxu0 %v5994_v7  ;;  %v6937_v7 = vcombine.high %v475_v59, %v479_v60 }
  0xdd   : > { %2693 = vmatpush1.bf16.msra.mxu1 %v5997_v8  ;;  %2581 = vmatprep.subr.bf16.mxu0 %v6002_v9  ;;  %v6939_v8 = vcombine.high %v476_v1, %v480_v2  ;;  %v6030_v9 = vld [vmem:[#allocation5 + $0x540] ss:$16 sps:$4 sm:$0xff]  }
  0xde   : > { %2694 = vmatprep.subr.bf16.mxu1 %v6005_v10  ;;  %v6033_v10 = vld [vmem:[#allocation5 + $0x740] ss:$16 sps:$4 sm:$0xff]  }
  0xdf   : > { %2412 = vmatmul.mubr.bf16.gmra.mxu0 %v6899_v15 }
  0xe0   : > { %2525 = vmatmul.mubr.bf16.gmra.mxu1 %v6901_v16  ;;  %2582 = vmatpush2.bf16.msra.mxu0 %v6000_v21  ;;  %v421_v21 = vld [vmem:[%s6809_s22 + $0x10] sm:$0xff] }
  0xe1   : > { %2695 = vmatpush2.bf16.msra.mxu1 %v6003_v22  ;;  %2583 = vmatprep.subr.bf16.mxu0 %v6008_v23  ;;  %v425_v22 = vld [vmem:[%s6809_s22 + $0x30] sm:$0xff]  ;;  %v6947_v23 = vcombine.low %v475_v59, %v479_v60  ;;  %v6056_v59 = vld [vmem:[#allocation5 + $0xcc] ss:$16 sps:$4 sm:$0xff]  }
  0xe2   : > { %2696 = vmatprep.subr.bf16.mxu1 %v6011_v24  ;;  %2421 = vmatprep.mubr.bf16.mxu0 %v6905_v25  ;;  %v6949_v24 = vcombine.low %v476_v1, %v480_v2  ;;  %v6059_v60 = vld [vmem:[#allocation5 + $0x2cc] ss:$16 sps:$4 sm:$0xff]  }
  0xe3   : > { %2534 = vmatprep.mubr.bf16.mxu1 %v6907_v26 }
  0xe4   : > { %2584 = vmatpush2.bf16.msra.mxu0 %v6006_v27  ;;  %v422_v27 = vld [vmem:[%s6809_s22 + $0x18] sm:$0xff] }
  0xe5   : > { %2697 = vmatpush2.bf16.msra.mxu1 %v6009_v28  ;;  %2585 = vmatprep.subr.bf16.mxu0 %v6014_v31  ;;  %v426_v28 = vld [vmem:[%s6809_s22 + $0x38] sm:$0xff]  ;;  %v6044_v31 = vld [vmem:[#allocation5 + $0x504] ss:$16 sps:$4 sm:$0xff]  }
  0xe6   : > { %2698 = vmatprep.subr.bf16.mxu1 %v6017_v32  ;;  %v6047_v32 = vld [vmem:[#allocation5 + $0x704] ss:$16 sps:$4 sm:$0xff]  }
  0xe7   : > { %2422 = vmatmul.mubr.bf16.gmra.mxu0 %v6914_v38 }
  0xe8   : > { %2535 = vmatmul.mubr.bf16.gmra.mxu1 %v6916_v39  ;;  %2586 = vmatpush2.bf16.msra.mxu0 %v6012_v33  ;;  %v6953_v33 = vcombine.high %v421_v21, %v425_v22 }
  0xe9   : > { %2699 = vmatpush2.bf16.msra.mxu1 %v6015_v34  ;;  %2587 = vmatprep.subr.bf16.mxu0 %v6020_v43  ;;  %v6955_v34 = vcombine.high %v422_v27, %v426_v28  ;;  %v6048_v43 = vld [vmem:[#allocation5 + $0xe8] ss:$16 sps:$4 sm:$0xff]  }
  0xea   : > { %2700 = vmatprep.subr.bf16.mxu1 %v6023_v44  ;;  %2431 = vmatprep.mubr.bf16.mxu0 %v6921_v47  ;;  %v429_v44 = vld [vmem:[%s6809_s22 + $0x50] sm:$0xff] }
  0xeb   : > { %2544 = vmatprep.mubr.bf16.mxu1 %v6923_v48 }
  0xec   : > { %2588 = vmatpush2.bf16.msra.mxu0 %v6018_v49  ;;  %v433_v49 = vld [vmem:[%s6809_s22 + $0x70] sm:$0xff] }
  0xed   : > { %2701 = vmatpush2.bf16.msra.mxu1 %v6021_v50  ;;  %2589 = vmatprep.subr.bf16.mxu0 %v6026_v53  ;;  %v6963_v50 = vcombine.low %v421_v21, %v425_v22  ;;  %v6965_v53 = vcombine.low %v422_v27, %v426_v28  ;;  %v6969_v1 = vcombine.high %v429_v44, %v433_v49  ;;  %v438_v21 = vld [vmem:[%s6809_s22 + $0x98] sm:$0xff] }
  0xee   : > { %2702 = vmatprep.subr.bf16.mxu1 %v6029_v55  ;;  %v430_v55 = vld [vmem:[%s6809_s22 + $0x58] sm:$0xff] }
  0xef   : > { %2432 = vmatmul.mubr.bf16.gmra.mxu0 %v6931_v61  ;;  %v442_v22 = vld [vmem:[%s6809_s22 + $0xb8] sm:$0xff] }
  0xf0   : > { %2545 = vmatmul.mubr.bf16.gmra.mxu1 %v6933_v0  ;;  %2590 = vmatpush2.bf16.msra.mxu0 %v6024_v57  ;;  %v434_v57 = vld [vmem:[%s6809_s22 + $0x78] sm:$0xff] }
  0xf1   : > { %2703 = vmatpush2.bf16.msra.mxu1 %v6027_v58  ;;  %2591 = vmatprep.subr.bf16.mxu0 %v6032_v3  ;;  %v6051_v58 = vld [vmem:[#allocation5 + $0x2e8] ss:$16 sps:$4 sm:$0xff]   ;;  %v6971_v2 = vcombine.high %v430_v55, %v434_v57 }
  0xf2   : > { %2704 = vmatprep.subr.bf16.mxu1 %v6035_v4  ;;  %2441 = vmatprep.mubr.bf16.mxu0 %v6937_v7  ;;  %v6054_v3 = vld [vmem:[#allocation5 + $0xc8] ss:$16 sps:$4 sm:$0xff]  }
  0xf3   : > { %2554 = vmatprep.mubr.bf16.mxu1 %v6939_v8  ;;  %v6057_v4 = vld [vmem:[#allocation5 + $0x2c8] ss:$16 sps:$4 sm:$0xff]  }
  0xf4   : > { %2592 = vmatpush2.bf16.msra.mxu0 %v6030_v9  ;;  %v6062_v9 = vld [vmem:[#allocation5 + $0xac] ss:$16 sps:$4 sm:$0xff]   ;;  %v6060_v27 = vld [vmem:[#allocation5 + $0xa8] ss:$16 sps:$4 sm:$0xff]  }
  0xf5   : > { %2705 = vmatpush2.bf16.msra.mxu1 %v6033_v10  ;;  %2593 = vmatprep.subr.bf16.mxu0 %v6038_v11  ;;  %v6065_v10 = vld [vmem:[#allocation5 + $0x2ac] ss:$16 sps:$4 sm:$0xff]   ;;  %v437_v11 = vld [vmem:[%s6809_s22 + $0x90] sm:$0xff]  ;;  %v6063_v28 = vld [vmem:[#allocation5 + $0x2a8] ss:$16 sps:$4 sm:$0xff]  }
  0xf6   : > { %2706 = vmatprep.subr.bf16.mxu1 %v6041_v14  ;;  %v441_v14 = vld [vmem:[%s6809_s22 + $0xb0] sm:$0xff] }
  0xf7   : > { %2442 = vmatmul.mubr.bf16.gmra.mxu0 %v6947_v23 }
  0xf8   : > { %2555 = vmatmul.mubr.bf16.gmra.mxu1 %v6949_v24  ;;  %2594 = vmatpush2.bf16.msra.mxu0 %v6036_v17  ;;  %v6979_v17 = vcombine.low %v429_v44, %v433_v49  ;;  %v6077_v44 = vld [vmem:[#allocation5 + $0x26c] ss:$16 sps:$4 sm:$0xff]   ;;  %v6072_v49 = vld [vmem:[#allocation5 + $0x68] ss:$16 sps:$4 sm:$0xff]  }
  0xf9   : > { %2707 = vmatpush2.bf16.msra.mxu1 %v6039_v18  ;;  %2595 = vmatprep.subr.bf16.mxu0 %v6044_v31  ;;  %v6981_v18 = vcombine.low %v430_v55, %v434_v57  ;;  %v6068_v31 = vld [vmem:[#allocation5 + $0x8c] ss:$16 sps:$4 sm:$0xff]   ;;  %v6075_v55 = vld [vmem:[#allocation5 + $0x268] ss:$16 sps:$4 sm:$0xff]   ;;  %v445_v57 = vld [vmem:[%s6809_s22 + $0xd0] sm:$0xff] }
  0xfa   : > { %2708 = vmatprep.subr.bf16.mxu1 %v6047_v32  ;;  %2597 = vmatprep.mubr.bf16.mxu0 %v6953_v33  ;;  %v6071_v32 = vld [vmem:[#allocation5 + $0x28c] ss:$16 sps:$4 sm:$0xff]  }
  0xfb   : > { %2710 = vmatprep.mubr.bf16.mxu1 %v6955_v34 }
  0xfc   : > { %2596 = vmatpush2.bf16.msra.mxu0 %v6042_v37  ;;  %v6985_v37 = vcombine.high %v437_v11, %v441_v14 }
  0xfd   : > { %2709 = vmatpush2.bf16.msra.mxu1 %v6045_v40  ;;  %2791 = vmatprep.subr.bf16.mxu0 %v6050_v41  ;;  %v6987_v40 = vcombine.high %v438_v21, %v442_v22  ;;  %v6066_v41 = vld [vmem:[#allocation5 + $0x88] ss:$16 sps:$4 sm:$0xff]  }
  0xfe   : > { %2904 = vmatprep.subr.bf16.mxu1 %v6053_v42  ;;  %v6069_v42 = vld [vmem:[#allocation5 + $0x288] ss:$16 sps:$4 sm:$0xff]  }
  0xff   : > { %2598 = vmatmul.mubr.bf16.vlgmr.msra.gmra.mxu0 %v6963_v50 }
 0x100   : > { %2711 = vmatmul.mubr.bf16.vlgmr.msra.gmra.mxu1 %v6965_v53  ;;  %2792 = vmatpush1.bf16.msra.mxu0 %v6048_v43  ;;  %v6074_v43 = vld [vmem:[#allocation5 + $0x6c] ss:$16 sps:$4 sm:$0xff]  }
 0x101   : > { %2905 = vmatpush1.bf16.msra.mxu1 %v6051_v58  ;;  %2793 = vmatprep.subr.bf16.mxu0 %v6056_v59  ;;  %v6994_v58 = vcombine.low %v437_v11, %v441_v14  ;;  %v6996_v59 = vcombine.low %v438_v21, %v442_v22  ;;  %v6078_v11 = vld [vmem:[#allocation5 + $0x48] ss:$16 sps:$4 sm:$0xff]   ;;  %v6086_v21 = vld [vmem:[#allocation5 + $0x2c] ss:$16 sps:$4 sm:$0xff]  }
 0x102   : > { %2906 = vmatprep.subr.bf16.mxu1 %v6059_v60  ;;  %2607 = vmatprep.mubr.bf16.mxu0 %v6969_v1  ;;  %v449_v60 = vld [vmem:[%s6809_s22 + $0xf0] sm:$0xff]  ;;  %v6081_v14 = vld [vmem:[#allocation5 + $0x248] ss:$16 sps:$4 sm:$0xff]   ;;  %v6089_v22 = vld [vmem:[#allocation5 + $0x22c] ss:$16 sps:$4 sm:$0xff]  }
 0x103   : > { %2720 = vmatprep.mubr.bf16.mxu1 %v6971_v2  ;;  %8796 = vst [vmem:[#allocation14_spill] sm:$0xff] %v6994_v58  ;;  %8797 = vst [vmem:[#allocation15_spill] sm:$0xff] %v6996_v59 }
 0x104   : > { %2794 = vmatpush1.bf16.msra.mxu0 %v6054_v3  ;;  %v446_v3 = vld [vmem:[%s6809_s22 + $0xd8] sm:$0xff] }
 0x105   : > { %2907 = vmatpush1.bf16.msra.mxu1 %v6057_v4  ;;  %2795 = vmatprep.subr.bf16.mxu0 %v6062_v9  ;;  %v450_v4 = vld [vmem:[%s6809_s22 + $0xf8] sm:$0xff] }
 0x106   : > { %2908 = vmatprep.subr.bf16.mxu1 %v6065_v10  ;;  %v6080_v9 = vld [vmem:[#allocation5 + $0x4c] ss:$16 sps:$4 sm:$0xff]  }
 0x107   : > { %2608 = vmatmul.mubr.bf16.gmra.mxu0 %v6979_v17  ;;  %v6083_v10 = vld [vmem:[#allocation5 + $0x24c] ss:$16 sps:$4 sm:$0xff]  }
 0x108   : > { %2721 = vmatmul.mubr.bf16.gmra.mxu1 %v6981_v18  ;;  %2796 = vmatpush1.bf16.msra.mxu0 %v6060_v27  ;;  %v7001_v27 = vcombine.high %v445_v57, %v449_v60 }
 0x109   : > { %2909 = vmatpush1.bf16.msra.mxu1 %v6063_v28  ;;  %2797 = vmatprep.subr.bf16.mxu0 %v6068_v31  ;;  %v7003_v28 = vcombine.high %v446_v3, %v450_v4  ;;  %v6084_v31 = vld [vmem:[#allocation5 + $0x28] ss:$16 sps:$4 sm:$0xff]  }
 0x10a   : > { %2910 = vmatprep.subr.bf16.mxu1 %v6071_v32  ;;  %2617 = vmatprep.mubr.bf16.mxu0 %v6985_v37  ;;  %8798 = vst [vmem:[#allocation16_spill] sm:$0xff] %v7001_v27  ;;  %v6087_v32 = vld [vmem:[#allocation5 + $0x228] ss:$16 sps:$4 sm:$0xff]  }
 0x10b   : > { %2730 = vmatprep.mubr.bf16.mxu1 %v6987_v40  ;;  %8799 = vst [vmem:[#allocation17_spill] sm:$0xff] %v7003_v28 }
 0x10c   : > { %2798 = vmatpush1.bf16.msra.mxu0 %v6066_v41  ;;  %v453_v41 = vld [vmem:[%s6809_s22 + $0x110] sm:$0xff] }
 0x10d   : > { %2911 = vmatpush1.bf16.msra.mxu1 %v6069_v42  ;;  %2799 = vmatprep.subr.bf16.mxu0 %v6074_v43  ;;  %v457_v42 = vld [vmem:[%s6809_s22 + $0x130] sm:$0xff]  ;;  %v7011_v43 = vcombine.low %v445_v57, %v449_v60  ;;  %v6090_v57 = vld [vmem:[#allocation5 + $0x8] ss:$16 sps:$4 sm:$0xff]  }
 0x10e   : > { %2912 = vmatprep.subr.bf16.mxu1 %v6077_v44  ;;  %v7013_v44 = vcombine.low %v446_v3, %v450_v4  ;;  %v6093_v60 = vld [vmem:[#allocation5 + $0x208] ss:$16 sps:$4 sm:$0xff]   ;;  %v6098_v3 = vld [vmem:[#allocation5 + $0x1ec] ss:$16 sps:$4 sm:$0xff]  }
 0x10f   : > { %2618 = vmatmul.mubr.bf16.gmra.mxu0 %v6994_v58  ;;  %8800 = vst [vmem:[#allocation18_spill] sm:$0xff] %v7011_v43  ;;  %v458_v58 = vld [vmem:[%s6809_s22 + $0x138] sm:$0xff] }
 0x110   : > { %2731 = vmatmul.mubr.bf16.gmra.mxu1 %v6996_v59  ;;  %2800 = vmatpush1.bf16.msra.mxu0 %v6072_v49  ;;  %8801 = vst [vmem:[#allocation19_spill] sm:$0xff] %v7013_v44  ;;  %v454_v59 = vld [vmem:[%s6809_s22 + $0x118] sm:$0xff] }
 0x111   : > { %2913 = vmatpush1.bf16.msra.mxu1 %v6075_v55  ;;  %2801 = vmatprep.subr.bf16.mxu0 %v6080_v9  ;;  %v6092_v49 = vld [vmem:[#allocation5 + $0xc] ss:$16 sps:$4 sm:$0xff]   ;;  %v7017_v9 = vcombine.high %v453_v41, %v457_v42 }
 0x112   : > { %2914 = vmatprep.subr.bf16.mxu1 %v6083_v10  ;;  %2627 = vmatprep.mubr.bf16.mxu0 %v7001_v27  ;;  %v6095_v55 = vld [vmem:[#allocation5 + $0x20c] ss:$16 sps:$4 sm:$0xff]   ;;  %v7019_v10 = vcombine.high %v454_v59, %v458_v58 }
 0x113   : > { %2740 = vmatprep.mubr.bf16.mxu1 %v7003_v28  ;;  %8802 = vst [vmem:[#allocation20_spill] sm:$0xff] %v7017_v9  ;;  %v6101_v4 = vld [vmem:[#allocation5 + $0x3ec] ss:$16 sps:$4 sm:$0xff]  }
 0x114   : > { %2802 = vmatpush1.bf16.msra.mxu0 %v6078_v11  ;;  %8803 = vst [vmem:[#allocation21_spill] sm:$0xff] %v7019_v10  ;;  %v6096_v11 = vld [vmem:[#allocation5 + $0x1e8] ss:$16 sps:$4 sm:$0xff]  }
 0x115   : > { %2915 = vmatpush1.bf16.msra.mxu1 %v6081_v14  ;;  %2803 = vmatprep.subr.bf16.mxu0 %v6086_v21  ;;  %v6099_v14 = vld [vmem:[#allocation5 + $0x3e8] ss:$16 sps:$4 sm:$0xff]   ;;  %v461_v21 = vld [vmem:[%s6809_s22 + $0x150] sm:$0xff] }
 0x116   : > { %2916 = vmatprep.subr.bf16.mxu1 %v6089_v22  ;;  %v465_v22 = vld [vmem:[%s6809_s22 + $0x170] sm:$0xff]  ;;  %v462_v28 = vld [vmem:[%s6809_s22 + $0x158] sm:$0xff] }
 0x117   : > { %2628 = vmatmul.mubr.bf16.gmra.mxu0 %v7011_v43  ;;  %v7027_v43 = vcombine.low %v453_v41, %v457_v42  ;;  %v466_v27 = vld [vmem:[%s6809_s22 + $0x178] sm:$0xff] }
 0x118   : > { %2741 = vmatmul.mubr.bf16.gmra.mxu1 %v7013_v44  ;;  %2804 = vmatpush1.bf16.msra.mxu0 %v6084_v31  ;;  %v7029_v44 = vcombine.low %v454_v59, %v458_v58  ;;  %v6104_v31 = vld [vmem:[#allocation5 + $0x1cc] ss:$16 sps:$4 sm:$0xff]   ;;  %v6102_v58 = vld [vmem:[#allocation5 + $0x1c8] ss:$16 sps:$4 sm:$0xff]  }
 0x119   : > { %2917 = vmatpush1.bf16.msra.mxu1 %v6087_v32  ;;  %2805 = vmatprep.subr.bf16.mxu0 %v6092_v49  ;;  %8804 = vst [vmem:[#allocation22_spill] sm:$0xff] %v7027_v43  ;;  %v6107_v32 = vld [vmem:[#allocation5 + $0x3cc] ss:$16 sps:$4 sm:$0xff]   ;;  %v7033_v49 = vcombine.high %v461_v21, %v465_v22  ;;  %v6105_v59 = vld [vmem:[#allocation5 + $0x3c8] ss:$16 sps:$4 sm:$0xff]  }
 0x11a   : > { %2918 = vmatprep.subr.bf16.mxu1 %v6095_v55  ;;  %2637 = vmatprep.mubr.bf16.mxu0 %v7017_v9  ;;  %8805 = vst [vmem:[#allocation23_spill] sm:$0xff] %v7029_v44  ;;  %v7035_v55 = vcombine.high %v462_v28, %v466_v27  ;;  %v6110_v41 = vld [vmem:[#allocation5 + $0x1ac] ss:$16 sps:$4 sm:$0xff]  }
 0x11b   : > { %2750 = vmatprep.mubr.bf16.mxu1 %v7019_v10  ;;  %8806 = vst [vmem:[#allocation24_spill] sm:$0xff] %v7033_v49  ;;  %v6113_v42 = vld [vmem:[#allocation5 + $0x3ac] ss:$16 sps:$4 sm:$0xff]  }
 0x11c   : > { %2806 = vmatpush1.bf16.msra.mxu0 %v6090_v57  ;;  %8807 = vst [vmem:[#allocation25_spill] sm:$0xff] %v7035_v55  ;;  %v6108_v57 = vld [vmem:[#allocation5 + $0x1a8] ss:$16 sps:$4 sm:$0xff]  }
 0x11d   : > { %2919 = vmatpush1.bf16.msra.mxu1 %v6093_v60  ;;  %2807 = vmatprep.subr.bf16.mxu0 %v6098_v3  ;;  %v6111_v60 = vld [vmem:[#allocation5 + $0x3a8] ss:$16 sps:$4 sm:$0xff]   ;;  %v469_v3 = vld [vmem:[%s6809_s22 + $0x190] sm:$0xff] }
 0x11e   : > { %2920 = vmatprep.subr.bf16.mxu1 %v6101_v4  ;;  %v473_v4 = vld [vmem:[%s6809_s22 + $0x1b0] sm:$0xff]  ;;  %v470_v10 = vld [vmem:[%s6809_s22 + $0x198] sm:$0xff] }
 0x11f   : > { %2638 = vmatmul.mubr.bf16.gmra.mxu0 %v7027_v43  ;;  %v7043_v43 = vcombine.low %v461_v21, %v465_v22  ;;  %v474_v9 = vld [vmem:[%s6809_s22 + $0x1b8] sm:$0xff] }
 0x120   : > { %2751 = vmatmul.mubr.bf16.gmra.mxu1 %v7029_v44  ;;  %2808 = vmatpush2.bf16.msra.mxu0 %v6096_v11  ;;  %v7045_v44 = vcombine.low %v462_v28, %v466_v27  ;;  %v6116_v11 = vld [vmem:[#allocation5 + $0x18c] ss:$16 sps:$4 sm:$0xff]   ;;  %v6114_v27 = vld [vmem:[#allocation5 + $0x188] ss:$16 sps:$4 sm:$0xff]  }
 0x121   : > { %2921 = vmatpush2.bf16.msra.mxu1 %v6099_v14  ;;  %2809 = vmatprep.subr.bf16.mxu0 %v6104_v31  ;;  %8808 = vst [vmem:[#allocation26_spill] sm:$0xff] %v7043_v43  ;;  %v6119_v14 = vld [vmem:[#allocation5 + $0x38c] ss:$16 sps:$4 sm:$0xff]   ;;  %v7049_v31 = vcombine.high %v469_v3, %v473_v4  ;;  %v6117_v28 = vld [vmem:[#allocation5 + $0x388] ss:$16 sps:$4 sm:$0xff]  }
 0x122   : > { %2922 = vmatprep.subr.bf16.mxu1 %v6107_v32  ;;  %2647 = vmatprep.mubr.bf16.mxu0 %v7033_v49  ;;  %8809 = vst [vmem:[#allocation27_spill] sm:$0xff] %v7045_v44  ;;  %v7051_v32 = vcombine.high %v470_v10, %v474_v9  ;;  %v6122_v21 = vld [vmem:[#allocation5 + $0x16c] ss:$16 sps:$4 sm:$0xff]  }
 0x123   : > { %2760 = vmatprep.mubr.bf16.mxu1 %v7035_v55  ;;  %v6125_v22 = vld [vmem:[#allocation5 + $0x36c] ss:$16 sps:$4 sm:$0xff]  }
 0x124   : > { %2810 = vmatpush2.bf16.msra.mxu0 %v6102_v58  ;;  %v6120_v58 = vld [vmem:[#allocation5 + $0x168] ss:$16 sps:$4 sm:$0xff]  }
 0x125   : > { %2923 = vmatpush2.bf16.msra.mxu1 %v6105_v59  ;;  %2811 = vmatprep.subr.bf16.mxu0 %v6110_v41  ;;  %v6123_v59 = vld [vmem:[#allocation5 + $0x368] ss:$16 sps:$4 sm:$0xff]   ;;  %v477_v41 = vld [vmem:[%s6809_s22 + $0x1d0] sm:$0xff] }
 0x126   : > { %2924 = vmatprep.subr.bf16.mxu1 %v6113_v42  ;;  %v481_v42 = vld [vmem:[%s6809_s22 + $0x1f0] sm:$0xff]  ;;  %v478_v55 = vld [vmem:[%s6809_s22 + $0x1d8] sm:$0xff] }
 0x127   : > { %2648 = vmatmul.mubr.bf16.gmra.mxu0 %v7043_v43  ;;  %v7059_v43 = vcombine.low %v469_v3, %v473_v4  ;;  %v482_v49 = vld [vmem:[%s6809_s22 + $0x1f8] sm:$0xff] }
 0x128   : > { %2761 = vmatmul.mubr.bf16.gmra.mxu1 %v7045_v44  ;;  %2812 = vmatpush2.bf16.msra.mxu0 %v6108_v57  ;;  %v7061_v44 = vcombine.low %v470_v10, %v474_v9  ;;  %v6128_v57 = vld [vmem:[#allocation5 + $0x14c] ss:$16 sps:$4 sm:$0xff]   ;;  %v6126_v3 = vld [vmem:[#allocation5 + $0x148] ss:$16 sps:$4 sm:$0xff]  }
 0x129   : > { %2925 = vmatpush2.bf16.msra.mxu1 %v6111_v60  ;;  %2813 = vmatprep.subr.bf16.mxu0 %v6116_v11  ;;  %v6131_v60 = vld [vmem:[#allocation5 + $0x34c] ss:$16 sps:$4 sm:$0xff]   ;;  %v7065_v11 = vcombine.high %v477_v41, %v481_v42  ;;  %v6129_v4 = vld [vmem:[#allocation5 + $0x348] ss:$16 sps:$4 sm:$0xff]  }
 0x12a   : > { %2926 = vmatprep.subr.bf16.mxu1 %v6119_v14  ;;  %2657 = vmatprep.mubr.bf16.mxu0 %v7049_v31  ;;  %8810 = vst [vmem:[#allocation28_spill] sm:$0xff] %v7061_v44  ;;  %v7067_v14 = vcombine.high %v478_v55, %v482_v49  ;;  %v6134_v9 = vld [vmem:[#allocation5 + $0x12c] ss:$16 sps:$4 sm:$0xff]  }
 0x12b   : > { %2770 = vmatprep.mubr.bf16.mxu1 %v7051_v32  ;;  %v6137_v10 = vld [vmem:[#allocation5 + $0x32c] ss:$16 sps:$4 sm:$0xff]  }
 0x12c   : > { %2814 = vmatpush2.bf16.msra.mxu0 %v6114_v27  ;;  %v7073_v27 = vcombine.low %v477_v41, %v481_v42  ;;  %v6146_v41 = vld [vmem:[#allocation5 + $0x4ec] ss:$16 sps:$4 sm:$0xff]   ;;  %v6147_v42 = vld [vmem:[#allocation5 + $0x6e8] ss:$16 sps:$4 sm:$0xff]  }
 0x12d   : > { %2927 = vmatpush2.bf16.msra.mxu1 %v6117_v28  ;;  %2815 = vmatprep.subr.bf16.mxu0 %v6122_v21  ;;  %v7075_v28 = vcombine.low %v478_v55, %v482_v49  ;;  %v6132_v21 = vld [vmem:[#allocation5 + $0x128] ss:$16 sps:$4 sm:$0xff]   ;;  %v6149_v49 = vld [vmem:[#allocation5 + $0x6ec] ss:$16 sps:$4 sm:$0xff]  }
 0x12e   : > { %2928 = vmatprep.subr.bf16.mxu1 %v6125_v22  ;;  %v6135_v22 = vld [vmem:[#allocation5 + $0x328] ss:$16 sps:$4 sm:$0xff]  }
 0x12f   : > { %2658 = vmatmul.mubr.bf16.gmra.mxu0 %v7059_v43  ;;  %v6144_v55 = vld [vmem:[#allocation5 + $0x4e8] ss:$16 sps:$4 sm:$0xff]  }
 0x130   : > { %2771 = vmatmul.mubr.bf16.gmra.mxu1 %v7061_v44  ;;  %2816 = vmatpush2.bf16.msra.mxu0 %v6120_v58  ;;  %v6140_v44 = vld [vmem:[#allocation5 + $0x10c] ss:$16 sps:$4 sm:$0xff]  }
 0x131   : > { %2929 = vmatpush2.bf16.msra.mxu1 %v6123_v59  ;;  %2817 = vmatprep.subr.bf16.mxu0 %v6128_v57  ;;  %v6143_v58 = vld [vmem:[#allocation5 + $0x30c] ss:$16 sps:$4 sm:$0xff]   ;;  %v6138_v59 = vld [vmem:[#allocation5 + $0x108] ss:$16 sps:$4 sm:$0xff]  }
 0x132   : > { %2930 = vmatprep.subr.bf16.mxu1 %v6131_v60  ;;  %2667 = vmatprep.mubr.bf16.mxu0 %v7065_v11  ;;  %v6141_v57 = vld [vmem:[#allocation5 + $0x308] ss:$16 sps:$4 sm:$0xff]   ;;  %v6152_v60 = vld [vmem:[#allocation5 + $0x4cc] ss:$16 sps:$4 sm:$0xff]  }
 0x133   : > { %2780 = vmatprep.mubr.bf16.mxu1 %v7067_v14 }
 0x134   : > { %2818 = vmatpush2.bf16.msra.mxu0 %v6126_v3  ;;  %v6155_v3 = vld [vmem:[#allocation5 + $0x6cc] ss:$16 sps:$4 sm:$0xff]  }
 0x135   : > { %2931 = vmatpush2.bf16.msra.mxu1 %v6129_v4  ;;  %2819 = vmatprep.subr.bf16.mxu0 %v6134_v9  ;;  %v6150_v4 = vld [vmem:[#allocation5 + $0x4c8] ss:$16 sps:$4 sm:$0xff]   ;;  %v6158_v9 = vld [vmem:[#allocation5 + $0x4ac] ss:$16 sps:$4 sm:$0xff]  }
 0x136   : > { %2932 = vmatprep.subr.bf16.mxu1 %v6137_v10  ;;  %v6159_v10 = vld [vmem:[#allocation5 + $0x6a8] ss:$16 sps:$4 sm:$0xff]  }
 0x137   : > { %2668 = vmatmul.mubr.bf16.gmra.mxu0 %v7073_v27 }
 0x138   : > { %2781 = vmatmul.mubr.bf16.gmra.mxu1 %v7075_v28  ;;  %2820 = vmatpush2.bf16.msra.mxu0 %v6132_v21  ;;  %v6164_v21 = vld [vmem:[#allocation5 + $0x48c] ss:$16 sps:$4 sm:$0xff]  }
 0x139   : > { %2933 = vmatpush2.bf16.msra.mxu1 %v6135_v22  ;;  %2821 = vmatprep.subr.bf16.mxu0 %v6140_v44  ;;  %v6153_v44 = vld [vmem:[#allocation5 + $0x6c8] ss:$16 sps:$4 sm:$0xff]  }
 0x13a   : > { %2934 = vmatprep.subr.bf16.mxu1 %v6143_v58  ;;  %2823 = vmatprep.mubr.bf16.mxu0 %v6827_v54  ;;  %v6161_v54 = vld [vmem:[#allocation5 + $0x6ac] ss:$16 sps:$4 sm:$0xff]   ;;  %v6165_v22 = vld [vmem:[#allocation5 + $0x688] ss:$16 sps:$4 sm:$0xff]  }
 0x13b   : > { %2936 = vmatprep.mubr.bf16.mxu1 %v6829_v56  ;;  %v6156_v56 = vld [vmem:[#allocation5 + $0x4a8] ss:$16 sps:$4 sm:$0xff]   ;;  %v6170_v58 = vld [vmem:[#allocation5 + $0x46c] ss:$16 sps:$4 sm:$0xff]  }
 0x13c   : > { %2822 = vmatpush2.bf16.msra.mxu0 %v6138_v59  ;;  %v6171_v59 = vld [vmem:[#allocation5 + $0x668] ss:$16 sps:$4 sm:$0xff]  }
 0x13d   : > { %2935 = vmatpush2.bf16.msra.mxu1 %v6141_v57  ;;  %3017 = vmatprep.subr.bf16.mxu0 %v6146_v41  ;;  %v6174_v57 = vld [vmem:[#allocation5 + $0x448] ss:$16 sps:$4 sm:$0xff]  }
 0x13e   : > { %3130 = vmatprep.subr.bf16.mxu1 %v6149_v49  ;;  %v6177_v41 = vld [vmem:[#allocation5 + $0x648] ss:$16 sps:$4 sm:$0xff]  }
 0x13f   : > { %2824 = vmatmul.mubr.bf16.vlgmr.msra.gmra.mxu0 %v6834_v12  ;;  %v6167_v12 = vld [vmem:[#allocation5 + $0x68c] ss:$16 sps:$4 sm:$0xff]   ;;  %v6180_v49 = vld [vmem:[#allocation5 + $0x428] ss:$16 sps:$4 sm:$0xff]  }
 0x140   : > { %2937 = vmatmul.mubr.bf16.vlgmr.msra.gmra.mxu1 %v6836_v13  ;;  %3018 = vmatpush1.bf16.msra.mxu0 %v6144_v55  ;;  %v6162_v13 = vld [vmem:[#allocation5 + $0x488] ss:$16 sps:$4 sm:$0xff]  }
 0x141   : > { %3131 = vmatpush1.bf16.msra.mxu1 %v6147_v42  ;;  %3019 = vmatprep.subr.bf16.mxu0 %v6152_v60  ;;  %v6183_v55 = vld [vmem:[#allocation5 + $0x628] ss:$16 sps:$4 sm:$0xff]   ;;  %v6188_v42 = vld [vmem:[#allocation5 + $0x40c] ss:$16 sps:$4 sm:$0xff]  }
 0x142   : > { %3132 = vmatprep.subr.bf16.mxu1 %v6155_v3  ;;  %2833 = vmatprep.mubr.bf16.mxu0 %v6841_v19  ;;  %v6173_v19 = vld [vmem:[#allocation5 + $0x66c] ss:$16 sps:$4 sm:$0xff]  }
 0x143   : > { %2946 = vmatprep.mubr.bf16.mxu1 %v6843_v20  ;;  %v6168_v20 = vld [vmem:[#allocation5 + $0x468] ss:$16 sps:$4 sm:$0xff]   ;;  %v6191_v60 = vld [vmem:[#allocation5 + $0x60c] ss:$16 sps:$4 sm:$0xff]  }
 0x144   : > { %3020 = vmatpush1.bf16.msra.mxu0 %v6150_v4  ;;  %v6194_v3 = vld [vmem:[#allocation5 + $0x5ec] ss:$16 sps:$4 sm:$0xff]  }
 0x145   : > { %3133 = vmatpush1.bf16.msra.mxu1 %v6153_v44  ;;  %3021 = vmatprep.subr.bf16.mxu0 %v6158_v9  ;;  %v6197_v4 = vld [vmem:[#allocation5 + $0x7ec] ss:$16 sps:$4 sm:$0xff]  }
 0x146   : > { %3134 = vmatprep.subr.bf16.mxu1 %v6161_v54  ;;  %v6200_v44 = vld [vmem:[#allocation5 + $0x5cc] ss:$16 sps:$4 sm:$0xff]  }
 0x147   : > { %2834 = vmatmul.mubr.bf16.gmra.mxu0 %v6851_v29  ;;  %v6176_v29 = vld [vmem:[#allocation5 + $0x44c] ss:$16 sps:$4 sm:$0xff]  }
 0x148   : > { %2947 = vmatmul.mubr.bf16.gmra.mxu1 %v6853_v30  ;;  %3022 = vmatpush1.bf16.msra.mxu0 %v6156_v56  ;;  %v6179_v30 = vld [vmem:[#allocation5 + $0x64c] ss:$16 sps:$4 sm:$0xff]  }
 0x149   : > { %3135 = vmatpush1.bf16.msra.mxu1 %v6159_v10  ;;  %3023 = vmatprep.subr.bf16.mxu0 %v6164_v21  ;;  %v6203_v9 = vld [vmem:[#allocation5 + $0x7cc] ss:$16 sps:$4 sm:$0xff]  }
 0x14a   : > { %3136 = vmatprep.subr.bf16.mxu1 %v6167_v12  ;;  %2843 = vmatprep.mubr.bf16.mxu0 %v6857_v35  ;;  %v6182_v35 = vld [vmem:[#allocation5 + $0x42c] ss:$16 sps:$4 sm:$0xff]  }
 0x14b   : > { %2956 = vmatprep.mubr.bf16.mxu1 %v6859_v36  ;;  %v6185_v36 = vld [vmem:[#allocation5 + $0x62c] ss:$16 sps:$4 sm:$0xff]  }
 0x14c   : > { %3024 = vmatpush1.bf16.msra.mxu0 %v6162_v13  ;;  %v6206_v54 = vld [vmem:[#allocation5 + $0x5ac] ss:$16 sps:$4 sm:$0xff]  }
 0x14d   : > { %3137 = vmatpush1.bf16.msra.mxu1 %v6165_v22  ;;  %3025 = vmatprep.subr.bf16.mxu0 %v6170_v58  ;;  %v6209_v56 = vld [vmem:[#allocation5 + $0x7ac] ss:$16 sps:$4 sm:$0xff]  }
 0x14e   : > { %3138 = vmatprep.subr.bf16.mxu1 %v6173_v19  ;;  %v6212_v10 = vld [vmem:[#allocation5 + $0x58c] ss:$16 sps:$4 sm:$0xff]  }
 0x14f   : > { %2844 = vmatmul.mubr.bf16.gmra.mxu0 %v6867_v45  ;;  %v6186_v45 = vld [vmem:[#allocation5 + $0x408] ss:$16 sps:$4 sm:$0xff]   ;;  %v6215_v21 = vld [vmem:[#allocation5 + $0x78c] ss:$16 sps:$4 sm:$0xff]  }
 0x150   : > { %2957 = vmatmul.mubr.bf16.gmra.mxu1 %v6869_v46  ;;  %3026 = vmatpush1.bf16.msra.mxu0 %v6168_v20  ;;  %v6189_v46 = vld [vmem:[#allocation5 + $0x608] ss:$16 sps:$4 sm:$0xff]   ;;  %v6218_v12 = vld [vmem:[#allocation5 + $0x56c] ss:$16 sps:$4 sm:$0xff]  }
 0x151   : > { %3139 = vmatpush1.bf16.msra.mxu1 %v6171_v59  ;;  %3027 = vmatprep.subr.bf16.mxu0 %v6176_v29  ;;  %v6221_v13 = vld [vmem:[#allocation5 + $0x76c] ss:$16 sps:$4 sm:$0xff]  }
 0x152   : > { %3140 = vmatprep.subr.bf16.mxu1 %v6179_v30  ;;  %2853 = vmatprep.mubr.bf16.mxu0 %v6873_v51  ;;  %v6192_v51 = vld [vmem:[#allocation5 + $0x5e8] ss:$16 sps:$4 sm:$0xff]   ;;  %v6224_v22 = vld [vmem:[#allocation5 + $0x54c] ss:$16 sps:$4 sm:$0xff]  }
 0x153   : > { %2966 = vmatprep.mubr.bf16.mxu1 %v6875_v52  ;;  %v6195_v52 = vld [vmem:[#allocation5 + $0x7e8] ss:$16 sps:$4 sm:$0xff]   ;;  %v6227_v58 = vld [vmem:[#allocation5 + $0x74c] ss:$16 sps:$4 sm:$0xff]  }
 0x154   : > { %3028 = vmatpush1.bf16.msra.mxu0 %v6174_v57  ;;  %v6230_v19 = vld [vmem:[#allocation5 + $0x52c] ss:$16 sps:$4 sm:$0xff]   ;;  %v6245_v30 = vld [vmem:[#allocation8 + $0xc4] ss:$16 sps:$4 sm:$0xff]  }
 0x155   : > { %3141 = vmatpush1.bf16.msra.mxu1 %v6177_v41  ;;  %3029 = vmatprep.subr.bf16.mxu0 %v6182_v35  ;;  %v6233_v20 = vld [vmem:[#allocation5 + $0x72c] ss:$16 sps:$4 sm:$0xff]  }
 0x156   : > { %3142 = vmatprep.subr.bf16.mxu1 %v6185_v36  ;;  %v6236_v59 = vld [vmem:[#allocation5 + $0x50c] ss:$16 sps:$4 sm:$0xff]   ;;  %v6248_v36 = vld [vmem:[#allocation8 + $0xa4] ss:$16 sps:$4 sm:$0xff]  }
 0x157   : > { %2854 = vmatmul.mubr.bf16.gmra.mxu0 %v6883_v62  ;;  %v6198_v62 = vld [vmem:[#allocation5 + $0x5c8] ss:$16 sps:$4 sm:$0xff]   ;;  %v6239_v29 = vld [vmem:[#allocation5 + $0x70c] ss:$16 sps:$4 sm:$0xff]  }
 0x158   : > { %2967 = vmatmul.mubr.bf16.gmra.mxu1 %v6885_v63  ;;  %3030 = vmatpush1.bf16.msra.mxu0 %v6180_v49  ;;  %v6201_v63 = vld [vmem:[#allocation5 + $0x7c8] ss:$16 sps:$4 sm:$0xff]  }
 0x159   : > { %3143 = vmatpush1.bf16.msra.mxu1 %v6183_v55  ;;  %3031 = vmatprep.subr.bf16.mxu0 %v6188_v42 }
 0x15a   : > { %3144 = vmatprep.subr.bf16.mxu1 %v6191_v60  ;;  %2863 = vmatprep.mubr.bf16.mxu0 %v6889_v5  ;;  %v6204_v5 = vld [vmem:[#allocation5 + $0x5a8] ss:$16 sps:$4 sm:$0xff]  }
 0x15b   : > { %2976 = vmatprep.mubr.bf16.mxu1 %v6891_v6  ;;  %v6207_v6 = vld [vmem:[#allocation5 + $0x7a8] ss:$16 sps:$4 sm:$0xff]  }
 0x15c   : > { %3032 = vmatpush1.bf16.msra.mxu0 %v6186_v45 }
 0x15d   : > { %3145 = vmatpush1.bf16.msra.mxu1 %v6189_v46  ;;  %3033 = vmatprep.subr.bf16.mxu0 %v6194_v3 }
 0x15e   : > { %3146 = vmatprep.subr.bf16.mxu1 %v6197_v4 }
 0x15f   : > { %2864 = vmatmul.mubr.bf16.gmra.mxu0 %v6899_v15  ;;  %v6210_v15 = vld [vmem:[#allocation5 + $0x588] ss:$16 sps:$4 sm:$0xff]  }
 0x160   : > { %2977 = vmatmul.mubr.bf16.gmra.mxu1 %v6901_v16  ;;  %3034 = vmatpush2.bf16.msra.mxu0 %v6192_v51  ;;  %v6213_v16 = vld [vmem:[#allocation5 + $0x788] ss:$16 sps:$4 sm:$0xff]   ;;  %v6249_v51 = vld [vmem:[#allocation8 + $0x80] ss:$16 sps:$4 sm:$0xff]  }
 0x161   : > { %3147 = vmatpush2.bf16.msra.mxu1 %v6195_v52  ;;  %3035 = vmatprep.subr.bf16.mxu0 %v6200_v44  ;;  %v6254_v44 = vld [vmem:[#allocation8 + $0x64] ss:$16 sps:$4 sm:$0xff]  }
 0x162   : > { %3148 = vmatprep.subr.bf16.mxu1 %v6203_v9  ;;  %2873 = vmatprep.mubr.bf16.mxu0 %v6905_v25  ;;  %v6216_v25 = vld [vmem:[#allocation5 + $0x568] ss:$16 sps:$4 sm:$0xff]  }
 0x163   : > { %2986 = vmatprep.mubr.bf16.mxu1 %v6907_v26  ;;  %v6219_v26 = vld [vmem:[#allocation5 + $0x768] ss:$16 sps:$4 sm:$0xff]  }
 0x164   : > { %3036 = vmatpush2.bf16.msra.mxu0 %v6198_v62 }
 0x165   : > { %3149 = vmatpush2.bf16.msra.mxu1 %v6201_v63  ;;  %3037 = vmatprep.subr.bf16.mxu0 %v6206_v54 }
 0x166   : > { %3150 = vmatprep.subr.bf16.mxu1 %v6209_v56 }
 0x167   : > { %2874 = vmatmul.mubr.bf16.gmra.mxu0 %v6914_v38  ;;  %v6222_v38 = vld [vmem:[#allocation5 + $0x548] ss:$16 sps:$4 sm:$0xff]  }
 0x168   : > { %2987 = vmatmul.mubr.bf16.gmra.mxu1 %v6916_v39  ;;  %3038 = vmatpush2.bf16.msra.mxu0 %v6204_v5  ;;  %v6225_v39 = vld [vmem:[#allocation5 + $0x748] ss:$16 sps:$4 sm:$0xff]  }
 0x169   : > { %3151 = vmatpush2.bf16.msra.mxu1 %v6207_v6  ;;  %3039 = vmatprep.subr.bf16.mxu0 %v6212_v10  ;;  %v8811_v5 = vld [vmem:[#allocation14_spill] sm:$0xff]  ;;  %v8812_v6 = vld [vmem:[#allocation15_spill] sm:$0xff] }
 0x16a   : > { %3152 = vmatprep.subr.bf16.mxu1 %v6215_v21  ;;  %2883 = vmatprep.mubr.bf16.mxu0 %v6921_v47  ;;  %v6228_v47 = vld [vmem:[#allocation5 + $0x528] ss:$16 sps:$4 sm:$0xff]  }
 0x16b   : > { %2996 = vmatprep.mubr.bf16.mxu1 %v6923_v48  ;;  %v6231_v48 = vld [vmem:[#allocation5 + $0x728] ss:$16 sps:$4 sm:$0xff]  }
 0x16c   : > { %3040 = vmatpush2.bf16.msra.mxu0 %v6210_v15  ;;  %v8813_v21 = vld [vmem:[#allocation16_spill] sm:$0xff]  ;;  %v8814_v15 = vld [vmem:[#allocation17_spill] sm:$0xff] }
 0x16d   : > { %3153 = vmatpush2.bf16.msra.mxu1 %v6213_v16  ;;  %3041 = vmatprep.subr.bf16.mxu0 %v6218_v12 }
 0x16e   : > { %3154 = vmatprep.subr.bf16.mxu1 %v6221_v13  ;;  %v6255_v13 = vld [vmem:[#allocation8 + $0x40] ss:$16 sps:$4 sm:$0xff]  }
 0x16f   : > { %2884 = vmatmul.mubr.bf16.gmra.mxu0 %v6931_v61  ;;  %v6234_v61 = vld [vmem:[#allocation5 + $0x508] ss:$16 sps:$4 sm:$0xff]  }
 0x170   : > { %2997 = vmatmul.mubr.bf16.gmra.mxu1 %v6933_v0  ;;  %3042 = vmatpush2.bf16.msra.mxu0 %v6216_v25  ;;  %v6237_v0 = vld [vmem:[#allocation5 + $0x708] ss:$16 sps:$4 sm:$0xff]  }
 0x171   : > { %3155 = vmatpush2.bf16.msra.mxu1 %v6219_v26  ;;  %3043 = vmatprep.subr.bf16.mxu0 %v6224_v22  ;;  %v6260_v26 = vld [vmem:[#allocation8 + $0x24] ss:$16 sps:$4 sm:$0xff]  }
 0x172   : > { %3156 = vmatprep.subr.bf16.mxu1 %v6227_v58  ;;  %2893 = vmatprep.mubr.bf16.mxu0 %v6937_v7  ;;  %v6242_v7 = vld [vmem:[#allocation8 + $0xe4] ss:$16 sps:$4 sm:$0xff]  }
 0x173   : > { %3006 = vmatprep.mubr.bf16.mxu1 %v6939_v8  ;;  %v6240_v8 = vld [vmem:[#allocation8 + $0xe0] ss:$16 sps:$4 sm:$0xff]   ;;  %v6338_v22 = vld [vmem:[#allocation8 + $0x2e4] ss:$16 sps:$4 sm:$0xff]  }
 0x174   : > { %3044 = vmatpush2.bf16.msra.mxu0 %v6222_v38 }
 0x175   : > { %3157 = vmatpush2.bf16.msra.mxu1 %v6225_v39  ;;  %3045 = vmatprep.subr.bf16.mxu0 %v6230_v19  ;;  %v6336_v39 = vld [vmem:[#allocation8 + $0x2e0] ss:$16 sps:$4 sm:$0xff]  }
 0x176   : > { %3158 = vmatprep.subr.bf16.mxu1 %v6233_v20 }
 0x177   : > { %2894 = vmatmul.mubr.bf16.gmra.mxu0 %v6947_v23 }
 0x178   : > { %3007 = vmatmul.mubr.bf16.gmra.mxu1 %v6949_v24  ;;  %3046 = vmatpush2.bf16.msra.mxu0 %v6228_v47 }
 0x179   : > { %3159 = vmatpush2.bf16.msra.mxu1 %v6231_v48  ;;  %3047 = vmatprep.subr.bf16.mxu0 %v6236_v59  ;;  %v6258_v48 = vld [vmem:[#allocation8 + $0x20] ss:$16 sps:$4 sm:$0xff]   ;;  %v6263_v59 = vld [vmem:[#allocation8 + $0x4] ss:$16 sps:$4 sm:$0xff]  }
 0x17a   : > { %3160 = vmatprep.subr.bf16.mxu1 %v6239_v29  ;;  %3049 = vmatprep.mubr.bf16.mxu0 %v6953_v33  ;;  %v6341_v29 = vld [vmem:[#allocation8 + $0x2c4] ss:$16 sps:$4 sm:$0xff]  }
 0x17b   : > { %3162 = vmatprep.mubr.bf16.mxu1 %v6955_v34  ;;  %v6243_v34 = vld [vmem:[#allocation8 + $0xc0] ss:$16 sps:$4 sm:$0xff]  }
 0x17c   : > { %3048 = vmatpush2.bf16.msra.mxu0 %v6234_v61 }
 0x17d   : > { %3161 = vmatpush2.bf16.msra.mxu1 %v6237_v0  ;;  %4279 = vmatprep.subr.bf16.mxu0 %v6242_v7  ;;  %v8815_v7 = vld [vmem:[#allocation18_spill] sm:$0xff] }
 0x17e   : > { %4392 = vmatprep.subr.bf16.mxu1 %v6338_v22  ;;  %v6272_v22 = vld [vmem:[#allocation8 + $0x1a4] ss:$16 sps:$4 sm:$0xff]  }
 0x17f   : > { %v2373_v57 = vpop.f32.mrf.mxu0  ;;  %3050 = vmatmul.mubr.bf16.vlgmr.msra.gmra.mxu0 %v6963_v50 }
 0x180   : > { %v2486_v23 = vpop.f32.mrf.mxu1  ;;  %3163 = vmatmul.mubr.bf16.vlgmr.msra.gmra.mxu1 %v6965_v53  ;;  %3059 = vmatprep.mubr.bf16.mxu0 %v6969_v1  ;;  %v6246_v1 = vld [vmem:[#allocation8 + $0xa0] ss:$16 sps:$4 sm:$0xff]  }
 0x181   : > { %v7115_v24 = vadd.f32 %v2486_v23, %v2373_v57  ;;  %3172 = vmatprep.mubr.bf16.mxu1 %v6971_v2  ;;  %v2375_v33 = vpop.f32.mrf.mxu0  ;;  %4280 = vmatpush1.bf16.msra.mxu0 %v6240_v8  ;;  %v6251_v2 = vld [vmem:[#allocation8 + $0x84] ss:$16 sps:$4 sm:$0xff]   ;;  %v8816_v8 = vld [vmem:[#allocation19_spill] sm:$0xff] }
 0x182   : > { %v2488_v41 = vpop.f32.mrf.mxu1  ;;  %4281 = vmatprep.subr.bf16.mxu0 %v6245_v30  ;;  %4393 = vmatpush1.bf16.msra.mxu1 %v6336_v39  ;;  %v6339_v30 = vld [vmem:[#allocation8 + $0x2c0] ss:$16 sps:$4 sm:$0xff]   ;;  %v8817_v23 = vld [vmem:[#allocation20_spill] sm:$0xff] }
 0x183   : > { %v7119_v35 = vadd.f32 %v2488_v41, %v2375_v33  ;;  %v2377_v49 = vpop.f32.mrf.mxu0  ;;  %v8818_v33 = vld [vmem:[#allocation21_spill] sm:$0xff]  ;;  %4394 = vmatprep.subr.bf16.mxu1 %v6341_v29 }
 0x184   : > { %v2490_v55 = vpop.f32.mrf.mxu1 }
 0x185   : > { %v7121_v42 = vadd.f32 %v2490_v55, %v2377_v49  ;;  %v7123_v50 = vpop.f32.mrf.mxu0  ;;  %4282 = vmatpush1.bf16.msra.mxu0 %v6243_v34  ;;  %v6266_v55 = vld [vmem:[#allocation8 + $0x1e4] ss:$16 sps:$4 sm:$0xff]  }
 0x186   : > { %v7125_v53 = vpop.f32.mrf.mxu1  ;;  %4283 = vmatprep.subr.bf16.mxu0 %v6248_v36  ;;  %v6261_v36 = vld [vmem:[#allocation8] ss:$16 sps:$4 sm:$0xff]   ;;  %4395 = vmatpush1.bf16.msra.mxu1 %v6339_v30 }
 0x187   : > { %v2383_v60 = vpop.f32.mrf.mxu0  ;;  %3060 = vmatmul.mubr.bf16.gmra.mxu0 %v6979_v17 }
 0x188   : > { %v2496_v45 = vpop.f32.mrf.mxu1  ;;  %3173 = vmatmul.mubr.bf16.gmra.mxu1 %v6981_v18  ;;  %3069 = vmatprep.mubr.bf16.mxu0 %v6985_v37  ;;  %v6252_v37 = vld [vmem:[#allocation8 + $0x60] ss:$16 sps:$4 sm:$0xff]  }
 0x189   : > { %v7129_v46 = vadd.f32 %v2496_v45, %v2383_v60  ;;  %3182 = vmatprep.mubr.bf16.mxu1 %v6987_v40  ;;  %v2385_v3 = vpop.f32.mrf.mxu0  ;;  %4284 = vmatpush1.bf16.msra.mxu0 %v6246_v1  ;;  %v6257_v40 = vld [vmem:[#allocation8 + $0x44] ss:$16 sps:$4 sm:$0xff]   ;;  %v6342_v45 = vld [vmem:[#allocation8 + $0x2a0] ss:$16 sps:$4 sm:$0xff]  }
 0x18a   : > { %v2498_v4 = vpop.f32.mrf.mxu1  ;;  %4285 = vmatprep.subr.bf16.mxu0 %v6251_v2  ;;  %v6344_v1 = vld [vmem:[#allocation8 + $0x2a4] ss:$16 sps:$4 sm:$0xff]  }
 0x18b   : > { %v7133_v52 = vadd.f32 %v2498_v4, %v2385_v3  ;;  %v2387_v9 = vpop.f32.mrf.mxu0  ;;  %4396 = vmatprep.subr.bf16.mxu1 %v6344_v1 }
 0x18c   : > { %v2500_v62 = vpop.f32.mrf.mxu1  ;;  %4397 = vmatpush1.bf16.msra.mxu1 %v6342_v45  ;;  %v6278_v45 = vld [vmem:[#allocation8 + $0x164] ss:$16 sps:$4 sm:$0xff]  }
 0x18d   : > { %v7135_v63 = vadd.f32 %v2500_v62, %v2387_v9  ;;  %v7137_v17 = vpop.f32.mrf.mxu0  ;;  %4286 = vmatpush1.bf16.msra.mxu0 %v6249_v51  ;;  %v6269_v9 = vld [vmem:[#allocation8 + $0x1c4] ss:$16 sps:$4 sm:$0xff]  }
 0x18e   : > { %v7139_v18 = vpop.f32.mrf.mxu1  ;;  %4287 = vmatprep.subr.bf16.mxu0 %v6254_v44  ;;  %v6264_v44 = vld [vmem:[#allocation8 + $0x1e0] ss:$16 sps:$4 sm:$0xff]   ;;  %v6347_v62 = vld [vmem:[#allocation8 + $0x284] ss:$16 sps:$4 sm:$0xff]  }
 0x18f   : > { %v2393_v54 = vpop.f32.mrf.mxu0  ;;  %3070 = vmatmul.mubr.bf16.gmra.mxu0 %v8811_v5  ;;  %v6345_v5 = vld [vmem:[#allocation8 + $0x280] ss:$16 sps:$4 sm:$0xff]   ;;  %4398 = vmatprep.subr.bf16.mxu1 %v6347_v62 }
 0x190   : > { %v2506_v56 = vpop.f32.mrf.mxu1  ;;  %3183 = vmatmul.mubr.bf16.gmra.mxu1 %v8812_v6  ;;  %3079 = vmatprep.mubr.bf16.mxu0 %v8813_v21  ;;  %v8821_v21 = vld [vmem:[#allocation24_spill] sm:$0xff] }
 0x191   : > { %v7143_v10 = vadd.f32 %v2506_v56, %v2393_v54  ;;  %3192 = vmatprep.mubr.bf16.mxu1 %v8814_v15  ;;  %v2395_v16 = vpop.f32.mrf.mxu0  ;;  %4288 = vmatpush1.bf16.msra.mxu0 %v6252_v37  ;;  %v8819_v54 = vld [vmem:[#allocation22_spill] sm:$0xff]  ;;  %v8820_v56 = vld [vmem:[#allocation23_spill] sm:$0xff]  ;;  %v8822_v15 = vld [vmem:[#allocation25_spill] sm:$0xff] }
 0x192   : > { %v2508_v12 = vpop.f32.mrf.mxu1  ;;  %4289 = vmatprep.subr.bf16.mxu0 %v6257_v40  ;;  %4399 = vmatpush1.bf16.msra.mxu1 %v6345_v5  ;;  %v6359_v5 = vld [vmem:[#allocation8 + $0x204] ss:$16 sps:$4 sm:$0xff]  }
 0x193   : > { %v7147_v25 = vadd.f32 %v2508_v12, %v2395_v16  ;;  %v2397_v58 = vpop.f32.mrf.mxu0 }
 0x194   : > { %v2510_v38 = vpop.f32.mrf.mxu1 }
 0x195   : > { %v7149_v19 = vadd.f32 %v2510_v38, %v2397_v58  ;;  %v7151_v20 = vpop.f32.mrf.mxu0  ;;  %4290 = vmatpush1.bf16.msra.mxu0 %v6255_v13  ;;  %v6267_v13 = vld [vmem:[#allocation8 + $0x1c0] ss:$16 sps:$4 sm:$0xff]   ;;  %v6350_v58 = vld [vmem:[#allocation8 + $0x264] ss:$16 sps:$4 sm:$0xff]  }
 0x196   : > { %v7153_v47 = vpop.f32.mrf.mxu1  ;;  %4291 = vmatprep.subr.bf16.mxu0 %v6260_v26  ;;  %4400 = vmatprep.subr.bf16.mxu1 %v6350_v58 }
 0x197   : > { %v2403_v61 = vpop.f32.mrf.mxu0  ;;  %3080 = vmatmul.mubr.bf16.gmra.mxu0 %v8815_v7  ;;  %v6275_v7 = vld [vmem:[#allocation8 + $0x184] ss:$16 sps:$4 sm:$0xff]  }
 0x198   : > { %v2516_v0 = vpop.f32.mrf.mxu1  ;;  %3193 = vmatmul.mubr.bf16.gmra.mxu1 %v8816_v8  ;;  %3089 = vmatprep.mubr.bf16.mxu0 %v8817_v23  ;;  %v6353_v8 = vld [vmem:[#allocation8 + $0x244] ss:$16 sps:$4 sm:$0xff]  }
 0x199   : > { %v7157_v57 = vadd.f32 %v2516_v0, %v2403_v61  ;;  %3202 = vmatprep.mubr.bf16.mxu1 %v8818_v33  ;;  %v2405_v41 = vpop.f32.mrf.mxu0  ;;  %4292 = vmatpush1.bf16.msra.mxu0 %v6258_v48  ;;  %v6348_v48 = vld [vmem:[#allocation8 + $0x260] ss:$16 sps:$4 sm:$0xff]   ;;  %v8823_v33 = vld [vmem:[#allocation26_spill] sm:$0xff] }
 0x19a   : > { %v2518_v34 = vpop.f32.mrf.mxu1  ;;  %4293 = vmatprep.subr.bf16.mxu0 %v6263_v59  ;;  %v6270_v0 = vld [vmem:[#allocation8 + $0x1a0] ss:$16 sps:$4 sm:$0xff]   ;;  %4401 = vmatpush1.bf16.msra.mxu1 %v6348_v48  ;;  %v6284_v48 = vld [vmem:[#allocation8 + $0x124] ss:$16 sps:$4 sm:$0xff]  }
 0x19b   : > { %v7161_v49 = vadd.f32 %v2518_v34, %v2405_v41  ;;  %v2407_v2 = vpop.f32.mrf.mxu0  ;;  %v8824_v41 = vld [vmem:[#allocation27_spill] sm:$0xff]  ;;  %4402 = vmatprep.subr.bf16.mxu1 %v6353_v8 }
 0x19c   : > { %v2520_v60 = vpop.f32.mrf.mxu1  ;;  %v6351_v34 = vld [vmem:[#allocation8 + $0x240] ss:$16 sps:$4 sm:$0xff]  }
 0x19d   : > { %v7163_v3 = vadd.f32 %v2520_v60, %v2407_v2  ;;  %v7165_v4 = vpop.f32.mrf.mxu0  ;;  %4294 = vmatpush1.bf16.msra.mxu0 %v6261_v36  ;;  %v6273_v2 = vld [vmem:[#allocation8 + $0x180] ss:$16 sps:$4 sm:$0xff]  }
 0x19e   : > { %v7167_v51 = vpop.f32.mrf.mxu1  ;;  %4295 = vmatprep.subr.bf16.mxu0 %v6266_v55  ;;  %4403 = vmatpush1.bf16.msra.mxu1 %v6351_v34  ;;  %v6360_v8 = vld [vmem:[#allocation8 + $0x3e0] ss:$16 sps:$4 sm:$0xff]  }
 0x19f   : > { %v2413_v37 = vpop.f32.mrf.mxu0  ;;  %3090 = vmatmul.mubr.bf16.gmra.mxu0 %v8819_v54  ;;  %v6276_v54 = vld [vmem:[#allocation8 + $0x160] ss:$16 sps:$4 sm:$0xff]  }
 0x1a0   : > { %v2526_v40 = vpop.f32.mrf.mxu1  ;;  %3203 = vmatmul.mubr.bf16.gmra.mxu1 %v8820_v56  ;;  %3099 = vmatprep.mubr.bf16.mxu0 %v8821_v21  ;;  %v6281_v56 = vld [vmem:[#allocation8 + $0x144] ss:$16 sps:$4 sm:$0xff]  }
 0x1a1   : > { %v7171_v6 = vadd.f32 %v2526_v40, %v2413_v37  ;;  %3212 = vmatprep.mubr.bf16.mxu1 %v8822_v15  ;;  %v2415_v16 = vpop.f32.mrf.mxu0  ;;  %4296 = vmatpush2.bf16.msra.mxu0 %v6264_v44  ;;  %v6356_v44 = vld [vmem:[#allocation8 + $0x224] ss:$16 sps:$4 sm:$0xff]   ;;  %v6354_v37 = vld [vmem:[#allocation8 + $0x220] ss:$16 sps:$4 sm:$0xff]  }
 0x1a2   : > { %v2528_v12 = vpop.f32.mrf.mxu1  ;;  %4297 = vmatprep.subr.bf16.mxu0 %v6269_v9  ;;  %4404 = vmatprep.subr.bf16.mxu1 %v6356_v44 }
 0x1a3   : > { %v7175_v26 = vadd.f32 %v2528_v12, %v2415_v16  ;;  %v2417_v38 = vpop.f32.mrf.mxu0  ;;  %4405 = vmatpush1.bf16.msra.mxu1 %v6354_v37  ;;  %v8825_v16 = vld [vmem:[#allocation28_spill] sm:$0xff]  ;;  %v6357_v12 = vld [vmem:[#allocation8 + $0x200] ss:$16 sps:$4 sm:$0xff]  }
 0x1a4   : > { %v2530_v39 = vpop.f32.mrf.mxu1  ;;  %4406 = vmatprep.subr.bf16.mxu1 %v6359_v5 }
 0x1a5   : > { %v7177_v59 = vadd.f32 %v2530_v39, %v2417_v38  ;;  %v7179_v29 = vpop.f32.mrf.mxu0  ;;  %4298 = vmatpush2.bf16.msra.mxu0 %v6267_v13  ;;  %v6279_v38 = vld [vmem:[#allocation8 + $0x140] ss:$16 sps:$4 sm:$0xff]  }
 0x1a6   : > { %v7181_v61 = vpop.f32.mrf.mxu1  ;;  %4299 = vmatprep.subr.bf16.mxu0 %v6272_v22 }
 0x1a7   : > { %v2423_v30 = vpop.f32.mrf.mxu0  ;;  %3100 = vmatmul.mubr.bf16.gmra.mxu0 %v8823_v33  ;;  %4407 = vmatpush1.bf16.msra.mxu1 %v6357_v12  ;;  %v6287_v33 = vld [vmem:[#allocation8 + $0x104] ss:$16 sps:$4 sm:$0xff]  }
 0x1a8   : > { %v2536_v23 = vpop.f32.mrf.mxu1  ;;  %3213 = vmatmul.mubr.bf16.gmra.mxu1 %v8824_v41  ;;  %3109 = vmatprep.mubr.bf16.mxu0 %v7049_v31  ;;  %v6365_v41 = vld [vmem:[#allocation8 + $0x3c4] ss:$16 sps:$4 sm:$0xff]  }
 0x1a9   : > { %v7185_v36 = vadd.f32 %v2536_v23, %v2423_v30  ;;  %3222 = vmatprep.mubr.bf16.mxu1 %v7051_v32  ;;  %v2425_v55 = vpop.f32.mrf.mxu0  ;;  %4300 = vmatpush2.bf16.msra.mxu0 %v6270_v0  ;;  %v6282_v23 = vld [vmem:[#allocation8 + $0x120] ss:$16 sps:$4 sm:$0xff]  }
 0x1aa   : > { %v2538_v1 = vpop.f32.mrf.mxu1  ;;  %4301 = vmatprep.subr.bf16.mxu0 %v6275_v7 }
 0x1ab   : > { %v7189_v60 = vadd.f32 %v2538_v1, %v2425_v55  ;;  %v2427_v9 = vpop.f32.mrf.mxu0  ;;  %v3245_v1 = vlaneseq }
 0x1ac   : > { %v2540_v62 = vpop.f32.mrf.mxu1 }
 0x1ad   : > { %v7191_v40 = vadd.f32 %v2540_v62, %v2427_v9  ;;  %v7193_v31 = vpop.f32.mrf.mxu0  ;;  %4302 = vmatpush2.bf16.msra.mxu0 %v6273_v2  ;;  %v6363_v2 = vld [vmem:[#allocation8 + $0x3c0] ss:$16 sps:$4 sm:$0xff]  }
 0x1ae   : > { %v7195_v32 = vpop.f32.mrf.mxu1  ;;  %4303 = vmatprep.subr.bf16.mxu0 %v6278_v45  ;;  %v6285_v62 = vld [vmem:[#allocation8 + $0x100] ss:$16 sps:$4 sm:$0xff]  }
 0x1af   : > { %v2433_v21 = vpop.f32.mrf.mxu0  ;;  %3110 = vmatmul.mubr.bf16.gmra.mxu0 %v7059_v43  ;;  %v6362_v43 = vld [vmem:[#allocation8 + $0x3e4] ss:$16 sps:$4 sm:$0xff]  }
 0x1b0   : > { %v2546_v15 = vpop.f32.mrf.mxu1  ;;  %3223 = vmatmul.mubr.bf16.gmra.mxu1 %v8825_v16  ;;  %3119 = vmatprep.mubr.bf16.mxu0 %v7065_v11 }
 0x1b1   : > { %v7199_v13 = vadd.f32 %v2546_v15, %v2433_v21  ;;  %3232 = vmatprep.mubr.bf16.mxu1 %v7067_v14  ;;  %v2435_v22 = vpop.f32.mrf.mxu0  ;;  %4304 = vmatpush2.bf16.msra.mxu0 %v6276_v54  ;;  %v6290_v54 = vld [vmem:[#allocation8 + $0xec] ss:$16 sps:$4 sm:$0xff]  }
 0x1b2   : > { %v2548_v58 = vpop.f32.mrf.mxu1  ;;  %4305 = vmatprep.subr.bf16.mxu0 %v6281_v56  ;;  %4408 = vmatprep.subr.bf16.mxu1 %v6362_v43  ;;  %v6368_v56 = vld [vmem:[#allocation8 + $0x3a4] ss:$16 sps:$4 sm:$0xff]  }
 0x1b3   : > { %v7203_v39 = vadd.f32 %v2548_v58, %v2435_v22  ;;  %v2437_v0 = vpop.f32.mrf.mxu0  ;;  %4409 = vmatpush2.bf16.msra.mxu1 %v6360_v8  ;;  %v6371_v22 = vld [vmem:[#allocation8 + $0x384] ss:$16 sps:$4 sm:$0xff]   ;;  %v7235_v8 = vld [vmem:[%s8631_s2] sm:$0xf] }
 0x1b4   : > { %v2550_v7 = vpop.f32.mrf.mxu1  ;;  %4410 = vmatprep.subr.bf16.mxu1 %v6365_v41 }
 0x1b5   : > { %v7205_v30 = vadd.f32 %v2550_v7, %v2437_v0  ;;  %v7207_v11 = vpop.f32.mrf.mxu0  ;;  %4306 = vmatpush2.bf16.msra.mxu0 %v6279_v38  ;;  %v6369_v0 = vld [vmem:[#allocation8 + $0x380] ss:$16 sps:$4 sm:$0xff]  }
 0x1b6   : > { %v7209_v14 = vpop.f32.mrf.mxu1  ;;  %4307 = vmatprep.subr.bf16.mxu0 %v6284_v48 }
 0x1b7   : > { %v2443_v34 = vpop.f32.mrf.mxu0  ;;  %3120 = vmatmul.mubr.bf16.gmra.mxu0 %v7073_v27  ;;  %4411 = vmatpush2.bf16.msra.mxu1 %v6363_v2  ;;  %v7217_v27 = vshrl.u32 %v3245_v1, 7 }
 0x1b8   : > { %v2556_v55 = vpop.f32.mrf.mxu1  ;;  %3233 = vmatmul.mubr.bf16.gmra.mxu1 %v7075_v28  ;;  %v6366_v28 = vld [vmem:[#allocation8 + $0x3a0] ss:$16 sps:$4 sm:$0xff]   ;;  %4412 = vmatprep.subr.bf16.mxu1 %v6368_v56  ;;  %v7249_v56 = vld [vmem:[#allocation7] sm:$0xf] }
 0x1b9   : > { %v7213_v45 = vadd.f32 %v2556_v55, %v2443_v34  ;;  %v2445_v44 = vpop.f32.mrf.mxu0  ;;  %4308 = vmatpush2.bf16.msra.mxu0 %v6282_v23  ;;  %v7226_v48 = vsub.s32 0, %v7217_v27  ;;  %v7229_v43 = vsub.s32 1, %v7217_v27  ;;  %v6374_v34 = vld [vmem:[#allocation8 + $0x364] ss:$16 sps:$4 sm:$0xff]  }
 0x1ba   : > { %v2558_v9 = vpop.f32.mrf.mxu1  ;;  %4309 = vmatprep.subr.bf16.mxu0 %v6287_v33 }
 0x1bb   : > { %v7215_v37 = vadd.f32 %v2558_v9, %v2445_v44  ;;  %v2447_v5 = vpop.f32.mrf.mxu0  ;;  %4413 = vmatpush2.bf16.msra.mxu1 %v6366_v28  ;;  %8826 = vst [vmem:[#allocation14_spill] sm:$0xff] %v7226_v48  ;;  %v7240_v55 = vrot.slane %v7235_v8, %v7226_v48  ;;  %v7244_v1 = vrot.slane %v7235_v8, %v7229_v43  ;;  %v6372_v44 = vld [vmem:[#allocation8 + $0x360] ss:$16 sps:$4 sm:$0xff]  }
 0x1bc   : > { %v2560_v21 = vpop.f32.mrf.mxu1  ;;  %4414 = vmatprep.subr.bf16.mxu1 %v6371_v22  ;;  %v2493_v9 = vadd.f32 %v7125_v53, %v7123_v50 }
 0x1bd   : > { %v7219_v15 = vadd.f32 %v2560_v21, %v2447_v5  ;;  %v7221_v16 = vpop.f32.mrf.mxu0  ;;  %4310 = vmatpush2.bf16.msra.mxu0 %v6285_v62 }
 0x1be   : > { %v7223_v12 = vpop.f32.mrf.mxu1  ;;  %4505 = vmatprep.subr.bf16.mxu0 %v6290_v54 }
 0x1bf   : > { %v2599_v58 = vpop.f32.mrf.mxu0  ;;  %4415 = vmatpush2.bf16.msra.mxu1 %v6369_v0 }
 0x1c0   : > { %v2712_v38 = vpop.f32.mrf.mxu1  ;;  %v2600_v7 = vadd.f32 %v2599_v58, %v7115_v24  ;;  %4416 = vmatprep.subr.bf16.mxu1 %v6374_v34  ;;  %v6377_v58 = vld [vmem:[#allocation8 + $0x344] ss:$16 sps:$4 sm:$0xff]  }
 0x1c1   : > { %v2601_v23 = vpop.f32.mrf.mxu0 }
 0x1c2   : > { %v2714_v33 = vpop.f32.mrf.mxu1  ;;  %v2602_v41 = vadd.f32 %v2601_v23, %v7119_v35  ;;  %v2713_v62 = vadd.f32 %v2712_v38, %v2600_v7  ;;  %v7254_v23 = vrot.slane %v7249_v56, %v7229_v43  ;;  %v6375_v38 = vld [vmem:[#allocation8 + $0x340] ss:$16 sps:$4 sm:$0xff]   ;;  %v7259_v7 = vrot.slane %v7249_v56, %v7226_v48 }
 0x1c3   : > { %v2603_v24 = vpop.f32.mrf.mxu0  ;;  %4417 = vmatpush2.bf16.msra.mxu1 %v6372_v44 }
 0x1c4   : > { %v2716_v2 = vpop.f32.mrf.mxu1  ;;  %v2715_v54 = vadd.f32 %v2714_v33, %v2602_v41  ;;  %v2604_v35 = vadd.f32 %v2603_v24, %v7121_v42  ;;  %v3265_v42 = vmul.f32 %v7240_v55, %v2713_v62  ;;  %4418 = vmatprep.subr.bf16.mxu1 %v6377_v58  ;;  %v6380_v62 = vld [vmem:[#allocation8 + $0x324] ss:$16 sps:$4 sm:$0xff]  }
 0x1c5   : > { %v2605_v5 = vpop.f32.mrf.mxu0 }
 0x1c6   : > { %v2718_v21 = vpop.f32.mrf.mxu1  ;;  %v2717_v28 = vadd.f32 %v2716_v2, %v2604_v35  ;;  %v2606_v22 = vadd.f32 %v2605_v5, %v2493_v9  ;;  %v3266_v0 = vmul.f32 %v7244_v1, %v2715_v54  ;;  %v2503_v35 = vadd.f32 %v7139_v18, %v7137_v17 }
 0x1c7   : > { %v2609_v50 = vpop.f32.mrf.mxu0  ;;  %4419 = vmatpush2.bf16.msra.mxu1 %v6375_v38  ;;  %v7274_v58 = vadd.f32 %v7259_v7, %v3265_v42 }
 0x1c8   : > { %v2722_v53 = vpop.f32.mrf.mxu1  ;;  %v3269_v33 = vmul.f32 %v7240_v55, %v2717_v28  ;;  %v2719_v41 = vadd.f32 %v2718_v21, %v2606_v22  ;;  %v2610_v34 = vadd.f32 %v2609_v50, %v7129_v46  ;;  %v7271_v5 = vadd.f32 %v7254_v23, %v3266_v0  ;;  %v6378_v22 = vld [vmem:[#allocation8 + $0x320] ss:$16 sps:$4 sm:$0xff]   ;;  %4420 = vmatprep.subr.bf16.mxu1 %v6380_v62 }
 0x1c9   : > { %v2611_v24 = vpop.f32.mrf.mxu0  ;;  %8829 = vst [vmem:[#allocation17_spill] sm:$0xff] %v7274_v58 }
 0x1ca   : > { %v2724_v2 = vpop.f32.mrf.mxu1  ;;  %v7264_v44 = vadd.f32 %v7259_v7, %v3269_v33  ;;  %v3270_v9 = vmul.f32 %v7244_v1, %v2719_v41  ;;  %v2612_v54 = vadd.f32 %v2611_v24, %v7133_v52  ;;  %8828 = vst [vmem:[#allocation16_spill] sm:$0xff] %v7271_v5  ;;  %v2723_v21 = vadd.f32 %v2722_v53, %v2610_v34  ;;  %v6383_v53 = vld [vmem:[#allocation8 + $0x304] ss:$16 sps:$4 sm:$0xff]  }
 0x1cb   : > { %v2613_v28 = vpop.f32.mrf.mxu0  ;;  %4421 = vmatpush2.bf16.msra.mxu1 %v6378_v22  ;;  %v8661_v34 = vmax.f32 %v7271_v5, 0.0 }
 0x1cc   : > { %8827 = vst [vmem:[#allocation15_spill] sm:$0xff] %v7264_v44  ;;  %v2726_v46 = vpop.f32.mrf.mxu1  ;;  %v7277_v50 = vadd.f32 %v7254_v23, %v3270_v9  ;;  %v2725_v33 = vadd.f32 %v2724_v2, %v2612_v54  ;;  %v2614_v52 = vadd.f32 %v2613_v28, %v7135_v63  ;;  %v8660_v17 = vmax.f32 %v7264_v44, 0.0  ;;  %v6381_v63 = vld [vmem:[#allocation8 + $0x300] ss:$16 sps:$4 sm:$0xff]   ;;  %4422 = vmatprep.subr.bf16.mxu1 %v6383_v53 }
 0x1cd   : > { %v2615_v38 = vpop.f32.mrf.mxu0  ;;  %v3273_v42 = vmul.f32 %v7240_v55, %v2723_v21  ;;  %v8659_v54 = vmax.f32 %v7274_v58, 0.0  ;;  %v6296_v58 = vld [vmem:[#allocation8 + $0xac] ss:$16 sps:$4 sm:$0xff]  }
 0x1ce   : > { %8830 = vst [vmem:[#allocation18_spill] sm:$0xff] %v7277_v50  ;;  %v2728_v41 = vpop.f32.mrf.mxu1  ;;  %v2727_v18 = vadd.f32 %v2726_v46, %v2614_v52  ;;  %v2616_v0 = vadd.f32 %v2615_v38, %v2503_v35  ;;  %v3274_v24 = vmul.f32 %v7244_v1, %v2725_v33  ;;  %v8662_v2 = vmax.f32 %v7277_v50, 0.0  ;;  %v6288_v33 = vld [vmem:[#allocation8 + $0xe8] ss:$16 sps:$4 sm:$0xff]  }
 0x1cf   : > { %v2619_v9 = vpop.f32.mrf.mxu0  ;;  %v7298_v52 = vpack.c.bf16 %v8660_v17, %v8659_v54  ;;  %4423 = vmatpush2.bf16.msra.mxu1 %v6381_v63  ;;  %v7307_v53 = vadd.f32 %v7259_v7, %v3273_v42 }
 0x1d0   : > { %v2732_v48 = vpop.f32.mrf.mxu1  ;;  %v3277_v62 = vmul.f32 %v7240_v55, %v2727_v18  ;;  %v2729_v28 = vadd.f32 %v2728_v41, %v2616_v0  ;;  %v2620_v35 = vadd.f32 %v2619_v9, %v7143_v10  ;;  %v7292_v21 = vpack.c.bf16 %v8662_v2, %v8661_v34  ;;  %v6293_v41 = vld [vmem:[#allocation8 + $0xcc] ss:$16 sps:$4 sm:$0xff]  }
 0x1d1   : > { %v2621_v46 = vpop.f32.mrf.mxu0  ;;  %v6386_v18 = vld [vmem:[#allocation8 + $0x2ec] ss:$16 sps:$4 sm:$0xff]   ;;  %v2513_v0 = vadd.f32 %v7153_v47, %v7151_v20  ;;  %8832 = vst [vmem:[#allocation20_spill] sm:$0xff] %v7307_v53  ;;  %v7310_v9 = vadd.f32 %v7254_v23, %v3274_v24 }
 0x1d2   : > { %v2734_v22 = vpop.f32.mrf.mxu1  ;;  %v7301_v38 = vadd.f32 %v7259_v7, %v3277_v62  ;;  %v3278_v10 = vmul.f32 %v7244_v1, %v2729_v28  ;;  %v2622_v54 = vadd.f32 %v2621_v46, %v7147_v25  ;;  %4311 = vmatprep.mubr.bf16.mxu0 %v7292_v21  ;;  %v2733_v63 = vadd.f32 %v2732_v48, %v2620_v35  ;;  %v6291_v25 = vld [vmem:[#allocation8 + $0xc8] ss:$16 sps:$4 sm:$0xff]  }
 0x1d3   : > { %8833 = vst [vmem:[#allocation21_spill] sm:$0xff] %v7310_v9  ;;  %v2623_v62 = vpop.f32.mrf.mxu0  ;;  %4312 = vmatmul.mubr.bf16.vlgmr.msra.gmra.mxu0 %v7298_v52  ;;  %4618 = vmatprep.subr.bf16.mxu1 %v6386_v18  ;;  %v8665_v48 = vmax.f32 %v7310_v9, 0.0  ;;  %v6320_v9 = vld [vmem:[#allocation8 + $0x1ac] ss:$16 sps:$4 sm:$0xff]  }
 0x1d4   : > { %8831 = vst [vmem:[#allocation19_spill] sm:$0xff] %v7301_v38  ;;  %v2736_v17 = vpop.f32.mrf.mxu1  ;;  %v7315_v28 = vadd.f32 %v7254_v23, %v3278_v10  ;;  %v2624_v34 = vadd.f32 %v2623_v62, %v7149_v19  ;;  %v8666_v20 = vmax.f32 %v7301_v38, 0.0  ;;  %v2735_v47 = vadd.f32 %v2734_v22, %v2622_v54  ;;  %4506 = vmatpush1.bf16.msra.mxu0 %v6288_v33 }
 0x1d5   : > { %v2625_v42 = vpop.f32.mrf.mxu0  ;;  %4507 = vmatprep.subr.bf16.mxu0 %v6293_v41  ;;  %v8664_v10 = vmax.f32 %v7307_v53, 0.0  ;;  %v3281_v54 = vmul.f32 %v7240_v55, %v2733_v63  ;;  %v6294_v63 = vld [vmem:[#allocation8 + $0xa8] ss:$16 sps:$4 sm:$0xff]  }
 0x1d6   : > { %8834 = vst [vmem:[#allocation22_spill] sm:$0xff] %v7315_v28  ;;  %v2738_v24 = vpop.f32.mrf.mxu1  ;;  %v2737_v46 = vadd.f32 %v2736_v17, %v2624_v34  ;;  %v2626_v2 = vadd.f32 %v2625_v42, %v2513_v0  ;;  %v3282_v19 = vmul.f32 %v7244_v1, %v2735_v47  ;;  %v8667_v18 = vmax.f32 %v7315_v28, 0.0 }
 0x1d7   : > { %v2629_v35 = vpop.f32.mrf.mxu0  ;;  %v7331_v34 = vpack.c.bf16 %v8666_v20, %v8664_v10 }
 0x1d8   : > { %v2742_v62 = vpop.f32.mrf.mxu1  ;;  %v3285_v22 = vmul.f32 %v7240_v55, %v2737_v46  ;;  %v2739_v33 = vadd.f32 %v2738_v24, %v2626_v2  ;;  %v2630_v17 = vadd.f32 %v2629_v35, %v7157_v57  ;;  %4508 = vmatpush1.bf16.msra.mxu0 %v6291_v25  ;;  %v7337_v47 = vpack.c.bf16 %v8667_v18, %v8665_v48  ;;  %v6299_v25 = vld [vmem:[#allocation8 + $0x8c] ss:$16 sps:$4 sm:$0xff]  }
 0x1d9   : > { %v2631_v41 = vpop.f32.mrf.mxu0  ;;  %v7340_v2 = vadd.f32 %v7254_v23, %v3282_v19  ;;  %4509 = vmatprep.subr.bf16.mxu0 %v6296_v58  ;;  %v2523_v48 = vadd.f32 %v7167_v51, %v7165_v4  ;;  %v7351_v19 = vadd.f32 %v7259_v7, %v3281_v54  ;;  %v6302_v51 = vld [vmem:[#allocation8 + $0x6c] ss:$16 sps:$4 sm:$0xff]  }
 0x1da   : > { %v2744_v0 = vpop.f32.mrf.mxu1  ;;  %v7343_v57 = vadd.f32 %v7259_v7, %v3285_v22  ;;  %v3286_v42 = vmul.f32 %v7244_v1, %v2739_v33  ;;  %v2632_v24 = vadd.f32 %v2631_v41, %v7161_v49  ;;  %v2743_v46 = vadd.f32 %v2742_v62, %v2630_v17  ;;  %4321 = vmatprep.mubr.bf16.mxu0 %v7337_v47  ;;  %v6297_v33 = vld [vmem:[#allocation8 + $0x88] ss:$16 sps:$4 sm:$0xff]  }
 0x1db   : > { %8835 = vst [vmem:[#allocation23_spill] sm:$0xff] %v7340_v2  ;;  %v2633_v35 = vpop.f32.mrf.mxu0  ;;  %8837 = vst [vmem:[#allocation25_spill] sm:$0xff] %v7351_v19  ;;  %4322 = vmatmul.mubr.bf16.gmra.mxu0 %v7331_v34 }
 0x1dc   : > { %8836 = vst [vmem:[#allocation24_spill] sm:$0xff] %v7343_v57  ;;  %v2746_v10 = vpop.f32.mrf.mxu1  ;;  %v7354_v22 = vadd.f32 %v7254_v23, %v3286_v42  ;;  %v2745_v20 = vadd.f32 %v2744_v0, %v2632_v24  ;;  %v2634_v49 = vadd.f32 %v2633_v35, %v7163_v3  ;;  %4510 = vmatpush1.bf16.msra.mxu0 %v6294_v63  ;;  %v8670_v41 = vmax.f32 %v7343_v57, 0.0 }
 0x1dd   : > { %v2635_v58 = vpop.f32.mrf.mxu0  ;;  %4511 = vmatprep.subr.bf16.mxu0 %v6299_v25  ;;  %v3289_v54 = vmul.f32 %v7240_v55, %v2743_v46  ;;  %v8669_v63 = vmax.f32 %v7351_v19, 0.0 }
 0x1de   : > { %8838 = vst [vmem:[#allocation26_spill] sm:$0xff] %v7354_v22  ;;  %v2748_v62 = vpop.f32.mrf.mxu1  ;;  %v2636_v4 = vadd.f32 %v2635_v58, %v2523_v48  ;;  %v3290_v42 = vmul.f32 %v7244_v1, %v2745_v20  ;;  %v2747_v0 = vadd.f32 %v2746_v10, %v2634_v49  ;;  %v8671_v3 = vmax.f32 %v7354_v22, 0.0  ;;  %v6300_v10 = vld [vmem:[#allocation8 + $0x68] ss:$16 sps:$4 sm:$0xff]  }
 0x1df   : > { %v2639_v24 = vpop.f32.mrf.mxu0  ;;  %v8839_v58 = vmax.f32 %v7340_v2, 0.0  ;;  %v7376_v46 = vpack.c.bf16 %v8670_v41, %v8669_v63 }
 0x1e0   : > { %v2752_v18 = vpop.f32.mrf.mxu1  ;;  %v2749_v35 = vadd.f32 %v2748_v62, %v2636_v4  ;;  %v2640_v44 = vadd.f32 %v2639_v24, %v7171_v6  ;;  %v3293_v17 = vmul.f32 %v7240_v55, %v2747_v0  ;;  %4512 = vmatpush1.bf16.msra.mxu0 %v6297_v33  ;;  %v6305_v62 = vld [vmem:[#allocation8 + $0x4c] ss:$16 sps:$4 sm:$0xff]   ;;  %v2533_v33 = vadd.f32 %v7181_v61, %v7179_v29 }
 0x1e1   : > { %v2641_v48 = vpop.f32.mrf.mxu0  ;;  %v7370_v20 = vpack.c.bf16 %v8671_v3, %v8839_v58  ;;  %4513 = vmatprep.subr.bf16.mxu0 %v6302_v51  ;;  %v7383_v4 = vadd.f32 %v7259_v7, %v3289_v54  ;;  %v7386_v0 = vadd.f32 %v7254_v23, %v3290_v42  ;;  %v6303_v42 = vld [vmem:[#allocation8 + $0x48] ss:$16 sps:$4 sm:$0xff]   ;;  %v6308_v3 = vld [vmem:[#allocation8 + $0x2c] ss:$16 sps:$4 sm:$0xff]  }
 0x1e2   : > { %v2754_v25 = vpop.f32.mrf.mxu1  ;;  %v3294_v6 = vmul.f32 %v7244_v1, %v2749_v35  ;;  %v2642_v49 = vadd.f32 %v2641_v48, %v7175_v26  ;;  %v7389_v24 = vadd.f32 %v7259_v7, %v3293_v17  ;;  %v2753_v51 = vadd.f32 %v2752_v18, %v2640_v44 }
 0x1e3   : > { %8840 = vst [vmem:[#allocation27_spill] sm:$0xff] %v7383_v4  ;;  %8841 = vst [vmem:[#allocation28_spill] sm:$0xff] %v7386_v0  ;;  %4331 = vmatprep.mubr.bf16.mxu0 %v7370_v20  ;;  %v2643_v58 = vpop.f32.mrf.mxu0  ;;  %v8674_v5 = vmax.f32 %v7386_v0, 0.0 }
 0x1e4   : > { %8842 = vst [vmem:[#allocation29_spill] sm:$0xff] %v7389_v24  ;;  %v2756_v35 = vpop.f32.mrf.mxu1  ;;  %v7393_v26 = vadd.f32 %v7254_v23, %v3294_v6  ;;  %v2755_v48 = vadd.f32 %v2754_v25, %v2642_v49  ;;  %v2644_v29 = vadd.f32 %v2643_v58, %v7177_v59  ;;  %4332 = vmatmul.mubr.bf16.gmra.mxu0 %v7376_v46  ;;  %v8675_v17 = vmax.f32 %v7389_v24, 0.0 }
 0x1e5   : > { %4514 = vmatpush1.bf16.msra.mxu0 %v6300_v10  ;;  %v2645_v61 = vpop.f32.mrf.mxu0  ;;  %v8673_v25 = vmax.f32 %v7383_v4, 0.0  ;;  %v3297_v10 = vmul.f32 %v7240_v55, %v2753_v51 }
 0x1e6   : > { %8843 = vst [vmem:[#allocation30_spill] sm:$0xff] %v7393_v26  ;;  %v2758_v54 = vpop.f32.mrf.mxu1  ;;  %v2757_v63 = vadd.f32 %v2756_v35, %v2644_v29  ;;  %v2646_v41 = vadd.f32 %v2645_v61, %v2533_v33  ;;  %4515 = vmatprep.subr.bf16.mxu0 %v6305_v62  ;;  %v3298_v6 = vmul.f32 %v7244_v1, %v2755_v48  ;;  %v8676_v59 = vmax.f32 %v7393_v26, 0.0  ;;  %v6306_v29 = vld [vmem:[#allocation8 + $0x28] ss:$16 sps:$4 sm:$0xff]   ;;  %v6311_v61 = vld [vmem:[#allocation8 + $0xc] ss:$16 sps:$4 sm:$0xff]  }
 0x1e7   : > { %v2649_v44 = vpop.f32.mrf.mxu0  ;;  %v7415_v51 = vpack.c.bf16 %v8675_v17, %v8673_v25  ;;  %v6314_v17 = vld [vmem:[#allocation8 + $0x1ec] ss:$16 sps:$4 sm:$0xff]  }
 0x1e8   : > { %v2762_v18 = vpop.f32.mrf.mxu1  ;;  %v3301_v49 = vmul.f32 %v7240_v55, %v2757_v63  ;;  %v2759_v58 = vadd.f32 %v2758_v54, %v2646_v41  ;;  %v2650_v35 = vadd.f32 %v2649_v44, %v7185_v36  ;;  %v7409_v48 = vpack.c.bf16 %v8676_v59, %v8674_v5 }
 0x1e9   : > { %4516 = vmatpush1.bf16.msra.mxu0 %v6303_v42  ;;  %v2651_v62 = vpop.f32.mrf.mxu0  ;;  %v2543_v54 = vadd.f32 %v7195_v32, %v7193_v31  ;;  %v7425_v42 = vadd.f32 %v7254_v23, %v3298_v6  ;;  %v6309_v6 = vld [vmem:[#allocation8 + $0x8] ss:$16 sps:$4 sm:$0xff]  }
 0x1ea   : > { %v2764_v33 = vpop.f32.mrf.mxu1  ;;  %v7418_v41 = vadd.f32 %v7259_v7, %v3301_v49  ;;  %v3302_v36 = vmul.f32 %v7244_v1, %v2759_v58  ;;  %v2652_v63 = vadd.f32 %v2651_v62, %v7189_v60  ;;  %4517 = vmatprep.subr.bf16.mxu0 %v6308_v3  ;;  %v2763_v44 = vadd.f32 %v2762_v18, %v2650_v35 }
 0x1eb   : > { %8845 = vst [vmem:[#allocation32_spill] sm:$0xff] %v7425_v42  ;;  %4341 = vmatprep.mubr.bf16.mxu0 %v7409_v48  ;;  %v2653_v25 = vpop.f32.mrf.mxu0  ;;  %v7429_v49 = vadd.f32 %v7259_v7, %v3297_v10  ;;  %v8679_v10 = vmax.f32 %v7425_v42, 0.0 }
 0x1ec   : > { %8844 = vst [vmem:[#allocation31_spill] sm:$0xff] %v7418_v41  ;;  %v2766_v5 = vpop.f32.mrf.mxu1  ;;  %v7432_v58 = vadd.f32 %v7254_v23, %v3302_v36  ;;  %v2765_v60 = vadd.f32 %v2764_v33, %v2652_v63  ;;  %v2654_v3 = vadd.f32 %v2653_v25, %v7191_v40  ;;  %4342 = vmatmul.mubr.bf16.gmra.mxu0 %v7415_v51  ;;  %v8680_v18 = vmax.f32 %v7418_v41, 0.0 }
 0x1ed   : > { %8846 = vst [vmem:[#allocation33_spill] sm:$0xff] %v7429_v49  ;;  %4518 = vmatpush1.bf16.msra.mxu0 %v6306_v29  ;;  %v2655_v31 = vpop.f32.mrf.mxu0  ;;  %v3305_v36 = vmul.f32 %v7240_v55, %v2763_v44  ;;  %v8678_v29 = vmax.f32 %v7429_v49, 0.0 }
 0x1ee   : > { %8847 = vst [vmem:[#allocation34_spill] sm:$0xff] %v7432_v58  ;;  %v2768_v32 = vpop.f32.mrf.mxu1  ;;  %v2767_v35 = vadd.f32 %v2766_v5, %v2654_v3  ;;  %v2656_v62 = vadd.f32 %v2655_v31, %v2543_v54  ;;  %4519 = vmatprep.subr.bf16.mxu0 %v6311_v61  ;;  %v3306_v33 = vmul.f32 %v7244_v1, %v2765_v60  ;;  %v8681_v25 = vmax.f32 %v7432_v58, 0.0  ;;  %v6312_v60 = vld [vmem:[#allocation8 + $0x1e8] ss:$16 sps:$4 sm:$0xff]  }
 0x1ef   : > { %v2659_v63 = vpop.f32.mrf.mxu0  ;;  %v7454_v3 = vpack.c.bf16 %v8680_v18, %v8678_v29 }
 0x1f0   : > { %v2772_v40 = vpop.f32.mrf.mxu1  ;;  %v3309_v59 = vmul.f32 %v7240_v55, %v2767_v35  ;;  %v2769_v50 = vadd.f32 %v2768_v32, %v2656_v62  ;;  %v2660_v5 = vadd.f32 %v2659_v63, %v7199_v13  ;;  %v7448_v44 = vpack.c.bf16 %v8681_v25, %v8679_v10  ;;  %v6317_v32 = vld [vmem:[#allocation8 + $0x1cc] ss:$16 sps:$4 sm:$0xff]  }
 0x1f1   : > { %4520 = vmatpush1.bf16.msra.mxu0 %v6309_v6  ;;  %v2661_v61 = vpop.f32.mrf.mxu0  ;;  %v7461_v6 = vadd.f32 %v7259_v7, %v3305_v36  ;;  %v7464_v35 = vadd.f32 %v7254_v23, %v3306_v33 }
 0x1f2   : > { %v2774_v54 = vpop.f32.mrf.mxu1  ;;  %v7457_v31 = vadd.f32 %v7259_v7, %v3309_v59  ;;  %v3310_v13 = vmul.f32 %v7244_v1, %v2769_v50  ;;  %4521 = vmatprep.subr.bf16.mxu0 %v6314_v17  ;;  %v2662_v62 = vadd.f32 %v2661_v61, %v7203_v39  ;;  %4351 = vmatprep.mubr.bf16.mxu0 %v7448_v44  ;;  %v6315_v39 = vld [vmem:[#allocation8 + $0x1c8] ss:$16 sps:$4 sm:$0xff]  }
 0x1f3   : > { %8849 = vst [vmem:[#allocation36_spill] sm:$0xff] %v7461_v6  ;;  %8850 = vst [vmem:[#allocation37_spill] sm:$0xff] %v7464_v35  ;;  %v2663_v63 = vpop.f32.mrf.mxu0  ;;  %v2553_v59 = vadd.f32 %v7209_v14, %v7207_v11  ;;  %v2773_v50 = vadd.f32 %v2772_v40, %v2660_v5  ;;  %v8684_v11 = vmax.f32 %v7461_v6, 0.0  ;;  %v8685_v14 = vmax.f32 %v7464_v35, 0.0 }
 0x1f4   : > { %8848 = vst [vmem:[#allocation35_spill] sm:$0xff] %v7457_v31  ;;  %v2776_v29 = vpop.f32.mrf.mxu1  ;;  %v7471_v10 = vadd.f32 %v7254_v23, %v3310_v13  ;;  %v2664_v17 = vadd.f32 %v2663_v63, %v7205_v30  ;;  %4352 = vmatmul.mubr.bf16.gmra.mxu0 %v7454_v3  ;;  %v2775_v36 = vadd.f32 %v2774_v54, %v2662_v62  ;;  %v8686_v61 = vmax.f32 %v7457_v31, 0.0 }
 0x1f5   : > { %4522 = vmatpush2.bf16.msra.mxu0 %v6312_v60  ;;  %v2665_v33 = vpop.f32.mrf.mxu0  ;;  %v3313_v60 = vmul.f32 %v7240_v55, %v2773_v50 }
 0x1f6   : > { %8851 = vst [vmem:[#allocation38_spill] sm:$0xff] %v7471_v10  ;;  %v2778_v18 = vpop.f32.mrf.mxu1  ;;  %v2777_v25 = vadd.f32 %v2776_v29, %v2664_v17  ;;  %v2666_v53 = vadd.f32 %v2665_v33, %v2553_v59  ;;  %4523 = vmatprep.subr.bf16.mxu0 %v6317_v32  ;;  %v3314_v40 = vmul.f32 %v7244_v1, %v2775_v36  ;;  %v8687_v54 = vmax.f32 %v7471_v10, 0.0  ;;  %v6318_v17 = vld [vmem:[#allocation8 + $0x1a8] ss:$16 sps:$4 sm:$0xff]  }
 0x1f7   : > { %v2669_v30 = vpop.f32.mrf.mxu0  ;;  %v7493_v50 = vpack.c.bf16 %v8686_v61, %v8684_v11  ;;  %v2563_v36 = vadd.f32 %v7223_v12, %v7221_v16  ;;  %v7507_v11 = vadd.f32 %v7259_v7, %v3313_v60  ;;  %v6326_v60 = vld [vmem:[#allocation8 + $0x16c] ss:$16 sps:$4 sm:$0xff]  }
 0x1f8   : > { %v2782_v5 = vpop.f32.mrf.mxu1  ;;  %v3317_v13 = vmul.f32 %v7240_v55, %v2777_v25  ;;  %v2779_v62 = vadd.f32 %v2778_v18, %v2666_v53  ;;  %v2670_v29 = vadd.f32 %v2669_v30, %v7213_v45  ;;  %v7487_v59 = vpack.c.bf16 %v8687_v54, %v8685_v14  ;;  %v6323_v25 = vld [vmem:[#allocation8 + $0x18c] ss:$16 sps:$4 sm:$0xff]  }
 0x1f9   : > { %4524 = vmatpush2.bf16.msra.mxu0 %v6315_v39  ;;  %v2671_v32 = vpop.f32.mrf.mxu0  ;;  %v7503_v33 = vadd.f32 %v7254_v23, %v3314_v40  ;;  %8854 = vst [vmem:[#allocation41_spill] sm:$0xff] %v7507_v11  ;;  %v6321_v40 = vld [vmem:[#allocation8 + $0x188] ss:$16 sps:$4 sm:$0xff]  }
 0x1fa   : > { %v2784_v63 = vpop.f32.mrf.mxu1  ;;  %v7496_v53 = vadd.f32 %v7259_v7, %v3317_v13  ;;  %v3318_v45 = vmul.f32 %v7244_v1, %v2779_v62  ;;  %v2672_v18 = vadd.f32 %v2671_v32, %v7215_v37  ;;  %4525 = vmatprep.subr.bf16.mxu0 %v6320_v9  ;;  %4361 = vmatprep.mubr.bf16.mxu0 %v7487_v59 }
 0x1fb   : > { %8853 = vst [vmem:[#allocation40_spill] sm:$0xff] %v7503_v33  ;;  %v2673_v39 = vpop.f32.mrf.mxu0  ;;  %v2783_v62 = vadd.f32 %v2782_v5, %v2670_v29 }
 0x1fc   : > { %8852 = vst [vmem:[#allocation39_spill] sm:$0xff] %v7496_v53  ;;  %v2786_v30 = vpop.f32.mrf.mxu1  ;;  %v7510_v13 = vadd.f32 %v7254_v23, %v3318_v45  ;;  %v2785_v37 = vadd.f32 %v2784_v63, %v2672_v18  ;;  %4362 = vmatmul.mubr.bf16.gmra.mxu0 %v7493_v50  ;;  %v2674_v9 = vadd.f32 %v2673_v39, %v7219_v15  ;;  %v8689_v45 = vmax.f32 %v7503_v33, 0.0 }
 0x1fd   : > { %4526 = vmatpush2.bf16.msra.mxu0 %v6318_v17  ;;  %v2675_v16 = vpop.f32.mrf.mxu0  ;;  %v8688_v15 = vmax.f32 %v7507_v11, 0.0  ;;  %v3321_v17 = vmul.f32 %v7240_v55, %v2783_v62 }
 0x1fe   : > { %8855 = vst [vmem:[#allocation42_spill] sm:$0xff] %v7510_v13  ;;  %v2788_v12 = vpop.f32.mrf.mxu1  ;;  %v3322_v14 = vmul.f32 %v7244_v1, %v2785_v37  ;;  %v2676_v61 = vadd.f32 %v2675_v16, %v2563_v36  ;;  %4527 = vmatprep.subr.bf16.mxu0 %v6323_v25  ;;  %v2787_v54 = vadd.f32 %v2786_v30, %v2674_v9  ;;  %v8690_v63 = vmax.f32 %v7510_v13, 0.0  ;;  %v6324_v37 = vld [vmem:[#allocation8 + $0x168] ss:$16 sps:$4 sm:$0xff]   ;;  %v6329_v16 = vld [vmem:[#allocation8 + $0x14c] ss:$16 sps:$4 sm:$0xff]  }
 0x1ff   : > { %v2825_v5 = vpop.f32.mrf.mxu0  ;;  %v8856_v9 = vmax.f32 %v7496_v53, 0.0 }
 0x200   : > { %v2938_v29 = vpop.f32.mrf.mxu1  ;;  %v2789_v18 = vadd.f32 %v2788_v12, %v2676_v61  ;;  %v3325_v32 = vmul.f32 %v7240_v55, %v2787_v54  ;;  %v7527_v30 = vpack.c.bf16 %v8690_v63, %v8689_v45  ;;  %v7536_v61 = vadd.f32 %v7254_v23, %v3322_v14  ;;  %v6330_v63 = vld [vmem:[#allocation8 + $0x128] ss:$16 sps:$4 sm:$0xff]  }
 0x201   : > { %v7520_v39 = vadd.f32 %v2938_v29, %v2825_v5  ;;  %4528 = vmatpush2.bf16.msra.mxu0 %v6321_v40  ;;  %v2827_v36 = vpop.f32.mrf.mxu0  ;;  %v7533_v62 = vpack.c.bf16 %v8856_v9, %v8688_v15  ;;  %v7550_v29 = vadd.f32 %v7259_v7, %v3321_v17 }
 0x202   : > { %v2940_v25 = vpop.f32.mrf.mxu1  ;;  %8857 = vst [vmem:[#allocation43_spill] sm:$0xff] %v7536_v61  ;;  %v3326_v55 = vmul.f32 %v7244_v1, %v2789_v18  ;;  %4529 = vmatprep.subr.bf16.mxu0 %v6326_v60  ;;  %v7542_v12 = vadd.f32 %v7259_v7, %v3325_v32  ;;  %4371 = vmatprep.mubr.bf16.mxu0 %v7527_v30  ;;  %v6327_v32 = vld [vmem:[#allocation8 + $0x148] ss:$16 sps:$4 sm:$0xff]   ;;  %v8693_v18 = vmax.f32 %v7536_v61, 0.0  ;;  %v6332_v7 = vld [vmem:[#allocation8 + $0x12c] ss:$16 sps:$4 sm:$0xff]  }
 0x203   : > { %v7539_v54 = vadd.f32 %v2940_v25, %v2827_v36  ;;  %v7545_v40 = vpop.f32.mrf.mxu0  ;;  %8859 = vst [vmem:[#allocation45_spill] sm:$0xff] %v7550_v29 }
 0x204   : > { %8858 = vst [vmem:[#allocation44_spill] sm:$0xff] %v7542_v12  ;;  %v7547_v5 = vpop.f32.mrf.mxu1  ;;  %v7553_v14 = vadd.f32 %v7254_v23, %v3326_v55  ;;  %4372 = vmatmul.mubr.bf16.gmra.mxu0 %v7533_v62  ;;  %v8696_v36 = vmax.f32 %v7542_v12, 0.0  ;;  %v8695_v23 = vmax.f32 %v7550_v29, 0.0 }
 0x205   : > { %4530 = vmatpush2.bf16.msra.mxu0 %v6324_v37  ;;  %v7556_v1 = vpop.f32.mrf.mxu0 }
 0x206   : > { %v7558_v60 = vpop.f32.mrf.mxu1  ;;  %4531 = vmatprep.subr.bf16.mxu0 %v6329_v16  ;;  %v8694_v25 = vmax.f32 %v7553_v14, 0.0  ;;  %v7576_v16 = vpack.c.bf16 %v8696_v36, %v8695_v23  ;;  %v6333_v23 = vld [vmem:[#allocation8 + $0x108] ss:$16 sps:$4 sm:$0xff]  }
 0x207   : > { %v2835_v17 = vpop.f32.mrf.mxu0 }
 0x208   : > { %v2948_v9 = vpop.f32.mrf.mxu1  ;;  %v7570_v37 = vpack.c.bf16 %v8694_v25, %v8693_v18 }
 0x209   : > { %v7564_v55 = vadd.f32 %v2948_v9, %v2835_v17  ;;  %4532 = vmatpush2.bf16.msra.mxu0 %v6327_v32  ;;  %v2837_v15 = vpop.f32.mrf.mxu0  ;;  %v6335_v17 = vld [vmem:[#allocation8 + $0x10c] ss:$16 sps:$4 sm:$0xff]  }
 0x20a   : > { %v2950_v45 = vpop.f32.mrf.mxu1  ;;  %4381 = vmatprep.mubr.bf16.mxu0 %v7570_v37  ;;  %4533 = vmatprep.subr.bf16.mxu0 %v6332_v7 }
 0x20b   : > { %v7578_v38 = vadd.f32 %v2950_v45, %v2837_v15  ;;  %v2839_v9 = vpop.f32.mrf.mxu0 }
 0x20c   : > { %v2952_v28 = vpop.f32.mrf.mxu1  ;;  %4382 = vmatmul.mubr.bf16.gmra.mxu0 %v7576_v16 }
 0x20d   : > { %v7581_v18 = vadd.f32 %v2952_v28, %v2839_v9  ;;  %4534 = vmatpush2.bf16.msra.mxu0 %v6330_v63  ;;  %4537 = vmatprep.mubr.bf16.mxu0 %v7292_v21  ;;  %v7585_v32 = vpop.f32.mrf.mxu0 }
 0x20e   : > { %v7587_v25 = vpop.f32.mrf.mxu1  ;;  %4535 = vmatprep.subr.bf16.mxu0 %v6335_v17 }
 0x20f   : > { %v2845_v45 = vpop.f32.mrf.mxu0 }
 0x210   : > { %v2958_v15 = vpop.f32.mrf.mxu1 }
 0x211   : > { %v7589_v36 = vadd.f32 %v2958_v15, %v2845_v45  ;;  %4536 = vmatpush2.bf16.msra.mxu0 %v6333_v23  ;;  %v2847_v7 = vpop.f32.mrf.mxu0 }
 0x212   : > { %v2960_v19 = vpop.f32.mrf.mxu1 }
 0x213   : > { %v7591_v28 = vadd.f32 %v2960_v19, %v2847_v7  ;;  %v2849_v9 = vpop.f32.mrf.mxu0 }
 0x214   : > { %v2962_v2 = vpop.f32.mrf.mxu1  ;;  %4538 = vmatmul.mubr.bf16.vlgmr.msra.gmra.mxu0 %v7298_v52 }
 0x215   : > { %v7593_v63 = vadd.f32 %v2962_v2, %v2849_v9  ;;  %4547 = vmatprep.mubr.bf16.mxu0 %v7337_v47  ;;  %v7597_v21 = vpop.f32.mrf.mxu0 }
 0x216   : > { %v7599_v17 = vpop.f32.mrf.mxu1 }
 0x217   : > { %v2855_v57 = vpop.f32.mrf.mxu0 }
 0x218   : > { %v2968_v45 = vpop.f32.mrf.mxu1 }
 0x219   : > { %v7601_v15 = vadd.f32 %v2968_v45, %v2855_v57  ;;  %v2857_v23 = vpop.f32.mrf.mxu0 }
 0x21a   : > { %v2970_v22 = vpop.f32.mrf.mxu1 }
 0x21b   : > { %v7603_v19 = vadd.f32 %v2970_v22, %v2857_v23  ;;  %v2859_v7 = vpop.f32.mrf.mxu0 }
 0x21c   : > { %v2972_v4 = vpop.f32.mrf.mxu1  ;;  %4548 = vmatmul.mubr.bf16.gmra.mxu0 %v7331_v34 }
 0x21d   : > { %v7605_v2 = vadd.f32 %v2972_v4, %v2859_v7  ;;  %4557 = vmatprep.mubr.bf16.mxu0 %v7370_v20  ;;  %v7609_v52 = vpop.f32.mrf.mxu0 }
 0x21e   : > { %v7611_v47 = vpop.f32.mrf.mxu1 }
 0x21f   : > { %v2865_v9 = vpop.f32.mrf.mxu0 }
 0x220   : > { %v2978_v0 = vpop.f32.mrf.mxu1 }
 0x221   : > { %v7613_v57 = vadd.f32 %v2978_v0, %v2865_v9  ;;  %v7615_v45 = vpop.f32.mrf.mxu0 }
 0x222   : > { %v7617_v22 = vpop.f32.mrf.mxu1 }
 0x223   : > { %v2869_v23 = vpop.f32.mrf.mxu0 }
 0x224   : > { %v2982_v24 = vpop.f32.mrf.mxu1  ;;  %4558 = vmatmul.mubr.bf16.gmra.mxu0 %v7376_v46 }
 0x225   : > { %v7619_v4 = vadd.f32 %v2982_v24, %v2869_v23  ;;  %4567 = vmatprep.mubr.bf16.mxu0 %v7409_v48  ;;  %v7623_v34 = vpop.f32.mrf.mxu0 }
 0x226   : > { %v7625_v20 = vpop.f32.mrf.mxu1 }
 0x227   : > { %v2875_v7 = vpop.f32.mrf.mxu0 }
 0x228   : > { %v2988_v26 = vpop.f32.mrf.mxu1 }
 0x229   : > { %v7627_v0 = vadd.f32 %v2988_v26, %v2875_v7  ;;  %v2877_v9 = vpop.f32.mrf.mxu0 }
 0x22a   : > { %v2990_v49 = vpop.f32.mrf.mxu1 }
 0x22b   : > { %v7629_v42 = vadd.f32 %v2990_v49, %v2877_v9  ;;  %v2879_v41 = vpop.f32.mrf.mxu0 }
 0x22c   : > { %v2992_v58 = vpop.f32.mrf.mxu1  ;;  %4568 = vmatmul.mubr.bf16.gmra.mxu0 %v7415_v51 }
 0x22d   : > { %v7631_v24 = vadd.f32 %v2992_v58, %v2879_v41  ;;  %4577 = vmatprep.mubr.bf16.mxu0 %v7448_v44  ;;  %v7635_v46 = vpop.f32.mrf.mxu0 }
 0x22e   : > { %v7637_v48 = vpop.f32.mrf.mxu1 }
 0x22f   : > { %v2885_v23 = vpop.f32.mrf.mxu0 }
 0x230   : > { %v2998_v6 = vpop.f32.mrf.mxu1 }
 0x231   : > { %v7639_v26 = vadd.f32 %v2998_v6, %v2885_v23  ;;  %v2887_v7 = vpop.f32.mrf.mxu0 }
 0x232   : > { %v3000_v35 = vpop.f32.mrf.mxu1 }
 0x233   : > { %v7641_v49 = vadd.f32 %v3000_v35, %v2887_v7  ;;  %v2889_v9 = vpop.f32.mrf.mxu0 }
 0x234   : > { %v3002_v31 = vpop.f32.mrf.mxu1  ;;  %4578 = vmatmul.mubr.bf16.gmra.mxu0 %v7454_v3 }
 0x235   : > { %v7643_v41 = vadd.f32 %v3002_v31, %v2889_v9  ;;  %4587 = vmatprep.mubr.bf16.mxu0 %v7487_v59  ;;  %v7647_v51 = vpop.f32.mrf.mxu0  ;;  %v7664_v9 = vsub.s32 3, %v7217_v27 }
 0x236   : > { %v7649_v58 = vpop.f32.mrf.mxu1 }
 0x237   : > { %v2895_v44 = vpop.f32.mrf.mxu0  ;;  %v7675_v53 = vrot.slane %v7235_v8, %v7664_v9 }
 0x238   : > { %v3008_v10 = vpop.f32.mrf.mxu1 }
 0x239   : > { %v7651_v6 = vadd.f32 %v3008_v10, %v2895_v44  ;;  %v2897_v23 = vpop.f32.mrf.mxu0 }
 0x23a   : > { %v3010_v11 = vpop.f32.mrf.mxu1 }
 0x23b   : > { %v7653_v35 = vadd.f32 %v3010_v11, %v2897_v23  ;;  %v2899_v7 = vpop.f32.mrf.mxu0  ;;  %v7667_v11 = vsub.s32 2, %v7217_v27 }
 0x23c   : > { %v3012_v33 = vpop.f32.mrf.mxu1  ;;  %4588 = vmatmul.mubr.bf16.gmra.mxu0 %v7493_v50  ;;  %v2943_v50 = vadd.f32 %v7547_v5, %v7545_v40 }
 0x23d   : > { %v7655_v31 = vadd.f32 %v3012_v33, %v2899_v7  ;;  %4597 = vmatprep.mubr.bf16.mxu0 %v7527_v30  ;;  %v7659_v3 = vpop.f32.mrf.mxu0  ;;  %8860 = vst [vmem:[#allocation46_spill] sm:$0xff] %v7667_v11  ;;  %v7679_v29 = vrot.slane %v7235_v8, %v7667_v11 }
 0x23e   : > { %v7661_v59 = vpop.f32.mrf.mxu1 }
 0x23f   : > { %v3051_v10 = vpop.f32.mrf.mxu0 }
 0x240   : > { %v3164_v44 = vpop.f32.mrf.mxu1  ;;  %v3052_v23 = vadd.f32 %v3051_v10, %v7520_v39  ;;  %v2945_v39 = vadd.f32 %v7558_v60, %v7556_v1  ;;  %v7693_v1 = vrot.slane %v7249_v56, %v7667_v11 }
 0x241   : > { %v3053_v33 = vpop.f32.mrf.mxu0 }
 0x242   : > { %v3166_v7 = vpop.f32.mrf.mxu1  ;;  %v3054_v30 = vadd.f32 %v3053_v33, %v7539_v54  ;;  %v3165_v13 = vadd.f32 %v3164_v44, %v3052_v23  ;;  %v7688_v44 = vrot.slane %v7249_v56, %v7664_v9 }
 0x243   : > { %v3055_v27 = vpop.f32.mrf.mxu0 }
 0x244   : > { %v3168_v61 = vpop.f32.mrf.mxu1  ;;  %v3167_v10 = vadd.f32 %v3166_v7, %v3054_v30  ;;  %v3056_v12 = vadd.f32 %v3055_v27, %v2943_v50  ;;  %4598 = vmatmul.mubr.bf16.gmra.mxu0 %v7533_v62  ;;  %v3267_v33 = vmul.f32 %v7679_v29, %v3165_v13 }
 0x245   : > { %4607 = vmatprep.mubr.bf16.mxu0 %v7570_v37  ;;  %v3057_v54 = vpop.f32.mrf.mxu0 }
 0x246   : > { %v3170_v40 = vpop.f32.mrf.mxu1  ;;  %v3268_v5 = vmul.f32 %v7675_v53, %v3167_v10  ;;  %v3169_v8 = vadd.f32 %v3168_v61, %v3056_v12  ;;  %v3058_v23 = vadd.f32 %v3057_v54, %v2945_v39  ;;  %v7706_v12 = vadd.f32 %v7693_v1, %v3267_v33 }
 0x247   : > { %v3061_v60 = vpop.f32.mrf.mxu0 }
 0x248   : > { %v3174_v62 = vpop.f32.mrf.mxu1  ;;  %v3271_v37 = vmul.f32 %v7679_v29, %v3169_v8  ;;  %v3171_v7 = vadd.f32 %v3170_v40, %v3058_v23  ;;  %v3062_v50 = vadd.f32 %v3061_v60, %v7564_v55  ;;  %v7698_v10 = vadd.f32 %v7688_v44, %v3268_v5  ;;  %8863 = vst [vmem:[#allocation49_spill] sm:$0xff] %v7706_v12 }
 0x249   : > { %v3063_v30 = vpop.f32.mrf.mxu0  ;;  %v2955_v23 = vadd.f32 %v7587_v25, %v7585_v32 }
 0x24a   : > { %v3176_v27 = vpop.f32.mrf.mxu1  ;;  %8861 = vst [vmem:[#allocation47_spill] sm:$0xff] %v7698_v10  ;;  %v7701_v61 = vadd.f32 %v7693_v1, %v3271_v37  ;;  %v3272_v13 = vmul.f32 %v7675_v53, %v3171_v7  ;;  %v3064_v56 = vadd.f32 %v3063_v30, %v7578_v38  ;;  %v3175_v55 = vadd.f32 %v3174_v62, %v3062_v50 }
 0x24b   : > { %v3065_v39 = vpop.f32.mrf.mxu0  ;;  %v8720_v33 = vmax.f32 %v7698_v10, 0.0 }
 0x24c   : > { %8862 = vst [vmem:[#allocation48_spill] sm:$0xff] %v7701_v61  ;;  %v3178_v54 = vpop.f32.mrf.mxu1  ;;  %v7709_v40 = vadd.f32 %v7688_v44, %v3272_v13  ;;  %v3177_v8 = vadd.f32 %v3176_v27, %v3064_v56  ;;  %v3066_v5 = vadd.f32 %v3065_v39, %v7581_v18  ;;  %4608 = vmatmul.mubr.bf16.gmra.mxu0 %v7576_v16  ;;  %v8723_v60 = vmax.f32 %v7701_v61, 0.0  ;;  %v6384_v39 = vld [vmem:[#allocation8 + $0x2e8] ss:$16 sps:$4 sm:$0xff]  }
 0x24d   : > { %v3067_v38 = vpop.f32.mrf.mxu0  ;;  %v8722_v13 = vmax.f32 %v7706_v12, 0.0  ;;  %v3275_v16 = vmul.f32 %v7679_v29, %v3175_v55  ;;  %v6392_v12 = vld [vmem:[#allocation8 + $0x2ac] ss:$16 sps:$4 sm:$0xff]  }
 0x24e   : > { %8864 = vst [vmem:[#allocation50_spill] sm:$0xff] %v7709_v40  ;;  %v3180_v37 = vpop.f32.mrf.mxu1  ;;  %v8721_v7 = vmax.f32 %v7709_v40, 0.0  ;;  %v3179_v30 = vadd.f32 %v3178_v54, %v3066_v5  ;;  %v3276_v62 = vmul.f32 %v7675_v53, %v3177_v8  ;;  %v3068_v50 = vadd.f32 %v3067_v38, %v2955_v23  ;;  %v6389_v23 = vld [vmem:[#allocation8 + $0x2cc] ss:$16 sps:$4 sm:$0xff]  }
 0x24f   : > { %v3071_v18 = vpop.f32.mrf.mxu0  ;;  %v7733_v54 = vpack.c.bf16 %v8723_v60, %v8722_v13 }
 0x250   : > { %v3184_v27 = vpop.f32.mrf.mxu1  ;;  %v3279_v25 = vmul.f32 %v7679_v29, %v3179_v30  ;;  %v3072_v32 = vadd.f32 %v3071_v18, %v7589_v36  ;;  %v7727_v56 = vpack.c.bf16 %v8721_v7, %v8720_v33  ;;  %v3181_v8 = vadd.f32 %v3180_v37, %v3068_v50 }
 0x251   : > { %v3073_v5 = vpop.f32.mrf.mxu0  ;;  %v7741_v30 = vadd.f32 %v7688_v44, %v3276_v62  ;;  %v7746_v37 = vadd.f32 %v7693_v1, %v3275_v16 }
 0x252   : > { %v3186_v55 = vpop.f32.mrf.mxu1  ;;  %v7736_v38 = vadd.f32 %v7693_v1, %v3279_v25  ;;  %v3074_v36 = vadd.f32 %v3073_v5, %v7591_v28  ;;  %4424 = vmatprep.mubr.bf16.mxu1 %v7727_v56  ;;  %v3280_v18 = vmul.f32 %v7675_v53, %v3181_v8  ;;  %v3185_v50 = vadd.f32 %v3184_v27, %v3072_v32  ;;  %v6387_v28 = vld [vmem:[#allocation8 + $0x2c8] ss:$16 sps:$4 sm:$0xff]  }
 0x253   : > { %8866 = vst [vmem:[#allocation52_spill] sm:$0xff] %v7741_v30  ;;  %v3075_v33 = vpop.f32.mrf.mxu0  ;;  %4425 = vmatmul.mubr.bf16.vlgmr.msra.gmra.mxu1 %v7733_v54  ;;  %8867 = vst [vmem:[#allocation53_spill] sm:$0xff] %v7746_v37  ;;  %v2965_v5 = vadd.f32 %v7599_v17, %v7597_v21  ;;  %v8727_v27 = vmax.f32 %v7741_v30, 0.0  ;;  %v8726_v21 = vmax.f32 %v7746_v37, 0.0 }
 0x254   : > { %8865 = vst [vmem:[#allocation51_spill] sm:$0xff] %v7736_v38  ;;  %v3188_v7 = vpop.f32.mrf.mxu1  ;;  %v3187_v13 = vadd.f32 %v3186_v55, %v3074_v36  ;;  %v3076_v25 = vadd.f32 %v3075_v33, %v7593_v63  ;;  %4619 = vmatpush1.bf16.msra.mxu1 %v6384_v39  ;;  %v7752_v62 = vadd.f32 %v7688_v44, %v3280_v18  ;;  %v8728_v10 = vmax.f32 %v7736_v38, 0.0 }
 0x255   : > { %v3077_v8 = vpop.f32.mrf.mxu0  ;;  %4620 = vmatprep.subr.bf16.mxu1 %v6389_v23  ;;  %v3283_v17 = vmul.f32 %v7679_v29, %v3185_v50 }
 0x256   : > { %8868 = vst [vmem:[#allocation54_spill] sm:$0xff] %v7752_v62  ;;  %v3190_v60 = vpop.f32.mrf.mxu1  ;;  %v3189_v16 = vadd.f32 %v3188_v7, %v3076_v25  ;;  %v8729_v32 = vmax.f32 %v7752_v62, 0.0  ;;  %v3284_v63 = vmul.f32 %v7675_v53, %v3187_v13  ;;  %v3078_v33 = vadd.f32 %v3077_v8, %v2965_v5  ;;  %v6390_v5 = vld [vmem:[#allocation8 + $0x2a8] ss:$16 sps:$4 sm:$0xff]  }
 0x257   : > { %v3081_v39 = vpop.f32.mrf.mxu0  ;;  %v7772_v50 = vpack.c.bf16 %v8728_v10, %v8726_v21  ;;  %v6393_v10 = vld [vmem:[#allocation8 + $0x288] ss:$16 sps:$4 sm:$0xff]  }
 0x258   : > { %v3194_v55 = vpop.f32.mrf.mxu1  ;;  %v3287_v36 = vmul.f32 %v7679_v29, %v3189_v16  ;;  %v3082_v23 = vadd.f32 %v3081_v39, %v7601_v15  ;;  %4621 = vmatpush1.bf16.msra.mxu1 %v6387_v28  ;;  %v3191_v18 = vadd.f32 %v3190_v60, %v3078_v33  ;;  %v7766_v13 = vpack.c.bf16 %v8729_v32, %v8727_v27  ;;  %v6395_v28 = vld [vmem:[#allocation8 + $0x28c] ss:$16 sps:$4 sm:$0xff]  }
 0x259   : > { %v3083_v7 = vpop.f32.mrf.mxu0  ;;  %4622 = vmatprep.subr.bf16.mxu1 %v6392_v12  ;;  %v7779_v8 = vadd.f32 %v7688_v44, %v3284_v63  ;;  %v7784_v39 = vadd.f32 %v7693_v1, %v3283_v17  ;;  %v2981_v17 = vadd.f32 %v7617_v22, %v7615_v45 }
 0x25a   : > { %v3196_v25 = vpop.f32.mrf.mxu1  ;;  %v7775_v15 = vadd.f32 %v7693_v1, %v3287_v36  ;;  %v3084_v60 = vadd.f32 %v3083_v7, %v7603_v19  ;;  %v3288_v16 = vmul.f32 %v7675_v53, %v3191_v18  ;;  %4434 = vmatprep.mubr.bf16.mxu1 %v7766_v13  ;;  %v3195_v21 = vadd.f32 %v3194_v55, %v3082_v23 }
 0x25b   : > { %8870 = vst [vmem:[#allocation56_spill] sm:$0xff] %v7779_v8  ;;  %v3085_v12 = vpop.f32.mrf.mxu0  ;;  %8871 = vst [vmem:[#allocation57_spill] sm:$0xff] %v7784_v39  ;;  %4435 = vmatmul.mubr.bf16.gmra.mxu1 %v7772_v50  ;;  %v2975_v19 = vadd.f32 %v7611_v47, %v7609_v52 }
 0x25c   : > { %8869 = vst [vmem:[#allocation55_spill] sm:$0xff] %v7775_v15  ;;  %v3198_v33 = vpop.f32.mrf.mxu1  ;;  %v3197_v27 = vadd.f32 %v3196_v25, %v3084_v60  ;;  %v3086_v36 = vadd.f32 %v3085_v12, %v7605_v2  ;;  %v7791_v63 = vadd.f32 %v7688_v44, %v3288_v16  ;;  %4623 = vmatpush1.bf16.msra.mxu1 %v6390_v5  ;;  %v8732_v55 = vmax.f32 %v7775_v15, 0.0  ;;  %v6398_v2 = vld [vmem:[#allocation8 + $0x26c] ss:$16 sps:$4 sm:$0xff]  }
 0x25d   : > { %v3087_v18 = vpop.f32.mrf.mxu0  ;;  %4624 = vmatprep.subr.bf16.mxu1 %v6395_v28  ;;  %v8730_v25 = vmax.f32 %v7779_v8, 0.0  ;;  %v8731_v12 = vmax.f32 %v7784_v39, 0.0  ;;  %v3291_v32 = vmul.f32 %v7679_v29, %v3195_v21 }
 0x25e   : > { %8872 = vst [vmem:[#allocation58_spill] sm:$0xff] %v7791_v63  ;;  %v3200_v7 = vpop.f32.mrf.mxu1  ;;  %v3199_v23 = vadd.f32 %v3198_v33, %v3086_v36  ;;  %v8733_v60 = vmax.f32 %v7791_v63, 0.0  ;;  %v3292_v52 = vmul.f32 %v7675_v53, %v3197_v27  ;;  %v3088_v47 = vadd.f32 %v3087_v18, %v2975_v19  ;;  %v6396_v19 = vld [vmem:[#allocation8 + $0x268] ss:$16 sps:$4 sm:$0xff]  }
 0x25f   : > { %v3091_v16 = vpop.f32.mrf.mxu0  ;;  %v7813_v21 = vpack.c.bf16 %v8732_v55, %v8731_v12 }
 0x260   : > { %v3204_v5 = vpop.f32.mrf.mxu1  ;;  %v3295_v45 = vmul.f32 %v7679_v29, %v3199_v23  ;;  %v3092_v22 = vadd.f32 %v3091_v16, %v7613_v57  ;;  %v3201_v33 = vadd.f32 %v3200_v7, %v3088_v47  ;;  %4625 = vmatpush1.bf16.msra.mxu1 %v6393_v10  ;;  %v7807_v27 = vpack.c.bf16 %v8733_v60, %v8730_v25  ;;  %v6401_v10 = vld [vmem:[#allocation8 + $0x24c] ss:$16 sps:$4 sm:$0xff]  }
 0x261   : > { %v3093_v28 = vpop.f32.mrf.mxu0  ;;  %4626 = vmatprep.subr.bf16.mxu1 %v6398_v2  ;;  %v7819_v7 = vadd.f32 %v7688_v44, %v3292_v52  ;;  %v7824_v25 = vadd.f32 %v7693_v1, %v3291_v32 }
 0x262   : > { %v3206_v36 = vpop.f32.mrf.mxu1  ;;  %v7816_v18 = vadd.f32 %v7693_v1, %v3295_v45  ;;  %v3094_v57 = vadd.f32 %v3093_v28, %v2981_v17  ;;  %v3296_v23 = vmul.f32 %v7675_v53, %v3201_v33  ;;  %4444 = vmatprep.mubr.bf16.mxu1 %v7807_v27  ;;  %v3205_v12 = vadd.f32 %v3204_v5, %v3092_v22  ;;  %v6399_v28 = vld [vmem:[#allocation8 + $0x248] ss:$16 sps:$4 sm:$0xff]   ;;  %v6404_v5 = vld [vmem:[#allocation8 + $0x22c] ss:$16 sps:$4 sm:$0xff]  }
 0x263   : > { %8874 = vst [vmem:[#allocation60_spill] sm:$0xff] %v7819_v7  ;;  %v3095_v47 = vpop.f32.mrf.mxu0  ;;  %8875 = vst [vmem:[#allocation61_spill] sm:$0xff] %v7824_v25  ;;  %4445 = vmatmul.mubr.bf16.gmra.mxu1 %v7813_v21  ;;  %v2985_v17 = vadd.f32 %v7625_v20, %v7623_v34  ;;  %v8734_v22 = vmax.f32 %v7819_v7, 0.0 }
 0x264   : > { %8873 = vst [vmem:[#allocation59_spill] sm:$0xff] %v7816_v18  ;;  %v3208_v16 = vpop.f32.mrf.mxu1  ;;  %v3207_v55 = vadd.f32 %v3206_v36, %v3094_v57  ;;  %v3096_v45 = vadd.f32 %v3095_v47, %v7619_v4  ;;  %v7831_v2 = vadd.f32 %v7688_v44, %v3296_v23  ;;  %4627 = vmatpush1.bf16.msra.mxu1 %v6396_v19  ;;  %v8736_v23 = vmax.f32 %v7824_v25, 0.0 }
 0x265   : > { %v3097_v52 = vpop.f32.mrf.mxu0  ;;  %4628 = vmatprep.subr.bf16.mxu1 %v6401_v10  ;;  %v3299_v19 = vmul.f32 %v7679_v29, %v3205_v12 }
 0x266   : > { %8876 = vst [vmem:[#allocation62_spill] sm:$0xff] %v7831_v2  ;;  %v3210_v33 = vpop.f32.mrf.mxu1  ;;  %v3209_v32 = vadd.f32 %v3208_v16, %v3096_v45  ;;  %v8735_v4 = vmax.f32 %v7831_v2, 0.0  ;;  %v3300_v36 = vmul.f32 %v7675_v53, %v3207_v55  ;;  %v3098_v57 = vadd.f32 %v3097_v52, %v2985_v17  ;;  %v6402_v17 = vld [vmem:[#allocation8 + $0x228] ss:$16 sps:$4 sm:$0xff]  }
 0x267   : > { %v3101_v34 = vpop.f32.mrf.mxu0  ;;  %v8877_v52 = vmax.f32 %v7816_v18, 0.0 }
 0x268   : > { %v3214_v20 = vpop.f32.mrf.mxu1  ;;  %v3303_v47 = vmul.f32 %v7679_v29, %v3209_v32  ;;  %v3102_v60 = vadd.f32 %v3101_v34, %v7627_v0  ;;  %v3211_v16 = vadd.f32 %v3210_v33, %v3098_v57  ;;  %4629 = vmatpush1.bf16.msra.mxu1 %v6399_v28  ;;  %v7845_v55 = vpack.c.bf16 %v8735_v4, %v8734_v22  ;;  %v6407_v33 = vld [vmem:[#allocation8 + $0x20c] ss:$16 sps:$4 sm:$0xff]  }
 0x269   : > { %v3103_v10 = vpop.f32.mrf.mxu0  ;;  %v7851_v12 = vpack.c.bf16 %v8877_v52, %v8736_v23  ;;  %4630 = vmatprep.subr.bf16.mxu1 %v6404_v5  ;;  %v7858_v28 = vadd.f32 %v7688_v44, %v3300_v36  ;;  %v7863_v4 = vadd.f32 %v7693_v1, %v3299_v19 }
 0x26a   : > { %v3216_v45 = vpop.f32.mrf.mxu1  ;;  %v7854_v32 = vadd.f32 %v7693_v1, %v3303_v47  ;;  %v3104_v0 = vadd.f32 %v3103_v10, %v7629_v42  ;;  %v3304_v57 = vmul.f32 %v7675_v53, %v3211_v16  ;;  %4454 = vmatprep.mubr.bf16.mxu1 %v7845_v55  ;;  %v3215_v52 = vadd.f32 %v3214_v20, %v3102_v60  ;;  %v6405_v10 = vld [vmem:[#allocation8 + $0x208] ss:$16 sps:$4 sm:$0xff]   ;;  %v6410_v60 = vld [vmem:[#allocation8 + $0x3ec] ss:$16 sps:$4 sm:$0xff]  }
 0x26b   : > { %8879 = vst [vmem:[#allocation64_spill] sm:$0xff] %v7858_v28  ;;  %v3105_v34 = vpop.f32.mrf.mxu0  ;;  %8880 = vst [vmem:[#allocation65_spill] sm:$0xff] %v7863_v4  ;;  %4455 = vmatmul.mubr.bf16.gmra.mxu1 %v7851_v12  ;;  %v2995_v42 = vadd.f32 %v7637_v48, %v7635_v46  ;;  %v8738_v20 = vmax.f32 %v7858_v28, 0.0 }
 0x26c   : > { %8878 = vst [vmem:[#allocation63_spill] sm:$0xff] %v7854_v32  ;;  %v3218_v22 = vpop.f32.mrf.mxu1  ;;  %v3217_v23 = vadd.f32 %v3216_v45, %v3104_v0  ;;  %v3106_v47 = vadd.f32 %v3105_v34, %v7631_v24  ;;  %v7870_v5 = vadd.f32 %v7688_v44, %v3304_v57  ;;  %4631 = vmatpush1.bf16.msra.mxu1 %v6402_v17  ;;  %v8740_v57 = vmax.f32 %v7863_v4, 0.0 }
 0x26d   : > { %v3107_v36 = vpop.f32.mrf.mxu0  ;;  %4632 = vmatprep.subr.bf16.mxu1 %v6407_v33  ;;  %v3307_v17 = vmul.f32 %v7679_v29, %v3215_v52 }
 0x26e   : > { %8881 = vst [vmem:[#allocation66_spill] sm:$0xff] %v7870_v5  ;;  %v3220_v16 = vpop.f32.mrf.mxu1  ;;  %v3219_v19 = vadd.f32 %v3218_v22, %v3106_v47  ;;  %v8739_v24 = vmax.f32 %v7870_v5, 0.0  ;;  %v3308_v45 = vmul.f32 %v7675_v53, %v3217_v23  ;;  %v3108_v0 = vadd.f32 %v3107_v36, %v2995_v42  ;;  %v6408_v42 = vld [vmem:[#allocation8 + $0x3e8] ss:$16 sps:$4 sm:$0xff]  }
 0x26f   : > { %v3111_v46 = vpop.f32.mrf.mxu0  ;;  %v8882_v36 = vmax.f32 %v7854_v32, 0.0 }
 0x270   : > { %v3224_v48 = vpop.f32.mrf.mxu1  ;;  %v3311_v34 = vmul.f32 %v7679_v29, %v3219_v19  ;;  %v3112_v61 = vadd.f32 %v3111_v46, %v7639_v26  ;;  %v3221_v22 = vadd.f32 %v3220_v16, %v3108_v0  ;;  %4633 = vmatpush1.bf16.msra.mxu1 %v6405_v10  ;;  %v7884_v23 = vpack.c.bf16 %v8739_v24, %v8738_v20  ;;  %v6413_v16 = vld [vmem:[#allocation8 + $0x3cc] ss:$16 sps:$4 sm:$0xff]  }
 0x271   : > { %v3113_v33 = vpop.f32.mrf.mxu0  ;;  %v7890_v52 = vpack.c.bf16 %v8882_v36, %v8740_v57  ;;  %4634 = vmatprep.subr.bf16.mxu1 %v6410_v60  ;;  %v7897_v10 = vadd.f32 %v7688_v44, %v3308_v45  ;;  %v7902_v24 = vadd.f32 %v7693_v1, %v3307_v17 }
 0x272   : > { %v3226_v47 = vpop.f32.mrf.mxu1  ;;  %v7893_v19 = vadd.f32 %v7693_v1, %v3311_v34  ;;  %v3114_v26 = vadd.f32 %v3113_v33, %v7641_v49  ;;  %v3312_v0 = vmul.f32 %v7675_v53, %v3221_v22  ;;  %4464 = vmatprep.mubr.bf16.mxu1 %v7884_v23  ;;  %v3225_v36 = vadd.f32 %v3224_v48, %v3112_v61  ;;  %v6411_v33 = vld [vmem:[#allocation8 + $0x3c8] ss:$16 sps:$4 sm:$0xff]   ;;  %v6416_v61 = vld [vmem:[#allocation8 + $0x3ac] ss:$16 sps:$4 sm:$0xff]  }
 0x273   : > { %8884 = vst [vmem:[#allocation68_spill] sm:$0xff] %v7897_v10  ;;  %v3115_v46 = vpop.f32.mrf.mxu0  ;;  %8885 = vst [vmem:[#allocation69_spill] sm:$0xff] %v7902_v24  ;;  %4465 = vmatmul.mubr.bf16.gmra.mxu1 %v7890_v52  ;;  %v3005_v49 = vadd.f32 %v7649_v58, %v7647_v51  ;;  %v8742_v48 = vmax.f32 %v7897_v10, 0.0 }
 0x274   : > { %8883 = vst [vmem:[#allocation67_spill] sm:$0xff] %v7893_v19  ;;  %v3228_v20 = vpop.f32.mrf.mxu1  ;;  %v3227_v57 = vadd.f32 %v3226_v47, %v3114_v26  ;;  %v3116_v34 = vadd.f32 %v3115_v46, %v7643_v41  ;;  %v7909_v60 = vadd.f32 %v7688_v44, %v3312_v0  ;;  %4635 = vmatpush2.bf16.msra.mxu1 %v6408_v42  ;;  %v8743_v0 = vmax.f32 %v7902_v24, 0.0 }
 0x275   : > { %v3117_v45 = vpop.f32.mrf.mxu0  ;;  %4636 = vmatprep.subr.bf16.mxu1 %v6413_v16  ;;  %v3315_v42 = vmul.f32 %v7679_v29, %v3225_v36 }
 0x276   : > { %8886 = vst [vmem:[#allocation70_spill] sm:$0xff] %v7909_v60  ;;  %v3230_v22 = vpop.f32.mrf.mxu1  ;;  %v3229_v17 = vadd.f32 %v3228_v20, %v3116_v34  ;;  %v8744_v41 = vmax.f32 %v7909_v60, 0.0  ;;  %v3316_v47 = vmul.f32 %v7675_v53, %v3227_v57  ;;  %v3118_v26 = vadd.f32 %v3117_v45, %v3005_v49  ;;  %v6414_v49 = vld [vmem:[#allocation8 + $0x3a8] ss:$16 sps:$4 sm:$0xff]  }
 0x277   : > { %v3121_v51 = vpop.f32.mrf.mxu0  ;;  %v8887_v45 = vmax.f32 %v7893_v19, 0.0 }
 0x278   : > { %v3234_v58 = vpop.f32.mrf.mxu1  ;;  %v3319_v46 = vmul.f32 %v7679_v29, %v3229_v17  ;;  %v3122_v40 = vadd.f32 %v3121_v51, %v7651_v6  ;;  %v3231_v20 = vadd.f32 %v3230_v22, %v3118_v26  ;;  %4637 = vmatpush2.bf16.msra.mxu1 %v6411_v33  ;;  %v7923_v57 = vpack.c.bf16 %v8744_v41, %v8742_v48  ;;  %v6419_v22 = vld [vmem:[#allocation8 + $0x38c] ss:$16 sps:$4 sm:$0xff]  }
 0x279   : > { %v3123_v16 = vpop.f32.mrf.mxu0  ;;  %v7929_v36 = vpack.c.bf16 %v8887_v45, %v8743_v0  ;;  %4638 = vmatprep.subr.bf16.mxu1 %v6416_v61  ;;  %v7936_v33 = vadd.f32 %v7688_v44, %v3316_v47  ;;  %v7941_v48 = vadd.f32 %v7693_v1, %v3315_v42 }
 0x27a   : > { %v3236_v34 = vpop.f32.mrf.mxu1  ;;  %v7932_v17 = vadd.f32 %v7693_v1, %v3319_v46  ;;  %v3124_v6 = vadd.f32 %v3123_v16, %v7653_v35  ;;  %v3320_v26 = vmul.f32 %v7675_v53, %v3231_v20  ;;  %4474 = vmatprep.mubr.bf16.mxu1 %v7923_v57  ;;  %v3235_v45 = vadd.f32 %v3234_v58, %v3122_v40  ;;  %v6417_v20 = vld [vmem:[#allocation8 + $0x388] ss:$16 sps:$4 sm:$0xff]   ;;  %v6422_v40 = vld [vmem:[#allocation8 + $0x36c] ss:$16 sps:$4 sm:$0xff]  }
 0x27b   : > { %8889 = vst [vmem:[#allocation72_spill] sm:$0xff] %v7936_v33  ;;  %v3125_v51 = vpop.f32.mrf.mxu0  ;;  %8890 = vst [vmem:[#allocation73_spill] sm:$0xff] %v7941_v48  ;;  %4475 = vmatmul.mubr.bf16.gmra.mxu1 %v7929_v36  ;;  %v3015_v35 = vadd.f32 %v7661_v59, %v7659_v3  ;;  %v8746_v58 = vmax.f32 %v7936_v33, 0.0  ;;  %v8745_v3 = vmax.f32 %v7941_v48, 0.0 }
 0x27c   : > { %8888 = vst [vmem:[#allocation71_spill] sm:$0xff] %v7932_v17  ;;  %v3237_v0 = vadd.f32 %v3236_v34, %v3124_v6  ;;  %v3126_v46 = vadd.f32 %v3125_v51, %v7655_v31  ;;  %v3238_v41 = vpop.f32.mrf.mxu1  ;;  %v7948_v61 = vadd.f32 %v7688_v44, %v3320_v26  ;;  %4639 = vmatpush2.bf16.msra.mxu1 %v6414_v49  ;;  %v8747_v16 = vmax.f32 %v7932_v17, 0.0 }
 0x27d   : > { %v3127_v47 = vpop.f32.mrf.mxu0  ;;  %4640 = vmatprep.subr.bf16.mxu1 %v6419_v22  ;;  %v3323_v59 = vmul.f32 %v7679_v29, %v3235_v45  ;;  %v6420_v22 = vld [vmem:[#allocation8 + $0x368] ss:$16 sps:$4 sm:$0xff]   ;;  %v6425_v45 = vld [vmem:[#allocation8 + $0x34c] ss:$16 sps:$4 sm:$0xff]  }
 0x27e   : > { %8891 = vst [vmem:[#allocation74_spill] sm:$0xff] %v7948_v61  ;;  %v3239_v42 = vadd.f32 %v3238_v41, %v3126_v46  ;;  %v8748_v31 = vmax.f32 %v7948_v61, 0.0  ;;  %v3324_v34 = vmul.f32 %v7675_v53, %v3237_v0  ;;  %v3128_v6 = vadd.f32 %v3127_v47, %v3015_v35  ;;  %v3240_v26 = vpop.f32.mrf.mxu1 }
 0x27f   : > { %v3505_v0 = vpack.c.bf16 %v8747_v16, %v8745_v3  ;;  %v7973_v47 = vadd.f32 %v7693_v1, %v3323_v59 }
 0x280   : > { %v3327_v49 = vmul.f32 %v7679_v29, %v3239_v42  ;;  %v3241_v51 = vadd.f32 %v3240_v26, %v3128_v6  ;;  %4641 = vmatpush2.bf16.msra.mxu1 %v6417_v20  ;;  %v3506_v41 = vpack.c.bf16 %v8748_v31, %v8746_v58  ;;  %v7969_v29 = vadd.f32 %v7688_v44, %v3324_v34  ;;  %v6423_v42 = vld [vmem:[#allocation8 + $0x348] ss:$16 sps:$4 sm:$0xff]   ;;  %v6431_v26 = vld [vmem:[#allocation8 + $0x30c] ss:$16 sps:$4 sm:$0xff]  }
 0x281   : > { %4642 = vmatprep.subr.bf16.mxu1 %v6422_v40  ;;  %8894 = vst [vmem:[#allocation77_spill] sm:$0xff] %v7973_v47  ;;  %v6428_v40 = vld [vmem:[#allocation8 + $0x32c] ss:$16 sps:$4 sm:$0xff]  }
 0x282   : > { %v7966_v46 = vadd.f32 %v7693_v1, %v3327_v49  ;;  %8893 = vst [vmem:[#allocation76_spill] sm:$0xff] %v7969_v29  ;;  %v3328_v35 = vmul.f32 %v7675_v53, %v3241_v51  ;;  %4484 = vmatprep.mubr.bf16.mxu1 %v3506_v41  ;;  %v8750_v49 = vmax.f32 %v7969_v29, 0.0  ;;  %v8749_v53 = vmax.f32 %v7973_v47, 0.0  ;;  %v6429_v51 = vld [vmem:[#allocation8 + $0x308] ss:$16 sps:$4 sm:$0xff]  }
 0x283   : > { %4485 = vmatmul.mubr.bf16.gmra.mxu1 %v3505_v0 }
 0x284   : > { %8892 = vst [vmem:[#allocation75_spill] sm:$0xff] %v7966_v46  ;;  %v7976_v20 = vadd.f32 %v7688_v44, %v3328_v35  ;;  %4643 = vmatpush2.bf16.msra.mxu1 %v6420_v22  ;;  %v8751_v6 = vmax.f32 %v7966_v46, 0.0  ;;  %v6426_v44 = vld [vmem:[#allocation8 + $0x328] ss:$16 sps:$4 sm:$0xff]  }
 0x285   : > { %4644 = vmatprep.subr.bf16.mxu1 %v6425_v45 }
 0x286   : > { %8895 = vst [vmem:[#allocation78_spill] sm:$0xff] %v7976_v20  ;;  %v8752_v34 = vmax.f32 %v7976_v20, 0.0  ;;  %v3509_v59 = vpack.c.bf16 %v8751_v6, %v8749_v53 }
 0x288   : > { %4645 = vmatpush2.bf16.msra.mxu1 %v6423_v42  ;;  %v3510_v1 = vpack.c.bf16 %v8752_v34, %v8750_v49 }
 0x289   : > { %4646 = vmatprep.subr.bf16.mxu1 %v6428_v40 }
 0x28a   : > { %4494 = vmatprep.mubr.bf16.mxu1 %v3510_v1 }
 0x28b   : > { %4495 = vmatmul.mubr.bf16.gmra.mxu1 %v3509_v59 }
 0x28c   : > { %4647 = vmatpush2.bf16.msra.mxu1 %v6426_v44  ;;  %4650 = vmatprep.mubr.bf16.mxu1 %v7727_v56 }
 0x28d   : > { %4648 = vmatprep.subr.bf16.mxu1 %v6431_v26 }
 0x290   : > { %4649 = vmatpush2.bf16.msra.mxu1 %v6429_v51 }
 0x293   : > { %4651 = vmatmul.mubr.bf16.vlgmr.msra.gmra.mxu1 %v7733_v54  ;;  %v7993_v22 = vpop.f32.mrf.mxu0 }
 0x294   : > { %4660 = vmatprep.mubr.bf16.mxu1 %v7766_v13  ;;  %8896 = vst [vmem:[#allocation79_spill] sm:$0xff] %v7993_v22 }
 0x295   : > { %v7995_v45 = vpop.f32.mrf.mxu0 }
 0x296   : > { %8897 = vst [vmem:[#allocation80_spill] sm:$0xff] %v7995_v45 }
 0x297   : > { %v7999_v35 = vpop.f32.mrf.mxu0 }
 0x298   : > { %8898 = vst [vmem:[#allocation81_spill] sm:$0xff] %v7999_v35 }
 0x299   : > { %v8001_v42 = vpop.f32.mrf.mxu0 }
 0x29a   : > { %8899 = vst [vmem:[#allocation82_spill] sm:$0xff] %v8001_v42 }
 0x29b   : > { %4661 = vmatmul.mubr.bf16.gmra.mxu1 %v7772_v50  ;;  %v8005_v56 = vpop.f32.mrf.mxu0 }
 0x29c   : > { %4670 = vmatprep.mubr.bf16.mxu1 %v7807_v27  ;;  %8900 = vst [vmem:[#allocation83_spill] sm:$0xff] %v8005_v56 }
 0x29d   : > { %v8007_v54 = vpop.f32.mrf.mxu0 }
 0x29e   : > { %8901 = vst [vmem:[#allocation84_spill] sm:$0xff] %v8007_v54 }
 0x29f   : > { %v8011_v13 = vpop.f32.mrf.mxu0 }
 0x2a0   : > { %8902 = vst [vmem:[#allocation85_spill] sm:$0xff] %v8011_v13 }
 0x2a1   : > { %v8013_v50 = vpop.f32.mrf.mxu0 }
 0x2a3   : > { %4671 = vmatmul.mubr.bf16.gmra.mxu1 %v7813_v21 }
 0x2a4   : > { %4680 = vmatprep.mubr.bf16.mxu1 %v7845_v55  ;;  %v8017_v27 = vpop.f32.mrf.mxu0 }
 0x2a6   : > { %v8019_v21 = vpop.f32.mrf.mxu0 }
 0x2a8   : > { %v8022_v55 = vpop.f32.mrf.mxu0 }
 0x2ab   : > { %4681 = vmatmul.mubr.bf16.gmra.mxu1 %v7851_v12  ;;  %v8024_v12 = vpop.f32.mrf.mxu0 }
 0x2ac   : > { %4690 = vmatprep.mubr.bf16.mxu1 %v7884_v23 }
 0x2ad   : > { %v8026_v23 = vpop.f32.mrf.mxu0 }
 0x2af   : > { %v8028_v40 = vpop.f32.mrf.mxu0 }
 0x2b3   : > { %4691 = vmatmul.mubr.bf16.gmra.mxu1 %v7890_v52  ;;  %v8030_v52 = vpop.f32.mrf.mxu0 }
 0x2b4   : > { %4700 = vmatprep.mubr.bf16.mxu1 %v7923_v57 }
 0x2b5   : > { %v8032_v57 = vpop.f32.mrf.mxu0 }
 0x2b7   : > { %v8034_v44 = vpop.f32.mrf.mxu0 }
 0x2b9   : > { %v8036_v26 = vpop.f32.mrf.mxu0 }
 0x2bb   : > { %4701 = vmatmul.mubr.bf16.gmra.mxu1 %v7929_v36  ;;  %v8038_v36 = vpop.f32.mrf.mxu0 }
 0x2bc   : > { %4710 = vmatprep.mubr.bf16.mxu1 %v3506_v41 }
 0x2bd   : > { %v8040_v41 = vpop.f32.mrf.mxu0 }
 0x2bf   : > { %v8042_v51 = vpop.f32.mrf.mxu0 }
 0x2c3   : > { %4711 = vmatmul.mubr.bf16.gmra.mxu1 %v3505_v0  ;;  %v8044_v0 = vpop.f32.mrf.mxu0 }
 0x2c4   : > { %4720 = vmatprep.mubr.bf16.mxu1 %v3510_v1 }
 0x2c5   : > { %v8046_v1 = vpop.f32.mrf.mxu0 }
 0x2c7   : > { %v8048_v3 = vpop.f32.mrf.mxu0 }
 0x2cb   : > { %4721 = vmatmul.mubr.bf16.gmra.mxu1 %v3509_v59  ;;  %v8050_v59 = vpop.f32.mrf.mxu0 }
 0x2cd   : > { %v8052_v58 = vpop.f32.mrf.mxu0 }
 0x2cf   : > { %v8054_v16 = vpop.f32.mrf.mxu0 }
 0x2d1   : > { %v4379_v31 = vpop.f32.mrf.mxu0 }
 0x2d3   : > { %v4383_v53 = vpop.f32.mrf.mxu0 }
 0x2d5   : > { %v4385_v49 = vpop.f32.mrf.mxu0 }
 0x2d7   : > { %v4387_v6 = vpop.f32.mrf.mxu0 }
 0x2d9   : > { %v4389_v34 = vpop.f32.mrf.mxu0 }
 0x2db   : > { %v8060_v38 = vpop.f32.mrf.mxu0 }
 0x2dc   : > { %8905 = vst [vmem:[#allocation88_spill] sm:$0xff] %v8060_v38 }
 0x2dd   : > { %v8066_v8 = vpop.f32.mrf.mxu0 }
 0x2de   : > { %8908 = vst [vmem:[#allocation91_spill] sm:$0xff] %v8066_v8 }
 0x2df   : > { %v8070_v63 = vpop.f32.mrf.mxu0 }
 0x2e0   : > { %8910 = vst [vmem:[#allocation93_spill] sm:$0xff] %v8070_v63 }
 0x2e1   : > { %v8076_v18 = vpop.f32.mrf.mxu0 }
 0x2e2   : > { %8913 = vst [vmem:[#allocation96_spill] sm:$0xff] %v8076_v18 }
 0x2e3   : > { %v8082_v38 = vpop.f32.mrf.mxu0 }
 0x2e4   : > { %8915 = vst [vmem:[#allocation98_spill] sm:$0xff] %v8082_v38 }
 0x2e5   : > { %v8088_v8 = vpop.f32.mrf.mxu0 }
 0x2e6   : > { %8916 = vst [vmem:[#allocation99_spill] sm:$0xff] %v8088_v8 }
 0x2e7   : > { %v8094_v24 = vpop.f32.mrf.mxu0 }
 0x2e8   : > { %8917 = vst [vmem:[#allocation100_spill] sm:$0xff] %v8094_v24 }
 0x2e9   : > { %v8100_v19 = vpop.f32.mrf.mxu0 }
 0x2ea   : > { %8918 = vst [vmem:[#allocation101_spill] sm:$0xff] %v8100_v19 }
 0x2eb   : > { %v8106_v48 = vpop.f32.mrf.mxu0 }
 0x2ec   : > { %8919 = vst [vmem:[#allocation102_spill] sm:$0xff] %v8106_v48 }
 0x2ed   : > { %v8112_v17 = vpop.f32.mrf.mxu0 }
 0x2ee   : > { %8920 = vst [vmem:[#allocation103_spill] sm:$0xff] %v8112_v17 }
 0x2ef   : > { %v8118_v47 = vpop.f32.mrf.mxu0 }
 0x2f0   : > { %8921 = vst [vmem:[#allocation104_spill] sm:$0xff] %v8118_v47  ;;  %v8131_v47 = vld [vmem:[%s8634_s5] sm:$0xf] }
 0x2f1   : > { %v8120_v46 = vpop.f32.mrf.mxu0 }
 0x2f2   : > { %8922 = vst [vmem:[#allocation105_spill] sm:$0xff] %v8120_v46  ;;  %v8135_v46 = vrot.slane %v8131_v47, %v7229_v43 }
 0x313   : > { %v8056_v37 = vpop.f32.mrf.mxu1 }
 0x314   : > { %8903 = vst [vmem:[#allocation86_spill] sm:$0xff] %v8056_v37  ;;  %v8122_v37 = vpop.f32.mrf.mxu0 }
 0x315   : > { %v8058_v30 = vpop.f32.mrf.mxu1  ;;  %8923 = vst [vmem:[#allocation106_spill] sm:$0xff] %v8122_v37  ;;  %v8137_v37 = vld [vmem:[#allocation10] sm:$0xf] }
 0x316   : > { %8904 = vst [vmem:[#allocation87_spill] sm:$0xff] %v8058_v30  ;;  %8926 = vst [vmem:[#allocation109_spill] sm:$0xff] %v8137_v37 }
 0x317   : > { %v8062_v62 = vpop.f32.mrf.mxu1 }
 0x318   : > { %8906 = vst [vmem:[#allocation89_spill] sm:$0xff] %v8062_v62  ;;  %v8124_v62 = vpop.f32.mrf.mxu0 }
 0x319   : > { %v8064_v39 = vpop.f32.mrf.mxu1  ;;  %8924 = vst [vmem:[#allocation107_spill] sm:$0xff] %v8124_v62  ;;  %v8927_v62 = vld [vmem:[#allocation14_spill] sm:$0xff] }
 0x31a   : > { %8907 = vst [vmem:[#allocation90_spill] sm:$0xff] %v8064_v39  ;;  %v8126_v30 = vpop.f32.mrf.mxu0  ;;  %v8141_v42 = vrot.slane %v8131_v47, %v8927_v62 }
 0x31b   : > { %v8068_v15 = vpop.f32.mrf.mxu1  ;;  %8925 = vst [vmem:[#allocation108_spill] sm:$0xff] %v8126_v30 }
 0x31c   : > { %8909 = vst [vmem:[#allocation92_spill] sm:$0xff] %v8068_v15 }
 0x31d   : > { %v8072_v25 = vpop.f32.mrf.mxu1 }
 0x31e   : > { %8911 = vst [vmem:[#allocation94_spill] sm:$0xff] %v8072_v25  ;;  %v8144_v25 = vpop.f32.mrf.mxu0 }
 0x31f   : > { %v8074_v7 = vpop.f32.mrf.mxu1  ;;  %8928 = vst [vmem:[#allocation110_spill] sm:$0xff] %v8144_v25 }
 0x320   : > { %8912 = vst [vmem:[#allocation95_spill] sm:$0xff] %v8074_v7 }
 0x321   : > { %v8078_v2 = vpop.f32.mrf.mxu1 }
 0x323   : > { %v8080_v4 = vpop.f32.mrf.mxu1 }
 0x324   : > { %8914 = vst [vmem:[#allocation97_spill] sm:$0xff] %v8080_v4  ;;  %v8148_v4 = vrot.slane %v8137_v37, %v8927_v62 }
 0x325   : > { %v8084_v28 = vpop.f32.mrf.mxu1 }
 0x327   : > { %v8086_v32 = vpop.f32.mrf.mxu1 }
 0x329   : > { %v8090_v5 = vpop.f32.mrf.mxu1 }
 0x32b   : > { %v8092_v63 = vpop.f32.mrf.mxu1 }
 0x32d   : > { %v8096_v10 = vpop.f32.mrf.mxu1 }
 0x32f   : > { %v8098_v18 = vpop.f32.mrf.mxu1 }
 0x331   : > { %v8102_v60 = vpop.f32.mrf.mxu1 }
 0x333   : > { %v8104_v38 = vpop.f32.mrf.mxu1 }
 0x335   : > { %v8108_v33 = vpop.f32.mrf.mxu1 }
 0x337   : > { %v8110_v8 = vpop.f32.mrf.mxu1 }
 0x339   : > { %v8114_v61 = vpop.f32.mrf.mxu1 }
 0x33b   : > { %v8116_v24 = vpop.f32.mrf.mxu1 }
 0x33d   : > { %v4478_v29 = vpop.f32.mrf.mxu1 }
 0x33f   : > { %v4480_v19 = vpop.f32.mrf.mxu1 }
 0x341   : > { %v4482_v20 = vpop.f32.mrf.mxu1 }
 0x343   : > { %v4486_v11 = vpop.f32.mrf.mxu1 }
 0x345   : > { %v4488_v48 = vpop.f32.mrf.mxu1 }
 0x347   : > { %v4490_v22 = vpop.f32.mrf.mxu1 }
 0x349   : > { %v4492_v35 = vpop.f32.mrf.mxu1 }
 0x34a   : > { %v4493_v30 = vadd.f32 %v4492_v35, %v4379_v31  ;;  %v4491_v31 = vadd.f32 %v4490_v22, %v8054_v16  ;;  %v4483_v16 = vadd.f32 %v4482_v20, %v8048_v3 }
 0x34b   : > { %v4496_v17 = vpop.f32.mrf.mxu1 }
 0x34c   : > { %v4497_v56 = vadd.f32 %v4496_v17, %v4383_v53 }
 0x34d   : > { %v4498_v45 = vpop.f32.mrf.mxu1 }
 0x34e   : > { %v4499_v15 = vadd.f32 %v4498_v45, %v4385_v49  ;;  %v8152_v49 = vrot.slane %v8137_v37, %v7229_v43  ;;  %v4489_v45 = vadd.f32 %v4488_v48, %v8052_v58  ;;  %v8164_v37 = vpop.f32.mrf.mxu0  ;;  %v8171_v48 = vld [vmem:[%s8636_s7] sm:$0xf]  ;;  %v4487_v58 = vadd.f32 %v4486_v11, %v8050_v59 }
 0x34f   : > { %v4500_v39 = vpop.f32.mrf.mxu1  ;;  %v4481_v59 = vadd.f32 %v4480_v19, %v8046_v1  ;;  %v8937_v19 = vld [vmem:[#allocation43_spill] sm:$0xff] }
 0x350   : > { %v4810_v7 = vmul.f32 %v8135_v46, %v4499_v15  ;;  %v4501_v13 = vadd.f32 %v4500_v39, %v4387_v6  ;;  %v4809_v15 = vmul.f32 %v8141_v42, %v4497_v56  ;;  %v4806_v6 = vmul.f32 %v8135_v46, %v4493_v30  ;;  %v8184_v20 = vpop.f32.mrf.mxu0 }
 0x351   : > { %v4502_v54 = vpop.f32.mrf.mxu1 }
 0x352   : > { %v4813_v17 = vmul.f32 %v8141_v42, %v4501_v13  ;;  %v4503_v53 = vadd.f32 %v4502_v54, %v4389_v34  ;;  %v4896_v35 = vadd.f32 %v8152_v49, %v4810_v7  ;;  %v4805_v7 = vmul.f32 %v8141_v42, %v4491_v31 }
 0x353   : > { %v8158_v39 = vpop.f32.mrf.mxu1  ;;  %v4895_v34 = vadd.f32 %v8148_v4, %v4809_v15  ;;  %v5050_v54 = vrot.slane %v8171_v48, %v7229_v43  ;;  %v8933_v43 = vmax.f32 %v7553_v14, 0.0  ;;  %v8938_v14 = vmax.f32 %v8937_v19, 0.0 }
 0x354   : > { %8929 = vst [vmem:[#allocation111_spill] sm:$0xff] %v8158_v39  ;;  %v4899_v25 = vadd.f32 %v8148_v4, %v4813_v17  ;;  %v4814_v62 = vmul.f32 %v8135_v46, %v4503_v53  ;;  %v4802_v17 = vmul.f32 %v8135_v46, %v4489_v45  ;;  %v4892_v53 = vadd.f32 %v8152_v49, %v4806_v6 }
 0x355   : > { %v8166_v13 = vpop.f32.mrf.mxu1  ;;  %v4960_v39 = vmax.f32 %v4896_v35, 0.0  ;;  %5127 = vmatprep.mubr.f32.mxu0 %v5050_v54  ;;  %v4801_v45 = vmul.f32 %v8141_v42, %v4487_v58  ;;  %v4891_v15 = vadd.f32 %v8148_v4, %v4805_v7  ;;  %v4959_v6 = vmax.f32 %v4895_v34, 0.0  ;;  %v8934_v35 = vld [vmem:[#allocation44_spill] sm:$0xff]  ;;  %v8204_v58 = vpop.f32.mrf.mxu0 }
 0x356   : > { %8930 = vst [vmem:[#allocation112_spill] sm:$0xff] %v8166_v13  ;;  %v4900_v30 = vadd.f32 %v8152_v49, %v4814_v62  ;;  %v4963_v22 = vmax.f32 %v4899_v25, 0.0  ;;  %v5058_v62 = vrot.slane %v8171_v48, %v7664_v9  ;;  %v4479_v25 = vadd.f32 %v4478_v29, %v8044_v0 }
 0x357   : > { %v8178_v56 = vpop.f32.mrf.mxu1  ;;  %v4798_v54 = vmul.f32 %v8135_v46, %v4483_v16  ;;  %v4888_v29 = vadd.f32 %v8152_v49, %v4802_v17  ;;  %v4956_v0 = vmax.f32 %v4892_v53, 0.0  ;;  %v5024_v1 = vadd.f32 %v4960_v39, %v8938_v14  ;;  %v8222_v19 = vpop.f32.mrf.mxu0 }
 0x358   : > { %8931 = vst [vmem:[#allocation113_spill] sm:$0xff] %v8178_v56  ;;  %v4964_v3 = vmax.f32 %v4900_v30, 0.0  ;;  %v8935_v30 = vmax.f32 %v8934_v35, 0.0  ;;  %5197 = vmatprep.mubr.f32.mxu1 %v5058_v62  ;;  %v4473_v34 = vadd.f32 %v8114_v61, %v8040_v41  ;;  %v6615_v16 = vmov 0   ;;  %v8940_v62 = vld [vmem:[#allocation45_spill] sm:$0xff] }
 0x359   : > { %v8186_v11 = vpop.f32.mrf.mxu1  ;;  %5855 = vset.pattern.permute.xlu0 %v6615_v16  ;;  %v4797_v17 = vmul.f32 %v8141_v42, %v4481_v59  ;;  %v4887_v53 = vadd.f32 %v8148_v4, %v4801_v45  ;;  %v4955_v39 = vmax.f32 %v4891_v15, 0.0  ;;  %v4884_v61 = vadd.f32 %v8152_v49, %v4798_v54 }
 0x35a   : > { %8932 = vst [vmem:[#allocation114_spill] sm:$0xff] %v8186_v11  ;;  %v5028_v31 = vadd.f32 %v4964_v3, %v8933_v43  ;;  %v5027_v56 = vadd.f32 %v4963_v22, %v8935_v30  ;;  %v5032_v3 = vld [vmem:[#allocation2] sm:$0x1]  ;;  %v4477_v22 = vadd.f32 %v8116_v24, %v8042_v51  ;;  %v8941_v43 = vmax.f32 %v8940_v62, 0.0  ;;  %v8943_v24 = vld [vmem:[#allocation42_spill] sm:$0xff] }
 0x35b   : > { %v8198_v13 = vpop.f32.mrf.mxu1  ;;  %5035 = vperm.xlu0 %5855, %v5032_v3   ;;  %v4952_v41 = vmax.f32 %v4888_v29, 0.0  ;;  %v8944_v51 = vmax.f32 %v8943_v24, 0.0  ;;  %v4469_v45 = vadd.f32 %v8108_v33, %v8036_v26  ;;  %v4471_v15 = vadd.f32 %v8110_v8, %v8038_v36  ;;  %v8945_v29 = vld [vmem:[#allocation39_spill] sm:$0xff]  ;;  %v8948_v33 = vld [vmem:[#allocation40_spill] sm:$0xff]  ;;  %v8240_v8 = vpop.f32.mrf.mxu0 }
 0x35c   : > { %8936 = vst [vmem:[#allocation44_spill] sm:$0xff] %v8198_v13  ;;  %5063 = vmatprep.subr.mxu0 %v5028_v31  ;;  %v5023_v31 = vadd.f32 %v4959_v6, %v8941_v43  ;;  %v4883_v6 = vadd.f32 %v8148_v4, %v4797_v17  ;;  %v4951_v54 = vmax.f32 %v4887_v53, 0.0  ;;  %v8946_v14 = vmax.f32 %v8945_v29, 0.0 }
 0x35d   : > { %v8206_v7 = vpop.f32.mrf.mxu1  ;;  %5064 = vmatpush1.xpose.msra.mxu0 %v5027_v56  ;;  %v4794_v56 = vmul.f32 %v8135_v46, %v4479_v25  ;;  %v5020_v30 = vadd.f32 %v4956_v0, %v8944_v51  ;;  %v4793_v25 = vmul.f32 %v8141_v42, %v4477_v22  ;;  %v4790_v3 = vmul.f32 %v8135_v46, %v4473_v34 }
 0x35e   : > { %8939 = vst [vmem:[#allocation43_spill] sm:$0xff] %v8206_v7  ;;  %5065 = vmatprep.subr.mxu0 %v5024_v1  ;;  %v5019_v0 = vadd.f32 %v4955_v39, %v8946_v14  ;;  %v4948_v62 = vmax.f32 %v4884_v61, 0.0  ;;  %v8949_v26 = vmax.f32 %v8948_v33, 0.0  ;;  %v4463_v22 = vadd.f32 %v8102_v60, %v8032_v57  ;;  %v8952_v60 = vld [vmem:[#allocation38_spill] sm:$0xff]  ;;  %v8954_v14 = vld [vmem:[#allocation35_spill] sm:$0xff] }
 0x35f   : > { %v8216_v35 = vpop.f32.mrf.mxu1  ;;  %v4880_v16 = vadd.f32 %v8152_v49, %v4794_v56  ;;  %v4467_v17 = vadd.f32 %v8104_v38, %v8034_v44  ;;  %v4789_v34 = vmul.f32 %v8141_v42, %v4471_v15  ;;  %v4879_v53 = vadd.f32 %v8148_v4, %v4793_v25  ;;  %v8258_v38 = vpop.f32.mrf.mxu0 }
 0x360   : > { %8942 = vst [vmem:[#allocation45_spill] sm:$0xff] %v8216_v35  ;;  %v5016_v43 = vadd.f32 %v4952_v41, %v8949_v26  ;;  %v4947_v39 = vmax.f32 %v4883_v6, 0.0  ;;  %v4786_v24 = vmul.f32 %v8135_v46, %v4469_v45  ;;  %v4876_v51 = vadd.f32 %v8152_v49, %v4790_v3 }
 0x361   : > { %v8224_v59 = vpop.f32.mrf.mxu1  ;;  %5066 = vmatpush1.xpose.msra.mxu0 %v5023_v31  ;;  %v8950_v31 = vld [vmem:[#allocation41_spill] sm:$0xff]  ;;  %v8953_v57 = vmax.f32 %v8952_v60, 0.0  ;;  %v4459_v15 = vadd.f32 %v8096_v10, %v8028_v40  ;;  %v4461_v25 = vadd.f32 %v8098_v18, %v8030_v52  ;;  %v4785_v45 = vmul.f32 %v8141_v42, %v4467_v17  ;;  %v8276_v18 = vpop.f32.mrf.mxu0 }
 0x362   : > { %5067 = vmatprep.subr.mxu0 %v5020_v30  ;;  %v8951_v56 = vmax.f32 %v8950_v31, 0.0  ;;  %v4944_v30 = vmax.f32 %v4880_v16, 0.0  ;;  %v4875_v6 = vadd.f32 %v8148_v4, %v4789_v34  ;;  %v4872_v33 = vadd.f32 %v8152_v49, %v4786_v24  ;;  %v8956_v10 = vld [vmem:[#allocation37_spill] sm:$0xff]  ;;  %v8958_v31 = vld [vmem:[#allocation36_spill] sm:$0xff] }
 0x363   : > { %v8234_v1 = vpop.f32.mrf.mxu1  ;;  %v5012_v29 = vadd.f32 %v4948_v62, %v8953_v57  ;;  %v4782_v62 = vmul.f32 %v8135_v46, %v4463_v22  ;;  %v4940_v26 = vmax.f32 %v4876_v51, 0.0  ;;  %v8957_v40 = vmax.f32 %v8956_v10, 0.0 }
 0x364   : > { %8947 = vst [vmem:[#allocation42_spill] sm:$0xff] %v8234_v1  ;;  %v5015_v61 = vadd.f32 %v4951_v54, %v8951_v56  ;;  %v4943_v54 = vmax.f32 %v4879_v53, 0.0  ;;  %v4453_v17 = vadd.f32 %v8090_v5, %v8024_v12  ;;  %v4457_v34 = vadd.f32 %v8092_v63, %v8026_v23  ;;  %v8960_v5 = vld [vmem:[#allocation34_spill] sm:$0xff]  ;;  %v8294_v63 = vpop.f32.mrf.mxu0 }
 0x365   : > { %v8242_v36 = vpop.f32.mrf.mxu1  ;;  %5068 = vmatpush1.xpose.msra.mxu0 %v5019_v0  ;;  %v8955_v0 = vmax.f32 %v8954_v14, 0.0  ;;  %v4781_v22 = vmul.f32 %v8141_v42, %v4461_v25  ;;  %v4871_v53 = vadd.f32 %v8148_v4, %v4785_v45  ;;  %v8959_v56 = vmax.f32 %v8958_v31, 0.0 }
 0x366   : > { %5069 = vmatprep.subr.mxu0 %v5016_v43  ;;  %v5008_v43 = vadd.f32 %v4944_v30, %v8957_v40  ;;  %v4778_v51 = vmul.f32 %v8135_v46, %v4459_v15  ;;  %v4868_v30 = vadd.f32 %v8152_v49, %v4782_v62  ;;  %v4936_v60 = vmax.f32 %v4872_v33, 0.0 }
 0x367   : > { %v8252_v41 = vpop.f32.mrf.mxu1  ;;  %v5011_v3 = vadd.f32 %v4947_v39, %v8955_v0  ;;  %v4939_v39 = vmax.f32 %v4875_v6, 0.0  ;;  %v8961_v12 = vmax.f32 %v8960_v5, 0.0  ;;  %v4451_v25 = vadd.f32 %v8086_v32, %v8022_v55  ;;  %v8312_v32 = vpop.f32.mrf.mxu0 }
 0x368   : > { %v4777_v15 = vmul.f32 %v8141_v42, %v4457_v34  ;;  %v4867_v45 = vadd.f32 %v8148_v4, %v4781_v22  ;;  %v4935_v6 = vmax.f32 %v4871_v53, 0.0  ;;  %v4774_v62 = vmul.f32 %v8135_v46, %v4453_v17 }
 0x369   : > { %v8260_v44 = vpop.f32.mrf.mxu1  ;;  %5070 = vmatpush1.xpose.msra.mxu0 %v5015_v61  ;;  %v5007_v61 = vadd.f32 %v4943_v54, %v8959_v56  ;;  %v5004_v57 = vadd.f32 %v4940_v26, %v8961_v12  ;;  %v8962_v54 = vld [vmem:[#allocation31_spill] sm:$0xff]  ;;  %v4864_v33 = vadd.f32 %v8152_v49, %v4778_v51  ;;  %v4932_v26 = vmax.f32 %v4868_v30, 0.0 }
 0x36a   : > { %5071 = vmatprep.subr.mxu0 %v5012_v29  ;;  %v4449_v29 = vadd.f32 %v8084_v28, %v8019_v21  ;;  %v8963_v14 = vmax.f32 %v8962_v54, 0.0  ;;  %v8964_v28 = vld [vmem:[#allocation32_spill] sm:$0xff]  ;;  %v4443_v40 = vadd.f32 %v8078_v2, %v8013_v50  ;;  %v4773_v17 = vmul.f32 %v8141_v42, %v4451_v25  ;;  %v8969_v2 = vld [vmem:[#allocation30_spill] sm:$0xff] }
 0x36b   : > { %v8270_v16 = vpop.f32.mrf.mxu1  ;;  %v8965_v21 = vmax.f32 %v8964_v28, 0.0  ;;  %v4863_v22 = vadd.f32 %v8148_v4, %v4777_v15  ;;  %v4931_v53 = vmax.f32 %v4867_v45, 0.0  ;;  %v4860_v30 = vadd.f32 %v8152_v49, %v4774_v62  ;;  %v8972_v25 = vld [vmem:[#allocation94_spill] sm:$0xff]  ;;  %v8973_v45 = vld [vmem:[#allocation85_spill] sm:$0xff] }
 0x36c   : > { %v5003_v0 = vadd.f32 %v4939_v39, %v8963_v14  ;;  %v8967_v39 = vld [vmem:[#allocation33_spill] sm:$0xff]  ;;  %v4770_v51 = vmul.f32 %v8135_v46, %v4449_v29  ;;  %v8970_v50 = vmax.f32 %v8969_v2, 0.0  ;;  %v4859_v14 = vadd.f32 %v8148_v4, %v4773_v17  ;;  %v8980_v17 = vld [vmem:[#allocation90_spill] sm:$0xff] }
 0x36d   : > { %v8278_v52 = vpop.f32.mrf.mxu1  ;;  %5072 = vmatpush1.xpose.msra.mxu0 %v5011_v3  ;;  %v5000_v10 = vadd.f32 %v4936_v60, %v8965_v21  ;;  %v8968_v31 = vmax.f32 %v8967_v39, 0.0  ;;  %v4928_v60 = vmax.f32 %v4864_v33, 0.0  ;;  %v8975_v62 = vld [vmem:[#allocation29_spill] sm:$0xff]  ;;  %v4766_v21 = vmul.f32 %v8135_v46, %v4443_v40  ;;  %v8977_v39 = vld [vmem:[#allocation28_spill] sm:$0xff] }
 0x36e   : > { %5073 = vmatprep.subr.mxu0 %v5008_v43  ;;  %v8966_v43 = vld [vmem:[#allocation97_spill] sm:$0xff]  ;;  %v4996_v5 = vadd.f32 %v4932_v26, %v8970_v50  ;;  %v8976_v33 = vmax.f32 %v8975_v62, 0.0 }
 0x36f   : > { %v8288_v24 = vpop.f32.mrf.mxu1  ;;  %v4447_v34 = vadd.f32 %v8966_v43, %v8017_v27  ;;  %v4999_v56 = vadd.f32 %v4935_v6, %v8968_v31  ;;  %v8330_v27 = vpop.f32.mrf.mxu0  ;;  %v8974_v6 = vld [vmem:[#allocation95_spill] sm:$0xff]  ;;  %v4924_v43 = vmax.f32 %v4860_v30, 0.0  ;;  %v8978_v31 = vmax.f32 %v8977_v39, 0.0  ;;  %v8985_v39 = vld [vmem:[#allocation26_spill] sm:$0xff] }
 0x370   : > { %v4441_v54 = vadd.f32 %v8974_v6, %v8973_v45  ;;  %v4995_v26 = vadd.f32 %v4931_v53, %v8976_v33  ;;  %v8982_v53 = vld [vmem:[#allocation92_spill] sm:$0xff]  ;;  %v4923_v30 = vmax.f32 %v4859_v14, 0.0  ;;  %v4852_v33 = vadd.f32 %v8152_v49, %v4766_v21 }
 0x371   : > { %v8296_v23 = vpop.f32.mrf.mxu1  ;;  %5074 = vmatpush1.xpose.msra.mxu0 %v5007_v61  ;;  %v4769_v29 = vmul.f32 %v8141_v42, %v4447_v34  ;;  %v8348_v2 = vpop.f32.mrf.mxu0  ;;  %v8979_v34 = vld [vmem:[#allocation82_spill] sm:$0xff] }
 0x372   : > { %5075 = vmatprep.subr.mxu0 %v5004_v57  ;;  %v8971_v57 = vld [vmem:[#allocation84_spill] sm:$0xff]  ;;  %v4765_v40 = vmul.f32 %v8141_v42, %v4441_v54  ;;  %v4916_v13 = vmax.f32 %v4852_v33, 0.0 }
 0x373   : > { %v8306_v3 = vpop.f32.mrf.mxu1  ;;  %v4439_v15 = vadd.f32 %v8972_v25, %v8971_v57  ;;  %v8983_v25 = vld [vmem:[#allocation27_spill] sm:$0xff]  ;;  %v8987_v54 = vld [vmem:[#allocation80_spill] sm:$0xff] }
 0x374   : > { %v8984_v45 = vmax.f32 %v8983_v25, 0.0 }
 0x375   : > { %v8314_v55 = vpop.f32.mrf.mxu1  ;;  %5076 = vmatpush1.xpose.msra.mxu0 %v5003_v0  ;;  %v4927_v0 = vmax.f32 %v4863_v22, 0.0  ;;  %v4433_v22 = vadd.f32 %v8980_v17, %v8979_v34  ;;  %v4762_v62 = vmul.f32 %v8135_v46, %v4439_v15  ;;  %v4605_v17 = vpop.f32.mrf.mxu0  ;;  %v4851_v15 = vadd.f32 %v8148_v4, %v4765_v40 }
 0x376   : > { %5077 = vmatprep.subr.mxu0 %v5000_v10  ;;  %v4856_v10 = vadd.f32 %v8152_v49, %v4770_v51  ;;  %v4855_v51 = vadd.f32 %v8148_v4, %v4769_v29  ;;  %v8988_v29 = vld [vmem:[#allocation87_spill] sm:$0xff] }
 0x377   : > { %v8324_v61 = vpop.f32.mrf.mxu1  ;;  %v4429_v14 = vadd.f32 %v8988_v29, %v8987_v54  ;;  %v8993_v54 = vld [vmem:[#allocation23_spill] sm:$0xff] }
 0x378   : > { %v4919_v21 = vmax.f32 %v4855_v51, 0.0  ;;  %v8994_v29 = vmax.f32 %v8993_v54, 0.0 }
 0x379   : > { %v8332_v12 = vpop.f32.mrf.mxu1  ;;  %5078 = vmatpush1.xpose.msra.mxu0 %v4999_v56  ;;  %v4992_v56 = vadd.f32 %v4928_v60, %v8978_v31  ;;  %v4991_v60 = vadd.f32 %v4927_v0, %v8984_v45  ;;  %v8986_v31 = vmax.f32 %v8985_v39, 0.0  ;;  %v4754_v51 = vmul.f32 %v8135_v46, %v4429_v14 }
 0x37a   : > { %5079 = vmatprep.subr.mxu0 %v4996_v5  ;;  %v8981_v5 = vld [vmem:[#allocation83_spill] sm:$0xff] }
 0x37b   : > { %v8342_v28 = vpop.f32.mrf.mxu1  ;;  %v4437_v57 = vadd.f32 %v8982_v53, %v8981_v5  ;;  %v4988_v34 = vadd.f32 %v4924_v43, %v8986_v31  ;;  %v8989_v5 = vld [vmem:[#allocation81_spill] sm:$0xff]  ;;  %v4758_v31 = vmul.f32 %v8135_v46, %v4433_v22  ;;  %v4915_v22 = vmax.f32 %v4851_v15, 0.0 }
 0x37c   : > { %v8990_v53 = vld [vmem:[#allocation89_spill] sm:$0xff] }
 0x37d   : > { %v8350_v50 = vpop.f32.mrf.mxu1  ;;  %5080 = vmatpush1.xpose.msra.mxu0 %v4995_v26  ;;  %v4920_v26 = vmax.f32 %v4856_v10, 0.0  ;;  %v4431_v0 = vadd.f32 %v8990_v53, %v8989_v5  ;;  %v4761_v25 = vmul.f32 %v8141_v42, %v4437_v57  ;;  %v8991_v10 = vld [vmem:[#allocation24_spill] sm:$0xff]  ;;  %v4609_v5 = vpop.f32.mrf.mxu0  ;;  %v8995_v57 = vld [vmem:[#allocation79_spill] sm:$0xff]  ;;  %v8996_v53 = vld [vmem:[#allocation86_spill] sm:$0xff] }
 0x37e   : > { %5081 = vmatprep.subr.mxu0 %v4992_v56  ;;  %v8992_v45 = vmax.f32 %v8991_v10, 0.0  ;;  %v4427_v40 = vadd.f32 %v8996_v53, %v8995_v57 }
 0x37f   : > { %v8360_v6 = vpop.f32.mrf.mxu1  ;;  %v4984_v11 = vadd.f32 %v4920_v26, %v8994_v29  ;;  %v4847_v10 = vadd.f32 %v8148_v4, %v4761_v25  ;;  %v4844_v26 = vadd.f32 %v8152_v49, %v4758_v31  ;;  %v8999_v29 = vld [vmem:[#allocation22_spill] sm:$0xff]  ;;  %v4611_v1 = vpop.f32.mrf.mxu0  ;;  %v9001_v25 = vld [vmem:[#allocation19_spill] sm:$0xff] }
 0x380   : > { %v4987_v39 = vadd.f32 %v4923_v30, %v8992_v45  ;;  %v4757_v30 = vmul.f32 %v8141_v42, %v4431_v0  ;;  %v8997_v45 = vld [vmem:[#allocation25_spill] sm:$0xff]  ;;  %v4753_v46 = vmul.f32 %v8141_v42, %v4427_v40  ;;  %v9002_v15 = vmax.f32 %v9001_v25, 0.0  ;;  %v9007_v25 = vld [vmem:[#allocation18_spill] sm:$0xff] }
 0x381   : > { %v8366_v56 = vpop.f32.mrf.mxu1  ;;  %5082 = vmatpush1.xpose.msra.mxu0 %v4991_v60  ;;  %v4848_v60 = vadd.f32 %v8152_v49, %v4762_v62  ;;  %v8998_v62 = vmax.f32 %v8997_v45, 0.0  ;;  %v4911_v0 = vmax.f32 %v4847_v10, 0.0  ;;  %v4908_v31 = vmax.f32 %v4844_v26, 0.0 }
 0x382   : > { %5083 = vmatprep.subr.mxu0 %v4988_v34  ;;  %v4843_v14 = vadd.f32 %v8148_v4, %v4757_v30 }
 0x383   : > { %v8376_v43 = vpop.f32.mrf.mxu1  ;;  %v4983_v33 = vadd.f32 %v4919_v21, %v8998_v62  ;;  %v4912_v54 = vmax.f32 %v4848_v60, 0.0  ;;  %v4979_v21 = vadd.f32 %v4915_v22, %v9002_v15  ;;  %v9003_v60 = vld [vmem:[#allocation21_spill] sm:$0xff]  ;;  %v9008_v15 = vmax.f32 %v9007_v25, 0.0 }
 0x384   : > { %v9004_v45 = vmax.f32 %v9003_v60, 0.0  ;;  %v4907_v40 = vmax.f32 %v4843_v14, 0.0 }
 0x385   : > { %v4714_v34 = vpop.f32.mrf.mxu1  ;;  %5084 = vmatpush1.xpose.msra.mxu0 %v4987_v39  ;;  %v9000_v39 = vmax.f32 %v8999_v29, 0.0 }
 0x386   : > { %5085 = vmatprep.subr.mxu0 %v4984_v11  ;;  %v4840_v11 = vadd.f32 %v8152_v49, %v4754_v51  ;;  %v4976_v62 = vadd.f32 %v4912_v54, %v9004_v45  ;;  %v8402_v49 = vrot.slane %v8131_v47, %v7664_v9  ;;  %v9005_v51 = vld [vmem:[#allocation20_spill] sm:$0xff] }
 0x387   : > { %v4716_v35 = vpop.f32.mrf.mxu1  ;;  %v4980_v7 = vadd.f32 %v4916_v13, %v9000_v39  ;;  %v4613_v13 = vpop.f32.mrf.mxu0  ;;  %v9006_v30 = vmax.f32 %v9005_v51, 0.0 }
 0x388   : > { %v4904_v42 = vmax.f32 %v4840_v11, 0.0 }
 0x389   : > { %v4718_v57 = vpop.f32.mrf.mxu1  ;;  %5086 = vmatpush1.xpose.msra.mxu0 %v4983_v33  ;;  %v4839_v33 = vadd.f32 %v8148_v4, %v4753_v46  ;;  %v4975_v10 = vadd.f32 %v4911_v0, %v9006_v30  ;;  %v4615_v4 = vpop.f32.mrf.mxu0  ;;  %v9009_v46 = vld [vmem:[#allocation46_spill] sm:$0xff]  ;;  %v9011_v0 = vld [vmem:[#allocation16_spill] sm:$0xff] }
 0x38a   : > { %5087 = vmatprep.subr.mxu0 %v4980_v7  ;;  %v4719_v39 = vadd.f32 %v4718_v57, %v4605_v17  ;;  %v8411_v11 = vrot.slane %v8131_v47, %v9009_v46 }
 0x38b   : > { %v4722_v53 = vpop.f32.mrf.mxu1 }
 0x38c   : > { %v4723_v22 = vadd.f32 %v4722_v53, %v4609_v5  ;;  %v4903_v5 = vmax.f32 %v4839_v33, 0.0  ;;  %v9012_v53 = vmax.f32 %v9011_v0, 0.0  ;;  %v4715_v33 = vadd.f32 %v4714_v34, %v8330_v27 }
 0x38d   : > { %v4724_v29 = vpop.f32.mrf.mxu1  ;;  %5088 = vmatpush1.xpose.msra.mxu0 %v4979_v21  ;;  %v4972_v21 = vadd.f32 %v4908_v31, %v9008_v15  ;;  %v4808_v30 = vmul.f32 %v8402_v49, %v4719_v39  ;;  %v4713_v34 = vadd.f32 %v8376_v43, %v8312_v32 }
 0x38e   : > { %v4725_v7 = vadd.f32 %v4724_v29, %v4611_v1  ;;  %5089 = vmatprep.subr.mxu0 %v4976_v62  ;;  %v9010_v1 = vld [vmem:[#allocation109_spill] sm:$0xff]  ;;  %v4968_v31 = vadd.f32 %v4904_v42, %v9012_v53  ;;  %v9013_v62 = vld [vmem:[#allocation15_spill] sm:$0xff]  ;;  %v4811_v51 = vmul.f32 %v8411_v11, %v4723_v22  ;;  %v9017_v22 = vld [vmem:[#allocation14_spill] sm:$0xff] }
 0x38f   : > { %v4726_v26 = vpop.f32.mrf.mxu1  ;;  %v8415_v60 = vrot.slane %v9010_v1, %v9009_v46  ;;  %v8419_v17 = vrot.slane %v9010_v1, %v7664_v9  ;;  %v9014_v47 = vmax.f32 %v9013_v62, 0.0  ;;  %v9015_v42 = vld [vmem:[#allocation17_spill] sm:$0xff]  ;;  %v5046_v27 = vrot.slane %v8171_v48, %v9017_v22  ;;  %v9020_v53 = vld [vmem:[#allocation75_spill] sm:$0xff] }
 0x390   : > { %v4812_v54 = vmul.f32 %v8402_v49, %v4725_v7  ;;  %v4727_v14 = vadd.f32 %v4726_v26, %v4613_v13  ;;  %v4717_v7 = vadd.f32 %v4716_v35, %v8348_v2  ;;  %v9016_v25 = vmax.f32 %v9015_v42, 0.0 }
 0x391   : > { %v4728_v45 = vpop.f32.mrf.mxu1  ;;  %5090 = vmatpush1.xpose.msra.mxu0 %v4975_v10  ;;  %v4971_v29 = vadd.f32 %v4907_v40, %v9014_v47  ;;  %v4709_v35 = vadd.f32 %v8366_v56, %v8294_v63  ;;  %v4705_v56 = vadd.f32 %v8350_v50, %v8258_v38  ;;  %v9022_v38 = vld [vmem:[#allocation76_spill] sm:$0xff] }
 0x392   : > { %v4729_v57 = vadd.f32 %v4728_v45, %v4615_v4  ;;  %5091 = vmatprep.subr.mxu0 %v4972_v21  ;;  %v4815_v13 = vmul.f32 %v8411_v11, %v4727_v14  ;;  %v4898_v9 = vadd.f32 %v8419_v17, %v4812_v54  ;;  %v4967_v40 = vadd.f32 %v4903_v5, %v9016_v25  ;;  %v9018_v45 = vld [vmem:[#allocation78_spill] sm:$0xff] }
 0x393   : > { %v4807_v39 = vmul.f32 %v8411_v11, %v4717_v7  ;;  %v4897_v54 = vadd.f32 %v8415_v60, %v4811_v51  ;;  %v4804_v21 = vmul.f32 %v8402_v49, %v4715_v33  ;;  %v4894_v4 = vadd.f32 %v8419_v17, %v4808_v30 }
 0x394   : > { %v4816_v10 = vmul.f32 %v8402_v49, %v4729_v57  ;;  %v4901_v26 = vadd.f32 %v8415_v60, %v4815_v13  ;;  %v4962_v1 = vmax.f32 %v4898_v9, 0.0  ;;  %v4707_v14 = vadd.f32 %v8360_v6, %v8276_v18  ;;  %v9024_v9 = vld [vmem:[#allocation77_spill] sm:$0xff] }
 0x395   : > { %5092 = vmatpush1.xpose.msra.mxu0 %v4971_v29  ;;  %v9019_v32 = vmax.f32 %v9018_v45, 0.0  ;;  %v4803_v5 = vmul.f32 %v8411_v11, %v4713_v34  ;;  %v4893_v57 = vadd.f32 %v8415_v60, %v4807_v39  ;;  %v4961_v0 = vmax.f32 %v4897_v54, 0.0  ;;  %v9028_v39 = vld [vmem:[#allocation71_spill] sm:$0xff] }
 0x396   : > { %v4902_v2 = vadd.f32 %v8419_v17, %v4816_v10  ;;  %5093 = vmatprep.subr.mxu0 %v4968_v31  ;;  %v4965_v15 = vmax.f32 %v4901_v26, 0.0  ;;  %v9021_v31 = vmax.f32 %v9020_v53, 0.0  ;;  %v4800_v47 = vmul.f32 %v8402_v49, %v4709_v35  ;;  %v9026_v35 = vld [vmem:[#allocation74_spill] sm:$0xff] }
 0x397   : > { %v4890_v29 = vadd.f32 %v8419_v17, %v4804_v21  ;;  %v4958_v7 = vmax.f32 %v4894_v4, 0.0  ;;  %v9023_v50 = vmax.f32 %v9022_v38, 0.0  ;;  %v4699_v6 = vadd.f32 %v8332_v12, %v8222_v19 }
 0x398   : > { %v4966_v63 = vmax.f32 %v4902_v2, 0.0  ;;  %v5029_v62 = vadd.f32 %v4965_v15, %v9021_v31  ;;  %v4703_v51 = vadd.f32 %v8342_v28, %v8240_v8  ;;  %v4799_v13 = vmul.f32 %v8411_v11, %v4707_v14 }
 0x399   : > { %5094 = vmatpush1.xpose.msra.mxu0 %v4967_v40  ;;  %v5026_v18 = vadd.f32 %v4962_v1, %v9023_v50  ;;  %v4889_v33 = vadd.f32 %v8415_v60, %v4803_v5  ;;  %v4957_v30 = vmax.f32 %v4893_v57, 0.0  ;;  %v9025_v10 = vmax.f32 %v9024_v9, 0.0 }
 0x39a   : > { %v5030_v43 = vadd.f32 %v4966_v63, %v9019_v32  ;;  %v4796_v42 = vmul.f32 %v8402_v49, %v4705_v56  ;;  %v4886_v25 = vadd.f32 %v8419_v17, %v4800_v47  ;;  %v4954_v40 = vmax.f32 %v4890_v29, 0.0  ;;  %v9030_v63 = vld [vmem:[#allocation72_spill] sm:$0xff]  ;;  %v9037_v29 = vld [vmem:[#allocation107_spill] sm:$0xff] }
 0x39b   : > { %v5025_v26 = vadd.f32 %v4961_v0, %v9025_v10  ;;  %v9027_v2 = vmax.f32 %v9026_v35, 0.0  ;;  %v4695_v8 = vadd.f32 %v8314_v55, %v8184_v20  ;;  %v4697_v12 = vadd.f32 %v8324_v61, %v8204_v58  ;;  %v9032_v55 = vld [vmem:[#allocation110_spill] sm:$0xff]  ;;  %v9041_v10 = vld [vmem:[#allocation68_spill] sm:$0xff] }
 0x39c   : > { %5133 = vmatprep.subr.mxu1 %v5030_v43  ;;  %5128 = vmatmul.mubr.f32.vlgmr.msra.gmra.mxu0 %v5046_v27  ;;  %v4795_v28 = vmul.f32 %v8411_v11, %v4703_v51  ;;  %v4885_v27 = vadd.f32 %v8415_v60, %v4799_v13  ;;  %v4953_v34 = vmax.f32 %v4889_v33, 0.0  ;;  %v9029_v54 = vmax.f32 %v9028_v39, 0.0  ;;  %v9033_v43 = vld [vmem:[#allocation73_spill] sm:$0xff] }
 0x39d   : > { %5134 = vmatpush1.xpose.msra.mxu1 %v5029_v62  ;;  %v5022_v19 = vadd.f32 %v4958_v7, %v9027_v2  ;;  %v4792_v21 = vmul.f32 %v8402_v49, %v4699_v6  ;;  %v4882_v4 = vadd.f32 %v8419_v17, %v4796_v42  ;;  %v4950_v1 = vmax.f32 %v4886_v25, 0.0  ;;  %v9035_v62 = vld [vmem:[#allocation70_spill] sm:$0xff]  ;;  %v9039_v6 = vld [vmem:[#allocation67_spill] sm:$0xff]  ;;  %v9043_v42 = vld [vmem:[#allocation105_spill] sm:$0xff] }
 0x39e   : > { %5135 = vmatprep.subr.mxu1 %v5026_v18  ;;  %v5021_v15 = vadd.f32 %v4957_v30, %v9029_v54  ;;  %v9031_v56 = vmax.f32 %v9030_v63, 0.0  ;;  %v4689_v58 = vadd.f32 %v8296_v23, %v9032_v55  ;;  %v4693_v61 = vadd.f32 %v8306_v3, %v8164_v37  ;;  %v9038_v3 = vld [vmem:[#allocation108_spill] sm:$0xff]  ;;  %v9044_v25 = vld [vmem:[#allocation106_spill] sm:$0xff]  ;;  %v9051_v55 = vld [vmem:[#allocation63_spill] sm:$0xff] }
 0x39f   : > { %v4791_v14 = vmul.f32 %v8411_v11, %v4697_v12  ;;  %v4881_v45 = vadd.f32 %v8415_v60, %v4795_v28  ;;  %v4949_v32 = vmax.f32 %v4885_v27, 0.0  ;;  %v9034_v5 = vmax.f32 %v9033_v43, 0.0  ;;  %v9047_v54 = vld [vmem:[#allocation66_spill] sm:$0xff]  ;;  %v9053_v43 = vld [vmem:[#allocation64_spill] sm:$0xff] }
 0x3a0   : > { %v5018_v20 = vadd.f32 %v4954_v40, %v9031_v56  ;;  %v4788_v0 = vmul.f32 %v8402_v49, %v4695_v8  ;;  %v4878_v53 = vadd.f32 %v8419_v17, %v4792_v21  ;;  %v4946_v31 = vmax.f32 %v4882_v4, 0.0  ;;  %v9045_v8 = vld [vmem:[#allocation69_spill] sm:$0xff]  ;;  %v9049_v21 = vld [vmem:[#allocation103_spill] sm:$0xff]  ;;  %v9050_v4 = vld [vmem:[#allocation104_spill] sm:$0xff] }
 0x3a1   : > { %5136 = vmatpush1.xpose.msra.mxu1 %v5025_v26  ;;  %v5017_v57 = vadd.f32 %v4953_v34, %v9034_v5  ;;  %v9036_v47 = vmax.f32 %v9035_v62, 0.0  ;;  %v4685_v37 = vadd.f32 %v8278_v52, %v9037_v29  ;;  %v4687_v7 = vadd.f32 %v8288_v24, %v9038_v3  ;;  %v9058_v29 = vld [vmem:[#allocation65_spill] sm:$0xff] }
 0x3a2   : > { %5137 = vmatprep.subr.mxu1 %v5022_v19  ;;  %v4787_v38 = vmul.f32 %v8411_v11, %v4693_v61  ;;  %v4877_v50 = vadd.f32 %v8415_v60, %v4791_v14  ;;  %v4945_v18 = vmax.f32 %v4881_v45, 0.0  ;;  %v9040_v51 = vmax.f32 %v9039_v6, 0.0 }
 0x3a3   : > { %v5014_v23 = vadd.f32 %v4950_v1, %v9036_v47  ;;  %v4784_v33 = vmul.f32 %v8402_v49, %v4689_v58  ;;  %v4874_v30 = vadd.f32 %v8419_v17, %v4788_v0  ;;  %v4942_v9 = vmax.f32 %v4878_v53, 0.0  ;;  %v9056_v0 = vld [vmem:[#allocation102_spill] sm:$0xff] }
 0x3a4   : > { %v5013_v13 = vadd.f32 %v4949_v32, %v9040_v51  ;;  %v9042_v26 = vmax.f32 %v9041_v10, 0.0  ;;  %v4679_v24 = vadd.f32 %v8260_v44, %v9043_v42  ;;  %v4683_v40 = vadd.f32 %v8270_v16, %v9044_v25  ;;  %v9057_v53 = vld [vmem:[#allocation42_spill] sm:$0xff]  ;;  %v9062_v51 = vld [vmem:[#allocation99_spill] sm:$0xff] }
 0x3a5   : > { %5138 = vmatpush1.xpose.msra.mxu1 %v5021_v15  ;;  %v4783_v35 = vmul.f32 %v8411_v11, %v4687_v7  ;;  %v4873_v2 = vadd.f32 %v8415_v60, %v4787_v38  ;;  %v4941_v19 = vmax.f32 %v4877_v50, 0.0  ;;  %v9046_v12 = vmax.f32 %v9045_v8, 0.0  ;;  %v9068_v8 = vld [vmem:[#allocation60_spill] sm:$0xff] }
 0x3a6   : > { %5139 = vmatprep.subr.mxu1 %v5018_v20  ;;  %v5010_v52 = vadd.f32 %v4946_v31, %v9042_v26  ;;  %v4780_v27 = vmul.f32 %v8402_v49, %v4685_v37  ;;  %v4870_v34 = vadd.f32 %v8419_v17, %v4784_v33  ;;  %v4938_v39 = vmax.f32 %v4874_v30, 0.0  ;;  %v9064_v30 = vld [vmem:[#allocation100_spill] sm:$0xff] }
 0x3a7   : > { %v5009_v28 = vadd.f32 %v4945_v18, %v9046_v12  ;;  %v9048_v15 = vmax.f32 %v9047_v54, 0.0  ;;  %v4675_v16 = vadd.f32 %v8242_v36, %v9049_v21  ;;  %v4677_v1 = vadd.f32 %v8252_v41, %v9050_v4  ;;  %v9060_v18 = vld [vmem:[#allocation62_spill] sm:$0xff] }
 0x3a8   : > { %v4779_v63 = vmul.f32 %v8411_v11, %v4683_v40  ;;  %v4869_v56 = vadd.f32 %v8415_v60, %v4783_v35  ;;  %v4937_v20 = vmax.f32 %v4873_v2, 0.0  ;;  %v9052_v58 = vmax.f32 %v9051_v55, 0.0  ;;  %v9072_v54 = vld [vmem:[#allocation98_spill] sm:$0xff] }
 0x3a9   : > { %5140 = vmatpush1.xpose.msra.mxu1 %v5017_v57  ;;  %v5006_v44 = vadd.f32 %v4942_v9, %v9048_v15  ;;  %v4776_v14 = vmul.f32 %v8402_v49, %v4679_v24  ;;  %v4866_v45 = vadd.f32 %v8419_v17, %v4780_v27  ;;  %v4934_v32 = vmax.f32 %v4870_v34, 0.0  ;;  %v9055_v57 = vld [vmem:[#allocation101_spill] sm:$0xff]  ;;  %v9066_v24 = vld [vmem:[#allocation59_spill] sm:$0xff]  ;;  %v9070_v27 = vld [vmem:[#allocation96_spill] sm:$0xff] }
 0x3aa   : > { %5141 = vmatprep.subr.mxu1 %v5014_v23  ;;  %v5005_v61 = vadd.f32 %v4941_v19, %v9052_v58  ;;  %v9054_v5 = vmax.f32 %v9053_v43, 0.0  ;;  %v4669_v41 = vadd.f32 %v8224_v59, %v9055_v57  ;;  %v4673_v31 = vadd.f32 %v9057_v53, %v9056_v0  ;;  %v9065_v9 = vld [vmem:[#allocation45_spill] sm:$0xff]  ;;  %v9071_v34 = vld [vmem:[#allocation114_spill] sm:$0xff]  ;;  %v9073_v15 = vld [vmem:[#allocation44_spill] sm:$0xff] }
 0x3ab   : > { %v4775_v62 = vmul.f32 %v8411_v11, %v4677_v1  ;;  %v4865_v47 = vadd.f32 %v8415_v60, %v4779_v63  ;;  %v4933_v23 = vmax.f32 %v4869_v56, 0.0  ;;  %v9059_v37 = vmax.f32 %v9058_v29, 0.0  ;;  %v9074_v1 = vld [vmem:[#allocation61_spill] sm:$0xff]  ;;  %v9079_v43 = vld [vmem:[#allocation112_spill] sm:$0xff] }
 0x3ac   : > { %v5002_v36 = vadd.f32 %v4938_v39, %v9054_v5  ;;  %v4772_v7 = vmul.f32 %v8402_v49, %v4675_v16  ;;  %v4862_v38 = vadd.f32 %v8419_v17, %v4776_v14  ;;  %v4930_v50 = vmax.f32 %v4866_v45, 0.0  ;;  %v9081_v57 = vld [vmem:[#allocation113_spill] sm:$0xff] }
 0x3ad   : > { %5142 = vmatpush1.xpose.msra.mxu1 %v5013_v13  ;;  %v5001_v3 = vadd.f32 %v4937_v20, %v9059_v37  ;;  %v9061_v6 = vmax.f32 %v9060_v18, 0.0  ;;  %v9063_v13 = vld [vmem:[#allocation43_spill] sm:$0xff]  ;;  %v4667_v10 = vadd.f32 %v9065_v9, %v9064_v30  ;;  %v4771_v26 = vmul.f32 %v8411_v11, %v4673_v31  ;;  %v9086_v18 = vld [vmem:[#allocation88_spill] sm:$0xff]  ;;  %v9088_v30 = vld [vmem:[#allocation57_spill] sm:$0xff] }
 0x3ae   : > { %5143 = vmatprep.subr.mxu1 %v5010_v52  ;;  %v4665_v33 = vadd.f32 %v9063_v13, %v9062_v51  ;;  %v4861_v52 = vadd.f32 %v8415_v60, %v4775_v62  ;;  %v4929_v42 = vmax.f32 %v4865_v47, 0.0  ;;  %v9067_v25 = vmax.f32 %v9066_v24, 0.0  ;;  %v9082_v62 = vld [vmem:[#allocation55_spill] sm:$0xff]  ;;  %v9090_v24 = vld [vmem:[#allocation54_spill] sm:$0xff] }
 0x3af   : > { %v4998_v59 = vadd.f32 %v4934_v32, %v9061_v6  ;;  %v4768_v35 = vmul.f32 %v8402_v49, %v4669_v41  ;;  %v4858_v2 = vadd.f32 %v8419_v17, %v4772_v7  ;;  %v4926_v19 = vmax.f32 %v4862_v38, 0.0  ;;  %v9078_v32 = vld [vmem:[#allocation91_spill] sm:$0xff]  ;;  %v9084_v7 = vld [vmem:[#allocation56_spill] sm:$0xff] }
 0x3b0   : > { %v4997_v40 = vadd.f32 %v4933_v23, %v9067_v25  ;;  %v9069_v12 = vmax.f32 %v9068_v8, 0.0  ;;  %v4659_v39 = vadd.f32 %v9071_v34, %v9070_v27  ;;  %v4767_v21 = vmul.f32 %v8411_v11, %v4667_v10  ;;  %v9087_v6 = vld [vmem:[#allocation111_spill] sm:$0xff] }
 0x3b1   : > { %5144 = vmatpush1.xpose.msra.mxu1 %v5009_v28  ;;  %v4857_v16 = vadd.f32 %v8415_v60, %v4771_v26  ;;  %v4925_v4 = vmax.f32 %v4861_v52, 0.0  ;;  %v9075_v63 = vmax.f32 %v9074_v1, 0.0  ;;  %v4764_v20 = vmul.f32 %v8402_v49, %v4665_v33  ;;  %v9092_v8 = vld [vmem:[#allocation51_spill] sm:$0xff]  ;;  %v9098_v1 = vld [vmem:[#allocation50_spill] sm:$0xff] }
 0x3b2   : > { %5145 = vmatprep.subr.mxu1 %v5006_v44  ;;  %v4994_v28 = vadd.f32 %v4930_v50, %v9069_v12  ;;  %v4663_v44 = vadd.f32 %v9073_v15, %v9072_v54  ;;  %v4854_v55 = vadd.f32 %v8419_v17, %v4768_v35  ;;  %v4922_v58 = vmax.f32 %v4858_v2, 0.0 }
 0x3b3   : > { %v4993_v56 = vadd.f32 %v4929_v42, %v9075_v63  ;;  %v4655_v5 = vadd.f32 %v9079_v43, %v9078_v32  ;;  %v4853_v53 = vadd.f32 %v8415_v60, %v4767_v21  ;;  %v4921_v31 = vmax.f32 %v4857_v16, 0.0  ;;  %v9096_v21 = vld [vmem:[#allocation53_spill] sm:$0xff] }
 0x3b4   : > { %v4763_v0 = vmul.f32 %v8411_v11, %v4663_v44  ;;  %v9083_v47 = vmax.f32 %v9082_v62, 0.0  ;;  %v4760_v29 = vmul.f32 %v8402_v49, %v4659_v39  ;;  %v4850_v37 = vadd.f32 %v8419_v17, %v4764_v20  ;;  %v9100_v20 = vld [vmem:[#allocation48_spill] sm:$0xff] }
 0x3b5   : > { %5146 = vmatpush1.xpose.msra.mxu1 %v5005_v61  ;;  %v9076_v61 = vld [vmem:[#allocation58_spill] sm:$0xff]  ;;  %v9085_v38 = vmax.f32 %v9084_v7, 0.0  ;;  %v4917_v33 = vmax.f32 %v4853_v53, 0.0  ;;  %v9089_v9 = vmax.f32 %v9088_v30, 0.0  ;;  %v4756_v26 = vmul.f32 %v8402_v49, %v4655_v5  ;;  %v9094_v49 = vld [vmem:[#allocation52_spill] sm:$0xff] }
 0x3b6   : > { %5147 = vmatprep.subr.mxu1 %v5002_v36  ;;  %v9077_v14 = vmax.f32 %v9076_v61, 0.0  ;;  %v9080_v36 = vld [vmem:[#allocation93_spill] sm:$0xff]  ;;  %v4989_v23 = vadd.f32 %v4925_v4, %v9083_v47  ;;  %v4849_v13 = vadd.f32 %v8415_v60, %v4763_v0  ;;  %v4846_v52 = vadd.f32 %v8419_v17, %v4760_v29  ;;  %v9102_v61 = vld [vmem:[#allocation47_spill] sm:$0xff] }
 0x3b7   : > { %v4657_v41 = vadd.f32 %v9081_v57, %v9080_v36  ;;  %v4986_v50 = vadd.f32 %v4922_v58, %v9085_v38  ;;  %v4985_v10 = vadd.f32 %v4921_v31, %v9089_v9  ;;  %v4914_v42 = vmax.f32 %v4850_v37, 0.0 }
 0x3b8   : > { %v4990_v45 = vadd.f32 %v4926_v19, %v9077_v14  ;;  %v9091_v25 = vmax.f32 %v9090_v24, 0.0  ;;  %v4913_v19 = vmax.f32 %v4849_v13, 0.0  ;;  %v9093_v12 = vmax.f32 %v9092_v8, 0.0 }
 0x3b9   : > { %5148 = vmatpush1.xpose.msra.mxu1 %v5001_v3  ;;  %v4918_v3 = vmax.f32 %v4854_v55, 0.0  ;;  %v4759_v51 = vmul.f32 %v8411_v11, %v4657_v41  ;;  %v4842_v27 = vadd.f32 %v8419_v17, %v4756_v26  ;;  %v4910_v34 = vmax.f32 %v4846_v52, 0.0 }
 0x3ba   : > { %5149 = vmatprep.subr.mxu1 %v4998_v59  ;;  %v4653_v59 = vadd.f32 %v9087_v6, %v9086_v18  ;;  %v9095_v39 = vmax.f32 %v9094_v49, 0.0  ;;  %v9097_v16 = vmax.f32 %v9096_v21, 0.0  ;;  %v9099_v63 = vmax.f32 %v9098_v1, 0.0 }
 0x3bb   : > { %v4845_v2 = vadd.f32 %v8415_v60, %v4759_v51  ;;  %v4906_v4 = vmax.f32 %v4842_v27, 0.0  ;;  %v9101_v55 = vmax.f32 %v9100_v20, 0.0  ;;  %v9103_v14 = vmax.f32 %v9102_v61, 0.0 }
 0x3bc   : > { %v4755_v35 = vmul.f32 %v8411_v11, %v4653_v59  ;;  %v4978_v54 = vadd.f32 %v4914_v42, %v9095_v39  ;;  %v4977_v11 = vadd.f32 %v4913_v19, %v9097_v16  ;;  %v5054_v5 = vrot.slane %v8171_v48, %v9009_v46 }
 0x3bd   : > { %5150 = vmatpush1.xpose.msra.mxu1 %v4997_v40  ;;  %v4982_v40 = vadd.f32 %v4918_v3, %v9091_v25  ;;  %v4909_v44 = vmax.f32 %v4845_v2, 0.0 }
 0x3be   : > { %5151 = vmatprep.subr.mxu1 %v4994_v28  ;;  %v4981_v28 = vadd.f32 %v4917_v33, %v9093_v12  ;;  %v4841_v15 = vadd.f32 %v8415_v60, %v4755_v35  ;;  %v9104_v60 = vld [vmem:[#allocation49_spill] sm:$0xff] }
 0x3bf   : > { %v4973_v58 = vadd.f32 %v4909_v44, %v9101_v55  ;;  %v9105_v32 = vmax.f32 %v9104_v60, 0.0 }
 0x3c0   : > { %v4905_v17 = vmax.f32 %v4841_v15, 0.0 }
 0x3c1   : > { %5152 = vmatpush1.xpose.msra.mxu1 %v4993_v56  ;;  %v4974_v56 = vadd.f32 %v4910_v34, %v9099_v63 }
 0x3c2   : > { %5153 = vmatprep.subr.mxu1 %v4990_v45  ;;  %v4970_v45 = vadd.f32 %v4906_v4, %v9103_v14  ;;  %v4969_v43 = vadd.f32 %v4905_v17, %v9105_v32 }
 0x3c5   : > { %5154 = vmatpush1.xpose.msra.mxu1 %v4989_v23 }
 0x3c6   : > { %5155 = vmatprep.subr.mxu1 %v4986_v50 }
 0x3c9   : > { %5156 = vmatpush1.xpose.msra.mxu1 %v4985_v10 }
 0x3ca   : > { %5157 = vmatprep.subr.mxu1 %v4982_v40 }
 0x3cd   : > { %5158 = vmatpush1.xpose.msra.mxu1 %v4981_v28 }
 0x3ce   : > { %5159 = vmatprep.subr.mxu1 %v4978_v54 }
 0x3d1   : > { %5160 = vmatpush1.xpose.msra.mxu1 %v4977_v11 }
 0x3d2   : > { %5161 = vmatprep.subr.mxu1 %v4974_v56 }
 0x3d5   : > { %5162 = vmatpush1.xpose.msra.mxu1 %v4973_v58 }
 0x3d6   : > { %5163 = vmatprep.subr.mxu1 %v4970_v45  ;;  %v5036_v41 = vpop.permute.xlu0 %5035 }
 0x3d7   : > { %v5041_v0 = vrot.slane %v5036_v41, %v9017_v22 }
 0x3d9   : > { %5164 = vmatpush1.xpose.msra.mxu1 %v4969_v43 }
 0x3dc   : > { %5198 = vmatmul.mubr.f32.vlgmr.msra.gmra.mxu1 %v5054_v5 }
 0x45c   : > { %v5129_v36 = vpop.f32.mrf.mxu0 }
 0x45d   : > { %v5130_v53 = vadd.f32 %v5129_v36, %v5041_v0 }
 0x45e   : > { %v5131_v57 = vpop.f32.mrf.mxu0 }
 0x49c   : > { %v5199_v31 = vpop.f32.mrf.mxu1 }
 0x49d   : > { %v5200_v62 = vadd.f32 %v5199_v31, %v5130_v53 }
 0x49e   : > { %v5201_v47 = vpop.f32.mrf.mxu1 }
 0x49f   : > { %5203 = vst [vmem:[%s418_s29] sm:$0x1] %v5200_v62 }
 0x4a0 PF: > { %p23_p1 = scmp.ge.s32.totalorder %s6691_s15, 5   ;;  %s9106_s11 = smov %s6596_s12 }
 0x4a1   : > { %s9107_s12 = smov %s6600_s13  ;;  %s9108_s13 = smov %s6701_s18 }
 0x4a2   : > { %s9109_s14 = smov %s6691_s15  ;;  %25 = sbr.rel (!%p23_p1) target bundleno = 8 (0x8), region = 112 }
 0x4a7   :  { %5221 = vsyncpa [#allocation4], 1 }
 0x4a8   :  { %5223 = vsyncpa [#allocation4 + $0x1], 1 }
 0x4a9   :  { %5224 = vsyncpa [#allocation6], 1 }
 0x4aa   :  { %5225 = vsyncpa [#allocation9], 1 }

</bundles_post_ra>
